<compile_context>
chip_gen: v5e
topology: v5e:2x2
jax: 0.10.0
libtpu: 0.0.40
codegen_flags: <defaults>
</compile_context>

<pallas_src>
import functools
import math

import jax
import jax.numpy as jnp
from jax import lax
from jax.experimental import pallas as pl
from jax.experimental.pallas import tpu as pltpu


# ----------------------------- in-kernel helpers ---------------------------- #

def _layernorm(x, g, b, eps=1e-5):
    # LayerNorm over the last dim, eps = 1e-5 (torch default). x: (S, D), g/b: (1, D)
    mu = jnp.mean(x, axis=-1, keepdims=True)
    var = jnp.mean(jnp.square(x - mu), axis=-1, keepdims=True)
    return (x - mu) * lax.rsqrt(var + eps) * g + b


def _bmm(a, b, ca, cb):
    # Batch-leading batched matmul: batch dim 0 of both operands, contract a[ca] with b[cb].
    return lax.dot_general(a, b, (((ca,), (cb,)), ((0,), (0,))),
                           preferred_element_type=jnp.float32)


def _attention(xq_b, kv_b, mask, wq, bq, wk, bk, wv, bv, wo, bo):
    # xq_b: (H, S, D) broadcast query input; kv_b: (H, Sk, D) broadcast key/value input.
    # wq/wk/wv: (H, D, hd), bq/bk/bv: (H, 1, hd), wo: (H, hd, D), bo: (1, D).
    hd = wq.shape[-1]
    scale = 1.0 / math.sqrt(hd)
    q = _bmm(xq_b, wq, 2, 1) + bq                      # (H, S, hd)
    k = _bmm(kv_b, wk, 2, 1) + bk                      # (H, Sk, hd)
    v = _bmm(kv_b, wv, 2, 1) + bv                      # (H, Sk, hd)
    s = _bmm(q, k, 2, 2) * scale                       # (H, S, Sk)
    if mask is not None:
        s = s + mask[None]                             # additive mask, broadcast over heads
    m = jnp.max(s, axis=-1, keepdims=True)
    p = jnp.exp(s - m)
    p = p / jnp.sum(p, axis=-1, keepdims=True)
    ctx = _bmm(p, v, 2, 1)                             # (H, S, hd)
    out = jnp.sum(_bmm(ctx, wo, 2, 1), axis=0)         # (S, D)
    return out + bo


# ------------------------------- fused kernel ------------------------------- #

def _key_emotions_kernel(emb_ref, pe_ref, mask_ref, norm_g_ref, norm_b_ref,
                         sa_wq_ref, sa_bq_ref, sa_wk_ref, sa_bk_ref,
                         sa_wv_ref, sa_bv_ref, sa_wo_ref, sa_bo_ref,
                         ca_wq_ref, ca_bq_ref, ca_wk_ref, ca_bk_ref,
                         ca_wv_ref, ca_bv_ref, ca_wo_ref, ca_bo_ref,
                         ff_w1_ref, ff_b1_ref, ff_w2_ref, ff_b2_ref,
                         n1_g_ref, n1_b_ref, n2_g_ref, n2_b_ref,
                         n3_g_ref, n3_b_ref, fc_w_ref, fc_b_ref,
                         out_ref, *, nhead, num_layers):
    H = nhead

    # norm(embedding + positional encoding); dropout = identity.
    x = emb_ref[0].astype(jnp.float32) + pe_ref[...].astype(jnp.float32)  # (S, D)
    x = _layernorm(x, norm_g_ref[...], norm_b_ref[...])
    mem = x                                           # decoder memory = normalized input
    mem_b = jnp.broadcast_to(mem[None], (H,) + mem.shape)   # hoisted: reused by all layers
    mask = mask_ref[0]                                # (S, S) additive self-attn mask

    for l in range(num_layers):                       # static unroll over layers
        # --- self-attention block (post-norm) ---
        x_b = jnp.broadcast_to(x[None], (H,) + x.shape)
        sa = _attention(x_b, x_b, mask,
                        sa_wq_ref[l], sa_bq_ref[l], sa_wk_ref[l], sa_bk_ref[l],
                        sa_wv_ref[l], sa_bv_ref[l], sa_wo_ref[l], sa_bo_ref[l])
        x = _layernorm(x + sa, n1_g_ref[l], n1_b_ref[l])

        # --- cross-attention block (memory = decoder input, no mask) ---
        x_b = jnp.broadcast_to(x[None], (H,) + x.shape)
        ca = _attention(x_b, mem_b, None,
                        ca_wq_ref[l], ca_bq_ref[l], ca_wk_ref[l], ca_bk_ref[l],
                        ca_wv_ref[l], ca_bv_ref[l], ca_wo_ref[l], ca_bo_ref[l])
        x = _layernorm(x + ca, n2_g_ref[l], n2_b_ref[l])

        # --- feed-forward block (ReLU, torch default) ---
        h = jnp.dot(x, ff_w1_ref[l], preferred_element_type=jnp.float32) + ff_b1_ref[l]
        h = jnp.maximum(h, 0.0)
        y = jnp.dot(h, ff_w2_ref[l], preferred_element_type=jnp.float32) + ff_b2_ref[l]
        x = _layernorm(x + y, n3_g_ref[l], n3_b_ref[l])

    logits = jnp.dot(x, fc_w_ref[...], preferred_element_type=jnp.float32) + fc_b_ref[...]
    out_ref[0] = logits.astype(out_ref.dtype)


# ------------------------------ model (glue) -------------------------------- #

def positional_encoding(seq_len, d_model):
    position = jnp.arange(seq_len, dtype=jnp.float32)[:, None]
    div_term = jnp.exp(jnp.arange(0, d_model, 2, dtype=jnp.float32)
                       * (-math.log(10000.0) / d_model))
    ang = position * div_term
    # interleave: pe[:, 0::2]=sin, pe[:, 1::2]=cos
    return jnp.stack([jnp.sin(ang), jnp.cos(ang)], axis=-1).reshape(seq_len, d_model)


def init_params(key, vocab_size, d_model, nhead, num_layers, d_ff):
    """Torch-layout parameters (Linear weights stored [out_features, in_features])."""
    def nrm(k, shape, scale=0.02):
        return jax.random.normal(k, shape, jnp.float32) * scale

    keys = jax.random.split(key, 2 + num_layers)
    params = {
        "embedding": nrm(keys[0], (vocab_size, d_model)),
        "norm_g": jnp.ones((d_model,), jnp.float32),
        "norm_b": jnp.zeros((d_model,), jnp.float32),
        "fc_w": nrm(keys[1], (vocab_size, d_model)),
        "fc_b": jnp.zeros((vocab_size,), jnp.float32),
        "layers": [],
    }
    for l in range(num_layers):
        k = jax.random.split(keys[2 + l], 20)
        layer = dict(
            sa_wq=nrm(k[0], (d_model, d_model)), sa_bq=nrm(k[1], (d_model,)),
            sa_wk=nrm(k[2], (d_model, d_model)), sa_bk=nrm(k[3], (d_model,)),
            sa_wv=nrm(k[4], (d_model, d_model)), sa_bv=nrm(k[5], (d_model,)),
            sa_wo=nrm(k[6], (d_model, d_model)), sa_bo=nrm(k[7], (d_model,)),
            ca_wq=nrm(k[8], (d_model, d_model)), ca_bq=nrm(k[9], (d_model,)),
            ca_wk=nrm(k[10], (d_model, d_model)), ca_bk=nrm(k[11], (d_model,)),
            ca_wv=nrm(k[12], (d_model, d_model)), ca_bv=nrm(k[13], (d_model,)),
            ca_wo=nrm(k[14], (d_model, d_model)), ca_bo=nrm(k[15], (d_model,)),
            ff_w1=nrm(k[16], (d_ff, d_model)), ff_b1=nrm(k[17], (d_ff,)),
            ff_w2=nrm(k[18], (d_model, d_ff)), ff_b2=nrm(k[19], (d_model,)),
            n1_g=jnp.ones((d_model,), jnp.float32), n1_b=jnp.zeros((d_model,), jnp.float32),
            n2_g=jnp.ones((d_model,), jnp.float32), n2_b=jnp.zeros((d_model,), jnp.float32),
            n3_g=jnp.ones((d_model,), jnp.float32), n3_b=jnp.zeros((d_model,), jnp.float32),
        )
        params["layers"].append(layer)
    return params


def pack_params(params, nhead):
    """Repack torch-layout params into the kernel layout:
       weights [in, out] (no in-kernel transposes), attention weights per-head
       [H, D, hd] / [H, hd, D], all layer params stacked along a leading L axis."""
    D = params["embedding"].shape[1]
    hd = D // nhead
    layers = params["layers"]

    def head_w(w):                       # (out=D, in=D) -> (H, D_in, hd)
        return jnp.transpose(w.T.reshape(D, nhead, hd), (1, 0, 2))

    def head_b(b):                       # (D,) -> (H, 1, hd)
        return b.reshape(nhead, hd)[:, None, :]

    def out_w(w):                        # (out=D, in=D) -> (H, hd, D)
        return w.T.reshape(nhead, hd, D)

    def stk(fn, key):
        return jnp.stack([fn(lyr[key]) for lyr in layers])

    packed = {
        "embedding": params["embedding"],
        "norm_g": params["norm_g"].reshape(1, D),
        "norm_b": params["norm_b"].reshape(1, D),
        "fc_w": params["fc_w"].T,                       # (D, vocab)
        "fc_b": params["fc_b"].reshape(1, -1),          # (1, vocab)
    }
    for pre in ("sa", "ca"):
        packed[f"{pre}_wq"] = stk(head_w, f"{pre}_wq")
        packed[f"{pre}_wk"] = stk(head_w, f"{pre}_wk")
        packed[f"{pre}_wv"] = stk(head_w, f"{pre}_wv")
        packed[f"{pre}_wo"] = stk(out_w, f"{pre}_wo")
        packed[f"{pre}_bq"] = stk(head_b, f"{pre}_bq")
        packed[f"{pre}_bk"] = stk(head_b, f"{pre}_bk")
        packed[f"{pre}_bv"] = stk(head_b, f"{pre}_bv")
        packed[f"{pre}_bo"] = stk(lambda b: b.reshape(1, D), f"{pre}_bo")
    packed["ff_w1"] = stk(lambda w: w.T, "ff_w1")       # (L, D, F)
    packed["ff_b1"] = stk(lambda b: b.reshape(1, -1), "ff_b1")
    packed["ff_w2"] = stk(lambda w: w.T, "ff_w2")       # (L, F, D)
    packed["ff_b2"] = stk(lambda b: b.reshape(1, -1), "ff_b2")
    for n in ("n1", "n2", "n3"):
        packed[f"{n}_g"] = stk(lambda g: g.reshape(1, D), f"{n}_g")
        packed[f"{n}_b"] = stk(lambda b: b.reshape(1, D), f"{n}_b")
    return packed


def key_emotions_forward(packed, tgt, tgt_mask, tgt_pad_mask, *, nhead, num_layers):
    B, S = tgt.shape
    D = packed["embedding"].shape[1]
    V = packed["fc_w"].shape[1]

    # embedding lookup (gather) kept as JAX glue
    emb = jnp.take(packed["embedding"], tgt, axis=0)          # (B, S, D)
    pe = positional_encoding(S, D)                            # (S, D)

    # additive self-attention mask (True => masked). -1e9 instead of -inf avoids NaN rows.
    combined = tgt_mask[None, :, :] | tgt_pad_mask[:, None, :]
    self_mask = jnp.where(combined, jnp.float32(-1e9), jnp.float32(0.0))  # (B, S, S)

    operands = (emb, pe, self_mask, packed["norm_g"], packed["norm_b"],
                packed["sa_wq"], packed["sa_bq"], packed["sa_wk"], packed["sa_bk"],
                packed["sa_wv"], packed["sa_bv"], packed["sa_wo"], packed["sa_bo"],
                packed["ca_wq"], packed["ca_bq"], packed["ca_wk"], packed["ca_bk"],
                packed["ca_wv"], packed["ca_bv"], packed["ca_wo"], packed["ca_bo"],
                packed["ff_w1"], packed["ff_b1"], packed["ff_w2"], packed["ff_b2"],
                packed["n1_g"], packed["n1_b"], packed["n2_g"], packed["n2_b"],
                packed["n3_g"], packed["n3_b"], packed["fc_w"], packed["fc_b"])

    def full_spec(a):
        nd = a.ndim
        return pl.BlockSpec(a.shape, lambda b, _nd=nd: (0,) * _nd)

    in_specs = ([pl.BlockSpec((1, S, D), lambda b: (b, 0, 0)),   # emb: per-batch block
                 full_spec(pe),                                   # pe: shared, broadcast in-kernel
                 pl.BlockSpec((1, S, S), lambda b: (b, 0, 0))]    # self mask: per-batch block
                + [full_spec(a) for a in operands[3:]])           # weights: resident blocks

    out = pl.pallas_call(
        functools.partial(_key_emotions_kernel, nhead=nhead, num_layers=num_layers),
        out_shape=jax.ShapeDtypeStruct((B, S, V), jnp.float32),
        grid=(B,),
        in_specs=in_specs,
        out_specs=pl.BlockSpec((1, S, V), lambda b: (b, 0, 0)),
        compiler_params=pltpu.CompilerParams(dimension_semantics=("parallel",)),
    )(*operands)
    return out


# ---------------------------------- main ------------------------------------ #

if __name__ == "__main__":
    vocab_size, d_model, nhead, num_layers, d_ff = 40, 32, 4, 2, 64
    B, S = 2, 8
    pad_idx = 0

    key = jax.random.PRNGKey(0)
    pkey, dkey = jax.random.split(key)
    params = init_params(pkey, vocab_size, d_model, nhead, num_layers, d_ff)
    packed = pack_params(params, nhead)

    tgt = jax.random.randint(dkey, (B, S), 1, vocab_size, dtype=jnp.int32)
    tgt = tgt.at[1, -2:].set(pad_idx)                       # some padding
    tgt_mask = jnp.triu(jnp.ones((S, S), dtype=bool), k=1)  # subsequent_mask
    tgt_pad_mask = (tgt == pad_idx)                         # create_pad_mask

    fwd = jax.jit(functools.partial(key_emotions_forward,
                                    nhead=nhead, num_layers=num_layers))
    out = jax.block_until_ready(fwd(packed, tgt, tgt_mask, tgt_pad_mask))

    assert out.shape == (B, S, vocab_size), out.shape
    assert bool(jnp.all(jnp.isfinite(out)))
    print("KERNEL_OK")
</pallas_src>

<mosaic_0001>
module attributes {stable_mosaic.version = 11 : i64} {
  func.func @_key_emotions_kernel(%arg0: i32, %arg1: memref<1x8x32xf32, #tpu.memory_space<vmem>>, %arg2: memref<8x32xf32, #tpu.memory_space<vmem>>, %arg3: memref<1x8x8xf32, #tpu.memory_space<vmem>>, %arg4: memref<1x32xf32, #tpu.memory_space<vmem>>, %arg5: memref<1x32xf32, #tpu.memory_space<vmem>>, %arg6: memref<2x4x32x8xf32, #tpu.memory_space<vmem>>, %arg7: memref<2x4x1x8xf32, #tpu.memory_space<vmem>>, %arg8: memref<2x4x32x8xf32, #tpu.memory_space<vmem>>, %arg9: memref<2x4x1x8xf32, #tpu.memory_space<vmem>>, %arg10: memref<2x4x32x8xf32, #tpu.memory_space<vmem>>, %arg11: memref<2x4x1x8xf32, #tpu.memory_space<vmem>>, %arg12: memref<2x4x8x32xf32, #tpu.memory_space<vmem>>, %arg13: memref<2x1x32xf32, #tpu.memory_space<vmem>>, %arg14: memref<2x4x32x8xf32, #tpu.memory_space<vmem>>, %arg15: memref<2x4x1x8xf32, #tpu.memory_space<vmem>>, %arg16: memref<2x4x32x8xf32, #tpu.memory_space<vmem>>, %arg17: memref<2x4x1x8xf32, #tpu.memory_space<vmem>>, %arg18: memref<2x4x32x8xf32, #tpu.memory_space<vmem>>, %arg19: memref<2x4x1x8xf32, #tpu.memory_space<vmem>>, %arg20: memref<2x4x8x32xf32, #tpu.memory_space<vmem>>, %arg21: memref<2x1x32xf32, #tpu.memory_space<vmem>>, %arg22: memref<2x32x64xf32, #tpu.memory_space<vmem>>, %arg23: memref<2x1x64xf32, #tpu.memory_space<vmem>>, %arg24: memref<2x64x32xf32, #tpu.memory_space<vmem>>, %arg25: memref<2x1x32xf32, #tpu.memory_space<vmem>>, %arg26: memref<2x1x32xf32, #tpu.memory_space<vmem>>, %arg27: memref<2x1x32xf32, #tpu.memory_space<vmem>>, %arg28: memref<2x1x32xf32, #tpu.memory_space<vmem>>, %arg29: memref<2x1x32xf32, #tpu.memory_space<vmem>>, %arg30: memref<2x1x32xf32, #tpu.memory_space<vmem>>, %arg31: memref<2x1x32xf32, #tpu.memory_space<vmem>>, %arg32: memref<32x40xf32, #tpu.memory_space<vmem>>, %arg33: memref<1x40xf32, #tpu.memory_space<vmem>>, %arg34: memref<1x8x40xf32, #tpu.memory_space<vmem>>) attributes {dimension_semantics = [#tpu.dimension_semantics<parallel>], iteration_bounds = array<i64: 2>, scalar_prefetch = 0 : i64, scratch_operands = 0 : i64, tpu.core_type = #tpu.core_type<tc>, window_params = [{transform_indices = @transform_0, window_bounds = array<i64: 1, 8, 32>}, {pipeline_mode = #tpu.pipeline_mode<synchronous>, transform_indices = @transform_1, window_bounds = array<i64: 8, 32>}, {transform_indices = @transform_2, window_bounds = array<i64: 1, 8, 8>}, {pipeline_mode = #tpu.pipeline_mode<synchronous>, transform_indices = @transform_3, window_bounds = array<i64: 1, 32>}, {pipeline_mode = #tpu.pipeline_mode<synchronous>, transform_indices = @transform_4, window_bounds = array<i64: 1, 32>}, {pipeline_mode = #tpu.pipeline_mode<synchronous>, transform_indices = @transform_5, window_bounds = array<i64: 2, 4, 32, 8>}, {pipeline_mode = #tpu.pipeline_mode<synchronous>, transform_indices = @transform_6, window_bounds = array<i64: 2, 4, 1, 8>}, {pipeline_mode = #tpu.pipeline_mode<synchronous>, transform_indices = @transform_7, window_bounds = array<i64: 2, 4, 32, 8>}, {pipeline_mode = #tpu.pipeline_mode<synchronous>, transform_indices = @transform_8, window_bounds = array<i64: 2, 4, 1, 8>}, {pipeline_mode = #tpu.pipeline_mode<synchronous>, transform_indices = @transform_9, window_bounds = array<i64: 2, 4, 32, 8>}, {pipeline_mode = #tpu.pipeline_mode<synchronous>, transform_indices = @transform_10, window_bounds = array<i64: 2, 4, 1, 8>}, {pipeline_mode = #tpu.pipeline_mode<synchronous>, transform_indices = @transform_11, window_bounds = array<i64: 2, 4, 8, 32>}, {pipeline_mode = #tpu.pipeline_mode<synchronous>, transform_indices = @transform_12, window_bounds = array<i64: 2, 1, 32>}, {pipeline_mode = #tpu.pipeline_mode<synchronous>, transform_indices = @transform_13, window_bounds = array<i64: 2, 4, 32, 8>}, {pipeline_mode = #tpu.pipeline_mode<synchronous>, transform_indices = @transform_14, window_bounds = array<i64: 2, 4, 1, 8>}, {pipeline_mode = #tpu.pipeline_mode<synchronous>, transform_indices = @transform_15, window_bounds = array<i64: 2, 4, 32, 8>}, {pipeline_mode = #tpu.pipeline_mode<synchronous>, transform_indices = @transform_16, window_bounds = array<i64: 2, 4, 1, 8>}, {pipeline_mode = #tpu.pipeline_mode<synchronous>, transform_indices = @transform_17, window_bounds = array<i64: 2, 4, 32, 8>}, {pipeline_mode = #tpu.pipeline_mode<synchronous>, transform_indices = @transform_18, window_bounds = array<i64: 2, 4, 1, 8>}, {pipeline_mode = #tpu.pipeline_mode<synchronous>, transform_indices = @transform_19, window_bounds = array<i64: 2, 4, 8, 32>}, {pipeline_mode = #tpu.pipeline_mode<synchronous>, transform_indices = @transform_20, window_bounds = array<i64: 2, 1, 32>}, {pipeline_mode = #tpu.pipeline_mode<synchronous>, transform_indices = @transform_21, window_bounds = array<i64: 2, 32, 64>}, {pipeline_mode = #tpu.pipeline_mode<synchronous>, transform_indices = @transform_22, window_bounds = array<i64: 2, 1, 64>}, {pipeline_mode = #tpu.pipeline_mode<synchronous>, transform_indices = @transform_23, window_bounds = array<i64: 2, 64, 32>}, {pipeline_mode = #tpu.pipeline_mode<synchronous>, transform_indices = @transform_24, window_bounds = array<i64: 2, 1, 32>}, {pipeline_mode = #tpu.pipeline_mode<synchronous>, transform_indices = @transform_25, window_bounds = array<i64: 2, 1, 32>}, {pipeline_mode = #tpu.pipeline_mode<synchronous>, transform_indices = @transform_26, window_bounds = array<i64: 2, 1, 32>}, {pipeline_mode = #tpu.pipeline_mode<synchronous>, transform_indices = @transform_27, window_bounds = array<i64: 2, 1, 32>}, {pipeline_mode = #tpu.pipeline_mode<synchronous>, transform_indices = @transform_28, window_bounds = array<i64: 2, 1, 32>}, {pipeline_mode = #tpu.pipeline_mode<synchronous>, transform_indices = @transform_29, window_bounds = array<i64: 2, 1, 32>}, {pipeline_mode = #tpu.pipeline_mode<synchronous>, transform_indices = @transform_30, window_bounds = array<i64: 2, 1, 32>}, {pipeline_mode = #tpu.pipeline_mode<synchronous>, transform_indices = @transform_31, window_bounds = array<i64: 32, 40>}, {pipeline_mode = #tpu.pipeline_mode<synchronous>, transform_indices = @transform_32, window_bounds = array<i64: 1, 40>}, {transform_indices = @transform_33, window_bounds = array<i64: 1, 8, 40>}]} {
    %c0 = arith.constant 0 : index
    %c0_0 = arith.constant 0 : index
    %c0_1 = arith.constant 0 : index
    %0 = vector.load %arg1[%c0, %c0_0, %c0_1] : memref<1x8x32xf32, #tpu.memory_space<vmem>>, vector<1x8x32xf32>
    %1 = vector.shape_cast %0 : vector<1x8x32xf32> to vector<8x32xf32>
    %c0_2 = arith.constant 0 : index
    %c0_3 = arith.constant 0 : index
    %2 = vector.load %arg2[%c0_2, %c0_3] : memref<8x32xf32, #tpu.memory_space<vmem>>, vector<8x32xf32>
    %3 = arith.addf %1, %2 : vector<8x32xf32>
    %c0_4 = arith.constant 0 : index
    %c0_5 = arith.constant 0 : index
    %4 = vector.load %arg4[%c0_4, %c0_5] : memref<1x32xf32, #tpu.memory_space<vmem>>, vector<1x32xf32>
    %c0_6 = arith.constant 0 : index
    %c0_7 = arith.constant 0 : index
    %5 = vector.load %arg5[%c0_6, %c0_7] : memref<1x32xf32, #tpu.memory_space<vmem>>, vector<1x32xf32>
    %cst = arith.constant dense<0.000000e+00> : vector<8xf32>
    %6 = vector.multi_reduction <add>, %3, %cst [1] : vector<8x32xf32> to vector<8xf32>
    %7 = vector.shape_cast %6 : vector<8xf32> to vector<8x1xf32>
    %cst_8 = arith.constant 3.200000e+01 : f32
    %8 = vector.broadcast %cst_8 : f32 to vector<8x1xf32>
    %9 = arith.divf %7, %8 : vector<8x1xf32>
    %10 = vector.broadcast %9 : vector<8x1xf32> to vector<8x32xf32>
    %11 = arith.subf %3, %10 : vector<8x32xf32>
    %12 = arith.mulf %11, %11 : vector<8x32xf32>
    %cst_9 = arith.constant dense<0.000000e+00> : vector<8xf32>
    %13 = vector.multi_reduction <add>, %12, %cst_9 [1] : vector<8x32xf32> to vector<8xf32>
    %14 = vector.shape_cast %13 : vector<8xf32> to vector<8x1xf32>
    %cst_10 = arith.constant 3.200000e+01 : f32
    %15 = vector.broadcast %cst_10 : f32 to vector<8x1xf32>
    %16 = arith.divf %14, %15 : vector<8x1xf32>
    %17 = vector.broadcast %9 : vector<8x1xf32> to vector<8x32xf32>
    %18 = arith.subf %3, %17 : vector<8x32xf32>
    %cst_11 = arith.constant 9.99999974E-6 : f32
    %19 = vector.broadcast %cst_11 : f32 to vector<8x1xf32>
    %20 = arith.addf %16, %19 : vector<8x1xf32>
    %21 = math.rsqrt %20 : vector<8x1xf32>
    %22 = vector.broadcast %21 : vector<8x1xf32> to vector<8x32xf32>
    %23 = arith.mulf %18, %22 : vector<8x32xf32>
    %24 = vector.broadcast %4 : vector<1x32xf32> to vector<8x32xf32>
    %25 = arith.mulf %23, %24 : vector<8x32xf32>
    %26 = vector.broadcast %5 : vector<1x32xf32> to vector<8x32xf32>
    %27 = arith.addf %25, %26 : vector<8x32xf32>
    %28 = vector.shape_cast %27 : vector<8x32xf32> to vector<1x8x32xf32>
    %29 = vector.shape_cast %28 : vector<1x8x32xf32> to vector<1x8x32xf32>
    %30 = vector.broadcast %29 : vector<1x8x32xf32> to vector<4x8x32xf32>
    %c0_12 = arith.constant 0 : index
    %c0_13 = arith.constant 0 : index
    %c0_14 = arith.constant 0 : index
    %31 = vector.load %arg3[%c0_12, %c0_13, %c0_14] : memref<1x8x8xf32, #tpu.memory_space<vmem>>, vector<1x8x8xf32>
    %32 = vector.shape_cast %31 : vector<1x8x8xf32> to vector<8x8xf32>
    %33 = vector.shape_cast %27 : vector<8x32xf32> to vector<1x8x32xf32>
    %34 = vector.shape_cast %33 : vector<1x8x32xf32> to vector<1x8x32xf32>
    %35 = vector.broadcast %34 : vector<1x8x32xf32> to vector<4x8x32xf32>
    %c0_15 = arith.constant 0 : index
    %c0_16 = arith.constant 0 : index
    %c0_17 = arith.constant 0 : index
    %c0_18 = arith.constant 0 : index
    %36 = vector.load %arg6[%c0_15, %c0_16, %c0_17, %c0_18] : memref<2x4x32x8xf32, #tpu.memory_space<vmem>>, vector<1x4x32x8xf32>
    %37 = vector.shape_cast %36 : vector<1x4x32x8xf32> to vector<4x32x8xf32>
    %c0_19 = arith.constant 0 : index
    %c0_20 = arith.constant 0 : index
    %c0_21 = arith.constant 0 : index
    %c0_22 = arith.constant 0 : index
    %38 = vector.load %arg7[%c0_19, %c0_20, %c0_21, %c0_22] : memref<2x4x1x8xf32, #tpu.memory_space<vmem>>, vector<1x4x1x8xf32>
    %39 = vector.shape_cast %38 : vector<1x4x1x8xf32> to vector<4x1x8xf32>
    %c0_23 = arith.constant 0 : index
    %c0_24 = arith.constant 0 : index
    %c0_25 = arith.constant 0 : index
    %c0_26 = arith.constant 0 : index
    %40 = vector.load %arg8[%c0_23, %c0_24, %c0_25, %c0_26] : memref<2x4x32x8xf32, #tpu.memory_space<vmem>>, vector<1x4x32x8xf32>
    %41 = vector.shape_cast %40 : vector<1x4x32x8xf32> to vector<4x32x8xf32>
    %c0_27 = arith.constant 0 : index
    %c0_28 = arith.constant 0 : index
    %c0_29 = arith.constant 0 : index
    %c0_30 = arith.constant 0 : index
    %42 = vector.load %arg9[%c0_27, %c0_28, %c0_29, %c0_30] : memref<2x4x1x8xf32, #tpu.memory_space<vmem>>, vector<1x4x1x8xf32>
    %43 = vector.shape_cast %42 : vector<1x4x1x8xf32> to vector<4x1x8xf32>
    %c0_31 = arith.constant 0 : index
    %c0_32 = arith.constant 0 : index
    %c0_33 = arith.constant 0 : index
    %c0_34 = arith.constant 0 : index
    %44 = vector.load %arg10[%c0_31, %c0_32, %c0_33, %c0_34] : memref<2x4x32x8xf32, #tpu.memory_space<vmem>>, vector<1x4x32x8xf32>
    %45 = vector.shape_cast %44 : vector<1x4x32x8xf32> to vector<4x32x8xf32>
    %c0_35 = arith.constant 0 : index
    %c0_36 = arith.constant 0 : index
    %c0_37 = arith.constant 0 : index
    %c0_38 = arith.constant 0 : index
    %46 = vector.load %arg11[%c0_35, %c0_36, %c0_37, %c0_38] : memref<2x4x1x8xf32, #tpu.memory_space<vmem>>, vector<1x4x1x8xf32>
    %47 = vector.shape_cast %46 : vector<1x4x1x8xf32> to vector<4x1x8xf32>
    %c0_39 = arith.constant 0 : index
    %c0_40 = arith.constant 0 : index
    %c0_41 = arith.constant 0 : index
    %c0_42 = arith.constant 0 : index
    %48 = vector.load %arg12[%c0_39, %c0_40, %c0_41, %c0_42] : memref<2x4x8x32xf32, #tpu.memory_space<vmem>>, vector<1x4x8x32xf32>
    %49 = vector.shape_cast %48 : vector<1x4x8x32xf32> to vector<4x8x32xf32>
    %c0_43 = arith.constant 0 : index
    %c0_44 = arith.constant 0 : index
    %c0_45 = arith.constant 0 : index
    %50 = vector.load %arg13[%c0_43, %c0_44, %c0_45] : memref<2x1x32xf32, #tpu.memory_space<vmem>>, vector<1x1x32xf32>
    %51 = vector.shape_cast %50 : vector<1x1x32xf32> to vector<1x32xf32>
    %cst_46 = arith.constant dense<0.000000e+00> : vector<4x8x8xf32>
    %52 = tpu.matmul %35, %37, %cst_46 {dimension_numbers = #tpu.dot_dimension_numbers<[2], [1], [1], [2], [0, 0, 0, 1, 1, 2], [0], [0]>} : vector<4x8x32xf32>, vector<4x32x8xf32>, vector<4x8x8xf32> -> vector<4x8x8xf32>
    %53 = vector.broadcast %39 : vector<4x1x8xf32> to vector<4x8x8xf32>
    %54 = arith.addf %52, %53 : vector<4x8x8xf32>
    %cst_47 = arith.constant dense<0.000000e+00> : vector<4x8x8xf32>
    %55 = tpu.matmul %35, %41, %cst_47 {dimension_numbers = #tpu.dot_dimension_numbers<[2], [1], [1], [2], [0, 0, 0, 1, 1, 2], [0], [0]>} : vector<4x8x32xf32>, vector<4x32x8xf32>, vector<4x8x8xf32> -> vector<4x8x8xf32>
    %56 = vector.broadcast %43 : vector<4x1x8xf32> to vector<4x8x8xf32>
    %57 = arith.addf %55, %56 : vector<4x8x8xf32>
    %cst_48 = arith.constant dense<0.000000e+00> : vector<4x8x8xf32>
    %58 = tpu.matmul %35, %45, %cst_48 {dimension_numbers = #tpu.dot_dimension_numbers<[2], [1], [1], [2], [0, 0, 0, 1, 1, 2], [0], [0]>} : vector<4x8x32xf32>, vector<4x32x8xf32>, vector<4x8x8xf32> -> vector<4x8x8xf32>
    %59 = vector.broadcast %47 : vector<4x1x8xf32> to vector<4x8x8xf32>
    %60 = arith.addf %58, %59 : vector<4x8x8xf32>
    %cst_49 = arith.constant dense<0.000000e+00> : vector<4x8x8xf32>
    %61 = tpu.matmul %54, %57, %cst_49 {dimension_numbers = #tpu.dot_dimension_numbers<[2], [2], [1], [1], [0, 0, 0, 1, 1, 1], [0], [0]>} : vector<4x8x8xf32>, vector<4x8x8xf32>, vector<4x8x8xf32> -> vector<4x8x8xf32>
    %cst_50 = arith.constant 0.353553385 : f32
    %62 = vector.broadcast %cst_50 : f32 to vector<4x8x8xf32>
    %63 = arith.mulf %61, %62 : vector<4x8x8xf32>
    %64 = vector.shape_cast %32 : vector<8x8xf32> to vector<1x8x8xf32>
    %65 = vector.broadcast %64 : vector<1x8x8xf32> to vector<4x8x8xf32>
    %66 = arith.addf %63, %65 : vector<4x8x8xf32>
    %cst_51 = arith.constant dense<0xFF800000> : vector<4x8xf32>
    %67 = vector.multi_reduction <maximumf>, %66, %cst_51 [2] : vector<4x8x8xf32> to vector<4x8xf32>
    %68 = vector.shape_cast %67 : vector<4x8xf32> to vector<4x8x1xf32>
    %69 = vector.broadcast %68 : vector<4x8x1xf32> to vector<4x8x8xf32>
    %70 = arith.subf %66, %69 : vector<4x8x8xf32>
    %71 = math.exp %70 : vector<4x8x8xf32>
    %cst_52 = arith.constant dense<0.000000e+00> : vector<4x8xf32>
    %72 = vector.multi_reduction <add>, %71, %cst_52 [2] : vector<4x8x8xf32> to vector<4x8xf32>
    %73 = vector.shape_cast %72 : vector<4x8xf32> to vector<4x8x1xf32>
    %74 = vector.broadcast %73 : vector<4x8x1xf32> to vector<4x8x8xf32>
    %75 = arith.divf %71, %74 : vector<4x8x8xf32>
    %cst_53 = arith.constant dense<0.000000e+00> : vector<4x8x8xf32>
    %76 = tpu.matmul %75, %60, %cst_53 {dimension_numbers = #tpu.dot_dimension_numbers<[2], [1], [1], [2], [0, 0, 0, 1, 1, 2], [0], [0]>} : vector<4x8x8xf32>, vector<4x8x8xf32>, vector<4x8x8xf32> -> vector<4x8x8xf32>
    %cst_54 = arith.constant dense<0.000000e+00> : vector<4x8x32xf32>
    %77 = tpu.matmul %76, %49, %cst_54 {dimension_numbers = #tpu.dot_dimension_numbers<[2], [1], [1], [2], [0, 0, 0, 1, 1, 2], [0], [0]>} : vector<4x8x8xf32>, vector<4x8x32xf32>, vector<4x8x32xf32> -> vector<4x8x32xf32>
    %cst_55 = arith.constant dense<0.000000e+00> : vector<8x32xf32>
    %78 = vector.multi_reduction <add>, %77, %cst_55 [0] : vector<4x8x32xf32> to vector<8x32xf32>
    %79 = vector.broadcast %51 : vector<1x32xf32> to vector<8x32xf32>
    %80 = arith.addf %78, %79 : vector<8x32xf32>
    %81 = arith.addf %27, %80 : vector<8x32xf32>
    %c0_56 = arith.constant 0 : index
    %c0_57 = arith.constant 0 : index
    %c0_58 = arith.constant 0 : index
    %82 = vector.load %arg26[%c0_56, %c0_57, %c0_58] : memref<2x1x32xf32, #tpu.memory_space<vmem>>, vector<1x1x32xf32>
    %83 = vector.shape_cast %82 : vector<1x1x32xf32> to vector<1x32xf32>
    %c0_59 = arith.constant 0 : index
    %c0_60 = arith.constant 0 : index
    %c0_61 = arith.constant 0 : index
    %84 = vector.load %arg27[%c0_59, %c0_60, %c0_61] : memref<2x1x32xf32, #tpu.memory_space<vmem>>, vector<1x1x32xf32>
    %85 = vector.shape_cast %84 : vector<1x1x32xf32> to vector<1x32xf32>
    %cst_62 = arith.constant dense<0.000000e+00> : vector<8xf32>
    %86 = vector.multi_reduction <add>, %81, %cst_62 [1] : vector<8x32xf32> to vector<8xf32>
    %87 = vector.shape_cast %86 : vector<8xf32> to vector<8x1xf32>
    %cst_63 = arith.constant 3.200000e+01 : f32
    %88 = vector.broadcast %cst_63 : f32 to vector<8x1xf32>
    %89 = arith.divf %87, %88 : vector<8x1xf32>
    %90 = vector.broadcast %89 : vector<8x1xf32> to vector<8x32xf32>
    %91 = arith.subf %81, %90 : vector<8x32xf32>
    %92 = arith.mulf %91, %91 : vector<8x32xf32>
    %cst_64 = arith.constant dense<0.000000e+00> : vector<8xf32>
    %93 = vector.multi_reduction <add>, %92, %cst_64 [1] : vector<8x32xf32> to vector<8xf32>
    %94 = vector.shape_cast %93 : vector<8xf32> to vector<8x1xf32>
    %cst_65 = arith.constant 3.200000e+01 : f32
    %95 = vector.broadcast %cst_65 : f32 to vector<8x1xf32>
    %96 = arith.divf %94, %95 : vector<8x1xf32>
    %97 = vector.broadcast %89 : vector<8x1xf32> to vector<8x32xf32>
    %98 = arith.subf %81, %97 : vector<8x32xf32>
    %cst_66 = arith.constant 9.99999974E-6 : f32
    %99 = vector.broadcast %cst_66 : f32 to vector<8x1xf32>
    %100 = arith.addf %96, %99 : vector<8x1xf32>
    %101 = math.rsqrt %100 : vector<8x1xf32>
    %102 = vector.broadcast %101 : vector<8x1xf32> to vector<8x32xf32>
    %103 = arith.mulf %98, %102 : vector<8x32xf32>
    %104 = vector.broadcast %83 : vector<1x32xf32> to vector<8x32xf32>
    %105 = arith.mulf %103, %104 : vector<8x32xf32>
    %106 = vector.broadcast %85 : vector<1x32xf32> to vector<8x32xf32>
    %107 = arith.addf %105, %106 : vector<8x32xf32>
    %108 = vector.shape_cast %107 : vector<8x32xf32> to vector<1x8x32xf32>
    %109 = vector.shape_cast %108 : vector<1x8x32xf32> to vector<1x8x32xf32>
    %110 = vector.broadcast %109 : vector<1x8x32xf32> to vector<4x8x32xf32>
    %c0_67 = arith.constant 0 : index
    %c0_68 = arith.constant 0 : index
    %c0_69 = arith.constant 0 : index
    %c0_70 = arith.constant 0 : index
    %111 = vector.load %arg14[%c0_67, %c0_68, %c0_69, %c0_70] : memref<2x4x32x8xf32, #tpu.memory_space<vmem>>, vector<1x4x32x8xf32>
    %112 = vector.shape_cast %111 : vector<1x4x32x8xf32> to vector<4x32x8xf32>
    %c0_71 = arith.constant 0 : index
    %c0_72 = arith.constant 0 : index
    %c0_73 = arith.constant 0 : index
    %c0_74 = arith.constant 0 : index
    %113 = vector.load %arg15[%c0_71, %c0_72, %c0_73, %c0_74] : memref<2x4x1x8xf32, #tpu.memory_space<vmem>>, vector<1x4x1x8xf32>
    %114 = vector.shape_cast %113 : vector<1x4x1x8xf32> to vector<4x1x8xf32>
    %c0_75 = arith.constant 0 : index
    %c0_76 = arith.constant 0 : index
    %c0_77 = arith.constant 0 : index
    %c0_78 = arith.constant 0 : index
    %115 = vector.load %arg16[%c0_75, %c0_76, %c0_77, %c0_78] : memref<2x4x32x8xf32, #tpu.memory_space<vmem>>, vector<1x4x32x8xf32>
    %116 = vector.shape_cast %115 : vector<1x4x32x8xf32> to vector<4x32x8xf32>
    %c0_79 = arith.constant 0 : index
    %c0_80 = arith.constant 0 : index
    %c0_81 = arith.constant 0 : index
    %c0_82 = arith.constant 0 : index
    %117 = vector.load %arg17[%c0_79, %c0_80, %c0_81, %c0_82] : memref<2x4x1x8xf32, #tpu.memory_space<vmem>>, vector<1x4x1x8xf32>
    %118 = vector.shape_cast %117 : vector<1x4x1x8xf32> to vector<4x1x8xf32>
    %c0_83 = arith.constant 0 : index
    %c0_84 = arith.constant 0 : index
    %c0_85 = arith.constant 0 : index
    %c0_86 = arith.constant 0 : index
    %119 = vector.load %arg18[%c0_83, %c0_84, %c0_85, %c0_86] : memref<2x4x32x8xf32, #tpu.memory_space<vmem>>, vector<1x4x32x8xf32>
    %120 = vector.shape_cast %119 : vector<1x4x32x8xf32> to vector<4x32x8xf32>
    %c0_87 = arith.constant 0 : index
    %c0_88 = arith.constant 0 : index
    %c0_89 = arith.constant 0 : index
    %c0_90 = arith.constant 0 : index
    %121 = vector.load %arg19[%c0_87, %c0_88, %c0_89, %c0_90] : memref<2x4x1x8xf32, #tpu.memory_space<vmem>>, vector<1x4x1x8xf32>
    %122 = vector.shape_cast %121 : vector<1x4x1x8xf32> to vector<4x1x8xf32>
    %c0_91 = arith.constant 0 : index
    %c0_92 = arith.constant 0 : index
    %c0_93 = arith.constant 0 : index
    %c0_94 = arith.constant 0 : index
    %123 = vector.load %arg20[%c0_91, %c0_92, %c0_93, %c0_94] : memref<2x4x8x32xf32, #tpu.memory_space<vmem>>, vector<1x4x8x32xf32>
    %124 = vector.shape_cast %123 : vector<1x4x8x32xf32> to vector<4x8x32xf32>
    %c0_95 = arith.constant 0 : index
    %c0_96 = arith.constant 0 : index
    %c0_97 = arith.constant 0 : index
    %125 = vector.load %arg21[%c0_95, %c0_96, %c0_97] : memref<2x1x32xf32, #tpu.memory_space<vmem>>, vector<1x1x32xf32>
    %126 = vector.shape_cast %125 : vector<1x1x32xf32> to vector<1x32xf32>
    %cst_98 = arith.constant dense<0.000000e+00> : vector<4x8x8xf32>
    %127 = tpu.matmul %110, %112, %cst_98 {dimension_numbers = #tpu.dot_dimension_numbers<[2], [1], [1], [2], [0, 0, 0, 1, 1, 2], [0], [0]>} : vector<4x8x32xf32>, vector<4x32x8xf32>, vector<4x8x8xf32> -> vector<4x8x8xf32>
    %128 = vector.broadcast %114 : vector<4x1x8xf32> to vector<4x8x8xf32>
    %129 = arith.addf %127, %128 : vector<4x8x8xf32>
    %cst_99 = arith.constant dense<0.000000e+00> : vector<4x8x8xf32>
    %130 = tpu.matmul %30, %116, %cst_99 {dimension_numbers = #tpu.dot_dimension_numbers<[2], [1], [1], [2], [0, 0, 0, 1, 1, 2], [0], [0]>} : vector<4x8x32xf32>, vector<4x32x8xf32>, vector<4x8x8xf32> -> vector<4x8x8xf32>
    %131 = vector.broadcast %118 : vector<4x1x8xf32> to vector<4x8x8xf32>
    %132 = arith.addf %130, %131 : vector<4x8x8xf32>
    %cst_100 = arith.constant dense<0.000000e+00> : vector<4x8x8xf32>
    %133 = tpu.matmul %30, %120, %cst_100 {dimension_numbers = #tpu.dot_dimension_numbers<[2], [1], [1], [2], [0, 0, 0, 1, 1, 2], [0], [0]>} : vector<4x8x32xf32>, vector<4x32x8xf32>, vector<4x8x8xf32> -> vector<4x8x8xf32>
    %134 = vector.broadcast %122 : vector<4x1x8xf32> to vector<4x8x8xf32>
    %135 = arith.addf %133, %134 : vector<4x8x8xf32>
    %cst_101 = arith.constant dense<0.000000e+00> : vector<4x8x8xf32>
    %136 = tpu.matmul %129, %132, %cst_101 {dimension_numbers = #tpu.dot_dimension_numbers<[2], [2], [1], [1], [0, 0, 0, 1, 1, 1], [0], [0]>} : vector<4x8x8xf32>, vector<4x8x8xf32>, vector<4x8x8xf32> -> vector<4x8x8xf32>
    %cst_102 = arith.constant 0.353553385 : f32
    %137 = vector.broadcast %cst_102 : f32 to vector<4x8x8xf32>
    %138 = arith.mulf %136, %137 : vector<4x8x8xf32>
    %cst_103 = arith.constant dense<0xFF800000> : vector<4x8xf32>
    %139 = vector.multi_reduction <maximumf>, %138, %cst_103 [2] : vector<4x8x8xf32> to vector<4x8xf32>
    %140 = vector.shape_cast %139 : vector<4x8xf32> to vector<4x8x1xf32>
    %141 = vector.broadcast %140 : vector<4x8x1xf32> to vector<4x8x8xf32>
    %142 = arith.subf %138, %141 : vector<4x8x8xf32>
    %143 = math.exp %142 : vector<4x8x8xf32>
    %cst_104 = arith.constant dense<0.000000e+00> : vector<4x8xf32>
    %144 = vector.multi_reduction <add>, %143, %cst_104 [2] : vector<4x8x8xf32> to vector<4x8xf32>
    %145 = vector.shape_cast %144 : vector<4x8xf32> to vector<4x8x1xf32>
    %146 = vector.broadcast %145 : vector<4x8x1xf32> to vector<4x8x8xf32>
    %147 = arith.divf %143, %146 : vector<4x8x8xf32>
    %cst_105 = arith.constant dense<0.000000e+00> : vector<4x8x8xf32>
    %148 = tpu.matmul %147, %135, %cst_105 {dimension_numbers = #tpu.dot_dimension_numbers<[2], [1], [1], [2], [0, 0, 0, 1, 1, 2], [0], [0]>} : vector<4x8x8xf32>, vector<4x8x8xf32>, vector<4x8x8xf32> -> vector<4x8x8xf32>
    %cst_106 = arith.constant dense<0.000000e+00> : vector<4x8x32xf32>
    %149 = tpu.matmul %148, %124, %cst_106 {dimension_numbers = #tpu.dot_dimension_numbers<[2], [1], [1], [2], [0, 0, 0, 1, 1, 2], [0], [0]>} : vector<4x8x8xf32>, vector<4x8x32xf32>, vector<4x8x32xf32> -> vector<4x8x32xf32>
    %cst_107 = arith.constant dense<0.000000e+00> : vector<8x32xf32>
    %150 = vector.multi_reduction <add>, %149, %cst_107 [0] : vector<4x8x32xf32> to vector<8x32xf32>
    %151 = vector.broadcast %126 : vector<1x32xf32> to vector<8x32xf32>
    %152 = arith.addf %150, %151 : vector<8x32xf32>
    %153 = arith.addf %107, %152 : vector<8x32xf32>
    %c0_108 = arith.constant 0 : index
    %c0_109 = arith.constant 0 : index
    %c0_110 = arith.constant 0 : index
    %154 = vector.load %arg28[%c0_108, %c0_109, %c0_110] : memref<2x1x32xf32, #tpu.memory_space<vmem>>, vector<1x1x32xf32>
    %155 = vector.shape_cast %154 : vector<1x1x32xf32> to vector<1x32xf32>
    %c0_111 = arith.constant 0 : index
    %c0_112 = arith.constant 0 : index
    %c0_113 = arith.constant 0 : index
    %156 = vector.load %arg29[%c0_111, %c0_112, %c0_113] : memref<2x1x32xf32, #tpu.memory_space<vmem>>, vector<1x1x32xf32>
    %157 = vector.shape_cast %156 : vector<1x1x32xf32> to vector<1x32xf32>
    %cst_114 = arith.constant dense<0.000000e+00> : vector<8xf32>
    %158 = vector.multi_reduction <add>, %153, %cst_114 [1] : vector<8x32xf32> to vector<8xf32>
    %159 = vector.shape_cast %158 : vector<8xf32> to vector<8x1xf32>
    %cst_115 = arith.constant 3.200000e+01 : f32
    %160 = vector.broadcast %cst_115 : f32 to vector<8x1xf32>
    %161 = arith.divf %159, %160 : vector<8x1xf32>
    %162 = vector.broadcast %161 : vector<8x1xf32> to vector<8x32xf32>
    %163 = arith.subf %153, %162 : vector<8x32xf32>
    %164 = arith.mulf %163, %163 : vector<8x32xf32>
    %cst_116 = arith.constant dense<0.000000e+00> : vector<8xf32>
    %165 = vector.multi_reduction <add>, %164, %cst_116 [1] : vector<8x32xf32> to vector<8xf32>
    %166 = vector.shape_cast %165 : vector<8xf32> to vector<8x1xf32>
    %cst_117 = arith.constant 3.200000e+01 : f32
    %167 = vector.broadcast %cst_117 : f32 to vector<8x1xf32>
    %168 = arith.divf %166, %167 : vector<8x1xf32>
    %169 = vector.broadcast %161 : vector<8x1xf32> to vector<8x32xf32>
    %170 = arith.subf %153, %169 : vector<8x32xf32>
    %cst_118 = arith.constant 9.99999974E-6 : f32
    %171 = vector.broadcast %cst_118 : f32 to vector<8x1xf32>
    %172 = arith.addf %168, %171 : vector<8x1xf32>
    %173 = math.rsqrt %172 : vector<8x1xf32>
    %174 = vector.broadcast %173 : vector<8x1xf32> to vector<8x32xf32>
    %175 = arith.mulf %170, %174 : vector<8x32xf32>
    %176 = vector.broadcast %155 : vector<1x32xf32> to vector<8x32xf32>
    %177 = arith.mulf %175, %176 : vector<8x32xf32>
    %178 = vector.broadcast %157 : vector<1x32xf32> to vector<8x32xf32>
    %179 = arith.addf %177, %178 : vector<8x32xf32>
    %c0_119 = arith.constant 0 : index
    %c0_120 = arith.constant 0 : index
    %c0_121 = arith.constant 0 : index
    %180 = vector.load %arg22[%c0_119, %c0_120, %c0_121] : memref<2x32x64xf32, #tpu.memory_space<vmem>>, vector<1x32x64xf32>
    %181 = vector.shape_cast %180 : vector<1x32x64xf32> to vector<32x64xf32>
    %cst_122 = arith.constant dense<0.000000e+00> : vector<8x64xf32>
    %182 = tpu.matmul %179, %181, %cst_122 {dimension_numbers = #tpu.dot_dimension_numbers<[1], [0], [0], [1], [0, 0, 1, 1], [], []>} : vector<8x32xf32>, vector<32x64xf32>, vector<8x64xf32> -> vector<8x64xf32>
    %c0_123 = arith.constant 0 : index
    %c0_124 = arith.constant 0 : index
    %c0_125 = arith.constant 0 : index
    %183 = vector.load %arg23[%c0_123, %c0_124, %c0_125] : memref<2x1x64xf32, #tpu.memory_space<vmem>>, vector<1x1x64xf32>
    %184 = vector.shape_cast %183 : vector<1x1x64xf32> to vector<1x64xf32>
    %185 = vector.broadcast %184 : vector<1x64xf32> to vector<8x64xf32>
    %186 = arith.addf %182, %185 : vector<8x64xf32>
    %cst_126 = arith.constant 0.000000e+00 : f32
    %187 = vector.broadcast %cst_126 : f32 to vector<8x64xf32>
    %188 = arith.maximumf %186, %187 : vector<8x64xf32>
    %c0_127 = arith.constant 0 : index
    %c0_128 = arith.constant 0 : index
    %c0_129 = arith.constant 0 : index
    %189 = vector.load %arg24[%c0_127, %c0_128, %c0_129] : memref<2x64x32xf32, #tpu.memory_space<vmem>>, vector<1x64x32xf32>
    %190 = vector.shape_cast %189 : vector<1x64x32xf32> to vector<64x32xf32>
    %cst_130 = arith.constant dense<0.000000e+00> : vector<8x32xf32>
    %191 = tpu.matmul %188, %190, %cst_130 {dimension_numbers = #tpu.dot_dimension_numbers<[1], [0], [0], [1], [0, 0, 1, 1], [], []>} : vector<8x64xf32>, vector<64x32xf32>, vector<8x32xf32> -> vector<8x32xf32>
    %c0_131 = arith.constant 0 : index
    %c0_132 = arith.constant 0 : index
    %c0_133 = arith.constant 0 : index
    %192 = vector.load %arg25[%c0_131, %c0_132, %c0_133] : memref<2x1x32xf32, #tpu.memory_space<vmem>>, vector<1x1x32xf32>
    %193 = vector.shape_cast %192 : vector<1x1x32xf32> to vector<1x32xf32>
    %194 = vector.broadcast %193 : vector<1x32xf32> to vector<8x32xf32>
    %195 = arith.addf %191, %194 : vector<8x32xf32>
    %196 = arith.addf %179, %195 : vector<8x32xf32>
    %c0_134 = arith.constant 0 : index
    %c0_135 = arith.constant 0 : index
    %c0_136 = arith.constant 0 : index
    %197 = vector.load %arg30[%c0_134, %c0_135, %c0_136] : memref<2x1x32xf32, #tpu.memory_space<vmem>>, vector<1x1x32xf32>
    %198 = vector.shape_cast %197 : vector<1x1x32xf32> to vector<1x32xf32>
    %c0_137 = arith.constant 0 : index
    %c0_138 = arith.constant 0 : index
    %c0_139 = arith.constant 0 : index
    %199 = vector.load %arg31[%c0_137, %c0_138, %c0_139] : memref<2x1x32xf32, #tpu.memory_space<vmem>>, vector<1x1x32xf32>
    %200 = vector.shape_cast %199 : vector<1x1x32xf32> to vector<1x32xf32>
    %cst_140 = arith.constant dense<0.000000e+00> : vector<8xf32>
    %201 = vector.multi_reduction <add>, %196, %cst_140 [1] : vector<8x32xf32> to vector<8xf32>
    %202 = vector.shape_cast %201 : vector<8xf32> to vector<8x1xf32>
    %cst_141 = arith.constant 3.200000e+01 : f32
    %203 = vector.broadcast %cst_141 : f32 to vector<8x1xf32>
    %204 = arith.divf %202, %203 : vector<8x1xf32>
    %205 = vector.broadcast %204 : vector<8x1xf32> to vector<8x32xf32>
    %206 = arith.subf %196, %205 : vector<8x32xf32>
    %207 = arith.mulf %206, %206 : vector<8x32xf32>
    %cst_142 = arith.constant dense<0.000000e+00> : vector<8xf32>
    %208 = vector.multi_reduction <add>, %207, %cst_142 [1] : vector<8x32xf32> to vector<8xf32>
    %209 = vector.shape_cast %208 : vector<8xf32> to vector<8x1xf32>
    %cst_143 = arith.constant 3.200000e+01 : f32
    %210 = vector.broadcast %cst_143 : f32 to vector<8x1xf32>
    %211 = arith.divf %209, %210 : vector<8x1xf32>
    %212 = vector.broadcast %204 : vector<8x1xf32> to vector<8x32xf32>
    %213 = arith.subf %196, %212 : vector<8x32xf32>
    %cst_144 = arith.constant 9.99999974E-6 : f32
    %214 = vector.broadcast %cst_144 : f32 to vector<8x1xf32>
    %215 = arith.addf %211, %214 : vector<8x1xf32>
    %216 = math.rsqrt %215 : vector<8x1xf32>
    %217 = vector.broadcast %216 : vector<8x1xf32> to vector<8x32xf32>
    %218 = arith.mulf %213, %217 : vector<8x32xf32>
    %219 = vector.broadcast %198 : vector<1x32xf32> to vector<8x32xf32>
    %220 = arith.mulf %218, %219 : vector<8x32xf32>
    %221 = vector.broadcast %200 : vector<1x32xf32> to vector<8x32xf32>
    %222 = arith.addf %220, %221 : vector<8x32xf32>
    %223 = vector.shape_cast %222 : vector<8x32xf32> to vector<1x8x32xf32>
    %224 = vector.shape_cast %223 : vector<1x8x32xf32> to vector<1x8x32xf32>
    %225 = vector.broadcast %224 : vector<1x8x32xf32> to vector<4x8x32xf32>
    %c1 = arith.constant 1 : index
    %c0_145 = arith.constant 0 : index
    %c0_146 = arith.constant 0 : index
    %c0_147 = arith.constant 0 : index
    %226 = vector.load %arg6[%c1, %c0_145, %c0_146, %c0_147] : memref<2x4x32x8xf32, #tpu.memory_space<vmem>>, vector<1x4x32x8xf32>
    %227 = vector.shape_cast %226 : vector<1x4x32x8xf32> to vector<4x32x8xf32>
    %c1_148 = arith.constant 1 : index
    %c0_149 = arith.constant 0 : index
    %c0_150 = arith.constant 0 : index
    %c0_151 = arith.constant 0 : index
    %228 = vector.load %arg7[%c1_148, %c0_149, %c0_150, %c0_151] : memref<2x4x1x8xf32, #tpu.memory_space<vmem>>, vector<1x4x1x8xf32>
    %229 = vector.shape_cast %228 : vector<1x4x1x8xf32> to vector<4x1x8xf32>
    %c1_152 = arith.constant 1 : index
    %c0_153 = arith.constant 0 : index
    %c0_154 = arith.constant 0 : index
    %c0_155 = arith.constant 0 : index
    %230 = vector.load %arg8[%c1_152, %c0_153, %c0_154, %c0_155] : memref<2x4x32x8xf32, #tpu.memory_space<vmem>>, vector<1x4x32x8xf32>
    %231 = vector.shape_cast %230 : vector<1x4x32x8xf32> to vector<4x32x8xf32>
    %c1_156 = arith.constant 1 : index
    %c0_157 = arith.constant 0 : index
    %c0_158 = arith.constant 0 : index
    %c0_159 = arith.constant 0 : index
    %232 = vector.load %arg9[%c1_156, %c0_157, %c0_158, %c0_159] : memref<2x4x1x8xf32, #tpu.memory_space<vmem>>, vector<1x4x1x8xf32>
    %233 = vector.shape_cast %232 : vector<1x4x1x8xf32> to vector<4x1x8xf32>
    %c1_160 = arith.constant 1 : index
    %c0_161 = arith.constant 0 : index
    %c0_162 = arith.constant 0 : index
    %c0_163 = arith.constant 0 : index
    %234 = vector.load %arg10[%c1_160, %c0_161, %c0_162, %c0_163] : memref<2x4x32x8xf32, #tpu.memory_space<vmem>>, vector<1x4x32x8xf32>
    %235 = vector.shape_cast %234 : vector<1x4x32x8xf32> to vector<4x32x8xf32>
    %c1_164 = arith.constant 1 : index
    %c0_165 = arith.constant 0 : index
    %c0_166 = arith.constant 0 : index
    %c0_167 = arith.constant 0 : index
    %236 = vector.load %arg11[%c1_164, %c0_165, %c0_166, %c0_167] : memref<2x4x1x8xf32, #tpu.memory_space<vmem>>, vector<1x4x1x8xf32>
    %237 = vector.shape_cast %236 : vector<1x4x1x8xf32> to vector<4x1x8xf32>
    %c1_168 = arith.constant 1 : index
    %c0_169 = arith.constant 0 : index
    %c0_170 = arith.constant 0 : index
    %c0_171 = arith.constant 0 : index
    %238 = vector.load %arg12[%c1_168, %c0_169, %c0_170, %c0_171] : memref<2x4x8x32xf32, #tpu.memory_space<vmem>>, vector<1x4x8x32xf32>
    %239 = vector.shape_cast %238 : vector<1x4x8x32xf32> to vector<4x8x32xf32>
    %c1_172 = arith.constant 1 : index
    %c0_173 = arith.constant 0 : index
    %c0_174 = arith.constant 0 : index
    %240 = vector.load %arg13[%c1_172, %c0_173, %c0_174] : memref<2x1x32xf32, #tpu.memory_space<vmem>>, vector<1x1x32xf32>
    %241 = vector.shape_cast %240 : vector<1x1x32xf32> to vector<1x32xf32>
    %cst_175 = arith.constant dense<0.000000e+00> : vector<4x8x8xf32>
    %242 = tpu.matmul %225, %227, %cst_175 {dimension_numbers = #tpu.dot_dimension_numbers<[2], [1], [1], [2], [0, 0, 0, 1, 1, 2], [0], [0]>} : vector<4x8x32xf32>, vector<4x32x8xf32>, vector<4x8x8xf32> -> vector<4x8x8xf32>
    %243 = vector.broadcast %229 : vector<4x1x8xf32> to vector<4x8x8xf32>
    %244 = arith.addf %242, %243 : vector<4x8x8xf32>
    %cst_176 = arith.constant dense<0.000000e+00> : vector<4x8x8xf32>
    %245 = tpu.matmul %225, %231, %cst_176 {dimension_numbers = #tpu.dot_dimension_numbers<[2], [1], [1], [2], [0, 0, 0, 1, 1, 2], [0], [0]>} : vector<4x8x32xf32>, vector<4x32x8xf32>, vector<4x8x8xf32> -> vector<4x8x8xf32>
    %246 = vector.broadcast %233 : vector<4x1x8xf32> to vector<4x8x8xf32>
    %247 = arith.addf %245, %246 : vector<4x8x8xf32>
    %cst_177 = arith.constant dense<0.000000e+00> : vector<4x8x8xf32>
    %248 = tpu.matmul %225, %235, %cst_177 {dimension_numbers = #tpu.dot_dimension_numbers<[2], [1], [1], [2], [0, 0, 0, 1, 1, 2], [0], [0]>} : vector<4x8x32xf32>, vector<4x32x8xf32>, vector<4x8x8xf32> -> vector<4x8x8xf32>
    %249 = vector.broadcast %237 : vector<4x1x8xf32> to vector<4x8x8xf32>
    %250 = arith.addf %248, %249 : vector<4x8x8xf32>
    %cst_178 = arith.constant dense<0.000000e+00> : vector<4x8x8xf32>
    %251 = tpu.matmul %244, %247, %cst_178 {dimension_numbers = #tpu.dot_dimension_numbers<[2], [2], [1], [1], [0, 0, 0, 1, 1, 1], [0], [0]>} : vector<4x8x8xf32>, vector<4x8x8xf32>, vector<4x8x8xf32> -> vector<4x8x8xf32>
    %cst_179 = arith.constant 0.353553385 : f32
    %252 = vector.broadcast %cst_179 : f32 to vector<4x8x8xf32>
    %253 = arith.mulf %251, %252 : vector<4x8x8xf32>
    %254 = vector.shape_cast %32 : vector<8x8xf32> to vector<1x8x8xf32>
    %255 = vector.broadcast %254 : vector<1x8x8xf32> to vector<4x8x8xf32>
    %256 = arith.addf %253, %255 : vector<4x8x8xf32>
    %cst_180 = arith.constant dense<0xFF800000> : vector<4x8xf32>
    %257 = vector.multi_reduction <maximumf>, %256, %cst_180 [2] : vector<4x8x8xf32> to vector<4x8xf32>
    %258 = vector.shape_cast %257 : vector<4x8xf32> to vector<4x8x1xf32>
    %259 = vector.broadcast %258 : vector<4x8x1xf32> to vector<4x8x8xf32>
    %260 = arith.subf %256, %259 : vector<4x8x8xf32>
    %261 = math.exp %260 : vector<4x8x8xf32>
    %cst_181 = arith.constant dense<0.000000e+00> : vector<4x8xf32>
    %262 = vector.multi_reduction <add>, %261, %cst_181 [2] : vector<4x8x8xf32> to vector<4x8xf32>
    %263 = vector.shape_cast %262 : vector<4x8xf32> to vector<4x8x1xf32>
    %264 = vector.broadcast %263 : vector<4x8x1xf32> to vector<4x8x8xf32>
    %265 = arith.divf %261, %264 : vector<4x8x8xf32>
    %cst_182 = arith.constant dense<0.000000e+00> : vector<4x8x8xf32>
    %266 = tpu.matmul %265, %250, %cst_182 {dimension_numbers = #tpu.dot_dimension_numbers<[2], [1], [1], [2], [0, 0, 0, 1, 1, 2], [0], [0]>} : vector<4x8x8xf32>, vector<4x8x8xf32>, vector<4x8x8xf32> -> vector<4x8x8xf32>
    %cst_183 = arith.constant dense<0.000000e+00> : vector<4x8x32xf32>
    %267 = tpu.matmul %266, %239, %cst_183 {dimension_numbers = #tpu.dot_dimension_numbers<[2], [1], [1], [2], [0, 0, 0, 1, 1, 2], [0], [0]>} : vector<4x8x8xf32>, vector<4x8x32xf32>, vector<4x8x32xf32> -> vector<4x8x32xf32>
    %cst_184 = arith.constant dense<0.000000e+00> : vector<8x32xf32>
    %268 = vector.multi_reduction <add>, %267, %cst_184 [0] : vector<4x8x32xf32> to vector<8x32xf32>
    %269 = vector.broadcast %241 : vector<1x32xf32> to vector<8x32xf32>
    %270 = arith.addf %268, %269 : vector<8x32xf32>
    %271 = arith.addf %222, %270 : vector<8x32xf32>
    %c1_185 = arith.constant 1 : index
    %c0_186 = arith.constant 0 : index
    %c0_187 = arith.constant 0 : index
    %272 = vector.load %arg26[%c1_185, %c0_186, %c0_187] : memref<2x1x32xf32, #tpu.memory_space<vmem>>, vector<1x1x32xf32>
    %273 = vector.shape_cast %272 : vector<1x1x32xf32> to vector<1x32xf32>
    %c1_188 = arith.constant 1 : index
    %c0_189 = arith.constant 0 : index
    %c0_190 = arith.constant 0 : index
    %274 = vector.load %arg27[%c1_188, %c0_189, %c0_190] : memref<2x1x32xf32, #tpu.memory_space<vmem>>, vector<1x1x32xf32>
    %275 = vector.shape_cast %274 : vector<1x1x32xf32> to vector<1x32xf32>
    %cst_191 = arith.constant dense<0.000000e+00> : vector<8xf32>
    %276 = vector.multi_reduction <add>, %271, %cst_191 [1] : vector<8x32xf32> to vector<8xf32>
    %277 = vector.shape_cast %276 : vector<8xf32> to vector<8x1xf32>
    %cst_192 = arith.constant 3.200000e+01 : f32
    %278 = vector.broadcast %cst_192 : f32 to vector<8x1xf32>
    %279 = arith.divf %277, %278 : vector<8x1xf32>
    %280 = vector.broadcast %279 : vector<8x1xf32> to vector<8x32xf32>
    %281 = arith.subf %271, %280 : vector<8x32xf32>
    %282 = arith.mulf %281, %281 : vector<8x32xf32>
    %cst_193 = arith.constant dense<0.000000e+00> : vector<8xf32>
    %283 = vector.multi_reduction <add>, %282, %cst_193 [1] : vector<8x32xf32> to vector<8xf32>
    %284 = vector.shape_cast %283 : vector<8xf32> to vector<8x1xf32>
    %cst_194 = arith.constant 3.200000e+01 : f32
    %285 = vector.broadcast %cst_194 : f32 to vector<8x1xf32>
    %286 = arith.divf %284, %285 : vector<8x1xf32>
    %287 = vector.broadcast %279 : vector<8x1xf32> to vector<8x32xf32>
    %288 = arith.subf %271, %287 : vector<8x32xf32>
    %cst_195 = arith.constant 9.99999974E-6 : f32
    %289 = vector.broadcast %cst_195 : f32 to vector<8x1xf32>
    %290 = arith.addf %286, %289 : vector<8x1xf32>
    %291 = math.rsqrt %290 : vector<8x1xf32>
    %292 = vector.broadcast %291 : vector<8x1xf32> to vector<8x32xf32>
    %293 = arith.mulf %288, %292 : vector<8x32xf32>
    %294 = vector.broadcast %273 : vector<1x32xf32> to vector<8x32xf32>
    %295 = arith.mulf %293, %294 : vector<8x32xf32>
    %296 = vector.broadcast %275 : vector<1x32xf32> to vector<8x32xf32>
    %297 = arith.addf %295, %296 : vector<8x32xf32>
    %298 = vector.shape_cast %297 : vector<8x32xf32> to vector<1x8x32xf32>
    %299 = vector.shape_cast %298 : vector<1x8x32xf32> to vector<1x8x32xf32>
    %300 = vector.broadcast %299 : vector<1x8x32xf32> to vector<4x8x32xf32>
    %c1_196 = arith.constant 1 : index
    %c0_197 = arith.constant 0 : index
    %c0_198 = arith.constant 0 : index
    %c0_199 = arith.constant 0 : index
    %301 = vector.load %arg14[%c1_196, %c0_197, %c0_198, %c0_199] : memref<2x4x32x8xf32, #tpu.memory_space<vmem>>, vector<1x4x32x8xf32>
    %302 = vector.shape_cast %301 : vector<1x4x32x8xf32> to vector<4x32x8xf32>
    %c1_200 = arith.constant 1 : index
    %c0_201 = arith.constant 0 : index
    %c0_202 = arith.constant 0 : index
    %c0_203 = arith.constant 0 : index
    %303 = vector.load %arg15[%c1_200, %c0_201, %c0_202, %c0_203] : memref<2x4x1x8xf32, #tpu.memory_space<vmem>>, vector<1x4x1x8xf32>
    %304 = vector.shape_cast %303 : vector<1x4x1x8xf32> to vector<4x1x8xf32>
    %c1_204 = arith.constant 1 : index
    %c0_205 = arith.constant 0 : index
    %c0_206 = arith.constant 0 : index
    %c0_207 = arith.constant 0 : index
    %305 = vector.load %arg16[%c1_204, %c0_205, %c0_206, %c0_207] : memref<2x4x32x8xf32, #tpu.memory_space<vmem>>, vector<1x4x32x8xf32>
    %306 = vector.shape_cast %305 : vector<1x4x32x8xf32> to vector<4x32x8xf32>
    %c1_208 = arith.constant 1 : index
    %c0_209 = arith.constant 0 : index
    %c0_210 = arith.constant 0 : index
    %c0_211 = arith.constant 0 : index
    %307 = vector.load %arg17[%c1_208, %c0_209, %c0_210, %c0_211] : memref<2x4x1x8xf32, #tpu.memory_space<vmem>>, vector<1x4x1x8xf32>
    %308 = vector.shape_cast %307 : vector<1x4x1x8xf32> to vector<4x1x8xf32>
    %c1_212 = arith.constant 1 : index
    %c0_213 = arith.constant 0 : index
    %c0_214 = arith.constant 0 : index
    %c0_215 = arith.constant 0 : index
    %309 = vector.load %arg18[%c1_212, %c0_213, %c0_214, %c0_215] : memref<2x4x32x8xf32, #tpu.memory_space<vmem>>, vector<1x4x32x8xf32>
    %310 = vector.shape_cast %309 : vector<1x4x32x8xf32> to vector<4x32x8xf32>
    %c1_216 = arith.constant 1 : index
    %c0_217 = arith.constant 0 : index
    %c0_218 = arith.constant 0 : index
    %c0_219 = arith.constant 0 : index
    %311 = vector.load %arg19[%c1_216, %c0_217, %c0_218, %c0_219] : memref<2x4x1x8xf32, #tpu.memory_space<vmem>>, vector<1x4x1x8xf32>
    %312 = vector.shape_cast %311 : vector<1x4x1x8xf32> to vector<4x1x8xf32>
    %c1_220 = arith.constant 1 : index
    %c0_221 = arith.constant 0 : index
    %c0_222 = arith.constant 0 : index
    %c0_223 = arith.constant 0 : index
    %313 = vector.load %arg20[%c1_220, %c0_221, %c0_222, %c0_223] : memref<2x4x8x32xf32, #tpu.memory_space<vmem>>, vector<1x4x8x32xf32>
    %314 = vector.shape_cast %313 : vector<1x4x8x32xf32> to vector<4x8x32xf32>
    %c1_224 = arith.constant 1 : index
    %c0_225 = arith.constant 0 : index
    %c0_226 = arith.constant 0 : index
    %315 = vector.load %arg21[%c1_224, %c0_225, %c0_226] : memref<2x1x32xf32, #tpu.memory_space<vmem>>, vector<1x1x32xf32>
    %316 = vector.shape_cast %315 : vector<1x1x32xf32> to vector<1x32xf32>
    %cst_227 = arith.constant dense<0.000000e+00> : vector<4x8x8xf32>
    %317 = tpu.matmul %300, %302, %cst_227 {dimension_numbers = #tpu.dot_dimension_numbers<[2], [1], [1], [2], [0, 0, 0, 1, 1, 2], [0], [0]>} : vector<4x8x32xf32>, vector<4x32x8xf32>, vector<4x8x8xf32> -> vector<4x8x8xf32>
    %318 = vector.broadcast %304 : vector<4x1x8xf32> to vector<4x8x8xf32>
    %319 = arith.addf %317, %318 : vector<4x8x8xf32>
    %cst_228 = arith.constant dense<0.000000e+00> : vector<4x8x8xf32>
    %320 = tpu.matmul %30, %306, %cst_228 {dimension_numbers = #tpu.dot_dimension_numbers<[2], [1], [1], [2], [0, 0, 0, 1, 1, 2], [0], [0]>} : vector<4x8x32xf32>, vector<4x32x8xf32>, vector<4x8x8xf32> -> vector<4x8x8xf32>
    %321 = vector.broadcast %308 : vector<4x1x8xf32> to vector<4x8x8xf32>
    %322 = arith.addf %320, %321 : vector<4x8x8xf32>
    %cst_229 = arith.constant dense<0.000000e+00> : vector<4x8x8xf32>
    %323 = tpu.matmul %30, %310, %cst_229 {dimension_numbers = #tpu.dot_dimension_numbers<[2], [1], [1], [2], [0, 0, 0, 1, 1, 2], [0], [0]>} : vector<4x8x32xf32>, vector<4x32x8xf32>, vector<4x8x8xf32> -> vector<4x8x8xf32>
    %324 = vector.broadcast %312 : vector<4x1x8xf32> to vector<4x8x8xf32>
    %325 = arith.addf %323, %324 : vector<4x8x8xf32>
    %cst_230 = arith.constant dense<0.000000e+00> : vector<4x8x8xf32>
    %326 = tpu.matmul %319, %322, %cst_230 {dimension_numbers = #tpu.dot_dimension_numbers<[2], [2], [1], [1], [0, 0, 0, 1, 1, 1], [0], [0]>} : vector<4x8x8xf32>, vector<4x8x8xf32>, vector<4x8x8xf32> -> vector<4x8x8xf32>
    %cst_231 = arith.constant 0.353553385 : f32
    %327 = vector.broadcast %cst_231 : f32 to vector<4x8x8xf32>
    %328 = arith.mulf %326, %327 : vector<4x8x8xf32>
    %cst_232 = arith.constant dense<0xFF800000> : vector<4x8xf32>
    %329 = vector.multi_reduction <maximumf>, %328, %cst_232 [2] : vector<4x8x8xf32> to vector<4x8xf32>
    %330 = vector.shape_cast %329 : vector<4x8xf32> to vector<4x8x1xf32>
    %331 = vector.broadcast %330 : vector<4x8x1xf32> to vector<4x8x8xf32>
    %332 = arith.subf %328, %331 : vector<4x8x8xf32>
    %333 = math.exp %332 : vector<4x8x8xf32>
    %cst_233 = arith.constant dense<0.000000e+00> : vector<4x8xf32>
    %334 = vector.multi_reduction <add>, %333, %cst_233 [2] : vector<4x8x8xf32> to vector<4x8xf32>
    %335 = vector.shape_cast %334 : vector<4x8xf32> to vector<4x8x1xf32>
    %336 = vector.broadcast %335 : vector<4x8x1xf32> to vector<4x8x8xf32>
    %337 = arith.divf %333, %336 : vector<4x8x8xf32>
    %cst_234 = arith.constant dense<0.000000e+00> : vector<4x8x8xf32>
    %338 = tpu.matmul %337, %325, %cst_234 {dimension_numbers = #tpu.dot_dimension_numbers<[2], [1], [1], [2], [0, 0, 0, 1, 1, 2], [0], [0]>} : vector<4x8x8xf32>, vector<4x8x8xf32>, vector<4x8x8xf32> -> vector<4x8x8xf32>
    %cst_235 = arith.constant dense<0.000000e+00> : vector<4x8x32xf32>
    %339 = tpu.matmul %338, %314, %cst_235 {dimension_numbers = #tpu.dot_dimension_numbers<[2], [1], [1], [2], [0, 0, 0, 1, 1, 2], [0], [0]>} : vector<4x8x8xf32>, vector<4x8x32xf32>, vector<4x8x32xf32> -> vector<4x8x32xf32>
    %cst_236 = arith.constant dense<0.000000e+00> : vector<8x32xf32>
    %340 = vector.multi_reduction <add>, %339, %cst_236 [0] : vector<4x8x32xf32> to vector<8x32xf32>
    %341 = vector.broadcast %316 : vector<1x32xf32> to vector<8x32xf32>
    %342 = arith.addf %340, %341 : vector<8x32xf32>
    %343 = arith.addf %297, %342 : vector<8x32xf32>
    %c1_237 = arith.constant 1 : index
    %c0_238 = arith.constant 0 : index
    %c0_239 = arith.constant 0 : index
    %344 = vector.load %arg28[%c1_237, %c0_238, %c0_239] : memref<2x1x32xf32, #tpu.memory_space<vmem>>, vector<1x1x32xf32>
    %345 = vector.shape_cast %344 : vector<1x1x32xf32> to vector<1x32xf32>
    %c1_240 = arith.constant 1 : index
    %c0_241 = arith.constant 0 : index
    %c0_242 = arith.constant 0 : index
    %346 = vector.load %arg29[%c1_240, %c0_241, %c0_242] : memref<2x1x32xf32, #tpu.memory_space<vmem>>, vector<1x1x32xf32>
    %347 = vector.shape_cast %346 : vector<1x1x32xf32> to vector<1x32xf32>
    %cst_243 = arith.constant dense<0.000000e+00> : vector<8xf32>
    %348 = vector.multi_reduction <add>, %343, %cst_243 [1] : vector<8x32xf32> to vector<8xf32>
    %349 = vector.shape_cast %348 : vector<8xf32> to vector<8x1xf32>
    %cst_244 = arith.constant 3.200000e+01 : f32
    %350 = vector.broadcast %cst_244 : f32 to vector<8x1xf32>
    %351 = arith.divf %349, %350 : vector<8x1xf32>
    %352 = vector.broadcast %351 : vector<8x1xf32> to vector<8x32xf32>
    %353 = arith.subf %343, %352 : vector<8x32xf32>
    %354 = arith.mulf %353, %353 : vector<8x32xf32>
    %cst_245 = arith.constant dense<0.000000e+00> : vector<8xf32>
    %355 = vector.multi_reduction <add>, %354, %cst_245 [1] : vector<8x32xf32> to vector<8xf32>
    %356 = vector.shape_cast %355 : vector<8xf32> to vector<8x1xf32>
    %cst_246 = arith.constant 3.200000e+01 : f32
    %357 = vector.broadcast %cst_246 : f32 to vector<8x1xf32>
    %358 = arith.divf %356, %357 : vector<8x1xf32>
    %359 = vector.broadcast %351 : vector<8x1xf32> to vector<8x32xf32>
    %360 = arith.subf %343, %359 : vector<8x32xf32>
    %cst_247 = arith.constant 9.99999974E-6 : f32
    %361 = vector.broadcast %cst_247 : f32 to vector<8x1xf32>
    %362 = arith.addf %358, %361 : vector<8x1xf32>
    %363 = math.rsqrt %362 : vector<8x1xf32>
    %364 = vector.broadcast %363 : vector<8x1xf32> to vector<8x32xf32>
    %365 = arith.mulf %360, %364 : vector<8x32xf32>
    %366 = vector.broadcast %345 : vector<1x32xf32> to vector<8x32xf32>
    %367 = arith.mulf %365, %366 : vector<8x32xf32>
    %368 = vector.broadcast %347 : vector<1x32xf32> to vector<8x32xf32>
    %369 = arith.addf %367, %368 : vector<8x32xf32>
    %c1_248 = arith.constant 1 : index
    %c0_249 = arith.constant 0 : index
    %c0_250 = arith.constant 0 : index
    %370 = vector.load %arg22[%c1_248, %c0_249, %c0_250] : memref<2x32x64xf32, #tpu.memory_space<vmem>>, vector<1x32x64xf32>
    %371 = vector.shape_cast %370 : vector<1x32x64xf32> to vector<32x64xf32>
    %cst_251 = arith.constant dense<0.000000e+00> : vector<8x64xf32>
    %372 = tpu.matmul %369, %371, %cst_251 {dimension_numbers = #tpu.dot_dimension_numbers<[1], [0], [0], [1], [0, 0, 1, 1], [], []>} : vector<8x32xf32>, vector<32x64xf32>, vector<8x64xf32> -> vector<8x64xf32>
    %c1_252 = arith.constant 1 : index
    %c0_253 = arith.constant 0 : index
    %c0_254 = arith.constant 0 : index
    %373 = vector.load %arg23[%c1_252, %c0_253, %c0_254] : memref<2x1x64xf32, #tpu.memory_space<vmem>>, vector<1x1x64xf32>
    %374 = vector.shape_cast %373 : vector<1x1x64xf32> to vector<1x64xf32>
    %375 = vector.broadcast %374 : vector<1x64xf32> to vector<8x64xf32>
    %376 = arith.addf %372, %375 : vector<8x64xf32>
    %cst_255 = arith.constant 0.000000e+00 : f32
    %377 = vector.broadcast %cst_255 : f32 to vector<8x64xf32>
    %378 = arith.maximumf %376, %377 : vector<8x64xf32>
    %c1_256 = arith.constant 1 : index
    %c0_257 = arith.constant 0 : index
    %c0_258 = arith.constant 0 : index
    %379 = vector.load %arg24[%c1_256, %c0_257, %c0_258] : memref<2x64x32xf32, #tpu.memory_space<vmem>>, vector<1x64x32xf32>
    %380 = vector.shape_cast %379 : vector<1x64x32xf32> to vector<64x32xf32>
    %cst_259 = arith.constant dense<0.000000e+00> : vector<8x32xf32>
    %381 = tpu.matmul %378, %380, %cst_259 {dimension_numbers = #tpu.dot_dimension_numbers<[1], [0], [0], [1], [0, 0, 1, 1], [], []>} : vector<8x64xf32>, vector<64x32xf32>, vector<8x32xf32> -> vector<8x32xf32>
    %c1_260 = arith.constant 1 : index
    %c0_261 = arith.constant 0 : index
    %c0_262 = arith.constant 0 : index
    %382 = vector.load %arg25[%c1_260, %c0_261, %c0_262] : memref<2x1x32xf32, #tpu.memory_space<vmem>>, vector<1x1x32xf32>
    %383 = vector.shape_cast %382 : vector<1x1x32xf32> to vector<1x32xf32>
    %384 = vector.broadcast %383 : vector<1x32xf32> to vector<8x32xf32>
    %385 = arith.addf %381, %384 : vector<8x32xf32>
    %386 = arith.addf %369, %385 : vector<8x32xf32>
    %c1_263 = arith.constant 1 : index
    %c0_264 = arith.constant 0 : index
    %c0_265 = arith.constant 0 : index
    %387 = vector.load %arg30[%c1_263, %c0_264, %c0_265] : memref<2x1x32xf32, #tpu.memory_space<vmem>>, vector<1x1x32xf32>
    %388 = vector.shape_cast %387 : vector<1x1x32xf32> to vector<1x32xf32>
    %c1_266 = arith.constant 1 : index
    %c0_267 = arith.constant 0 : index
    %c0_268 = arith.constant 0 : index
    %389 = vector.load %arg31[%c1_266, %c0_267, %c0_268] : memref<2x1x32xf32, #tpu.memory_space<vmem>>, vector<1x1x32xf32>
    %390 = vector.shape_cast %389 : vector<1x1x32xf32> to vector<1x32xf32>
    %cst_269 = arith.constant dense<0.000000e+00> : vector<8xf32>
    %391 = vector.multi_reduction <add>, %386, %cst_269 [1] : vector<8x32xf32> to vector<8xf32>
    %392 = vector.shape_cast %391 : vector<8xf32> to vector<8x1xf32>
    %cst_270 = arith.constant 3.200000e+01 : f32
    %393 = vector.broadcast %cst_270 : f32 to vector<8x1xf32>
    %394 = arith.divf %392, %393 : vector<8x1xf32>
    %395 = vector.broadcast %394 : vector<8x1xf32> to vector<8x32xf32>
    %396 = arith.subf %386, %395 : vector<8x32xf32>
    %397 = arith.mulf %396, %396 : vector<8x32xf32>
    %cst_271 = arith.constant dense<0.000000e+00> : vector<8xf32>
    %398 = vector.multi_reduction <add>, %397, %cst_271 [1] : vector<8x32xf32> to vector<8xf32>
    %399 = vector.shape_cast %398 : vector<8xf32> to vector<8x1xf32>
    %cst_272 = arith.constant 3.200000e+01 : f32
    %400 = vector.broadcast %cst_272 : f32 to vector<8x1xf32>
    %401 = arith.divf %399, %400 : vector<8x1xf32>
    %402 = vector.broadcast %394 : vector<8x1xf32> to vector<8x32xf32>
    %403 = arith.subf %386, %402 : vector<8x32xf32>
    %cst_273 = arith.constant 9.99999974E-6 : f32
    %404 = vector.broadcast %cst_273 : f32 to vector<8x1xf32>
    %405 = arith.addf %401, %404 : vector<8x1xf32>
    %406 = math.rsqrt %405 : vector<8x1xf32>
    %407 = vector.broadcast %406 : vector<8x1xf32> to vector<8x32xf32>
    %408 = arith.mulf %403, %407 : vector<8x32xf32>
    %409 = vector.broadcast %388 : vector<1x32xf32> to vector<8x32xf32>
    %410 = arith.mulf %408, %409 : vector<8x32xf32>
    %411 = vector.broadcast %390 : vector<1x32xf32> to vector<8x32xf32>
    %412 = arith.addf %410, %411 : vector<8x32xf32>
    %c0_274 = arith.constant 0 : index
    %c0_275 = arith.constant 0 : index
    %413 = vector.load %arg32[%c0_274, %c0_275] : memref<32x40xf32, #tpu.memory_space<vmem>>, vector<32x40xf32>
    %cst_276 = arith.constant dense<0.000000e+00> : vector<8x40xf32>
    %414 = tpu.matmul %412, %413, %cst_276 {dimension_numbers = #tpu.dot_dimension_numbers<[1], [0], [0], [1], [0, 0, 1, 1], [], []>} : vector<8x32xf32>, vector<32x40xf32>, vector<8x40xf32> -> vector<8x40xf32>
    %c0_277 = arith.constant 0 : index
    %c0_278 = arith.constant 0 : index
    %415 = vector.load %arg33[%c0_277, %c0_278] : memref<1x40xf32, #tpu.memory_space<vmem>>, vector<1x40xf32>
    %416 = vector.broadcast %415 : vector<1x40xf32> to vector<8x40xf32>
    %417 = arith.addf %414, %416 : vector<8x40xf32>
    %c0_279 = arith.constant 0 : index
    %c0_280 = arith.constant 0 : index
    %c0_281 = arith.constant 0 : index
    %418 = vector.load %arg34[%c0_279, %c0_280, %c0_281] : memref<1x8x40xf32, #tpu.memory_space<vmem>>, vector<1x8x40xf32>
    %419 = vector.shape_cast %418 : vector<1x8x40xf32> to vector<8x40xf32>
    %420 = vector.shape_cast %417 : vector<8x40xf32> to vector<1x8x40xf32>
    tpu.vector_store %arg34[%c0_279, %c0_280, %c0_281], %420 {strides = array<i32>} : memref<1x8x40xf32, #tpu.memory_space<vmem>>, vector<1x8x40xf32>,
    return
  }
  func.func @transform_0(%arg0: i32) -> (i32, i32, i32) {
    %c0_i32 = arith.constant 0 : i32
    %c0_i32_0 = arith.constant 0 : i32
    %c0_i32_1 = arith.constant 0 : i32
    return %arg0, %c0_i32, %c0_i32_0 : i32, i32, i32
  }
  func.func @transform_1(%arg0: i32) -> (i32, i32) {
    %c0_i32 = arith.constant 0 : i32
    %c0_i32_0 = arith.constant 0 : i32
    %c0_i32_1 = arith.constant 0 : i32
    return %c0_i32, %c0_i32_0 : i32, i32
  }
  func.func @transform_2(%arg0: i32) -> (i32, i32, i32) {
    %c0_i32 = arith.constant 0 : i32
    %c0_i32_0 = arith.constant 0 : i32
    %c0_i32_1 = arith.constant 0 : i32
    return %arg0, %c0_i32, %c0_i32_0 : i32, i32, i32
  }
  func.func @transform_3(%arg0: i32) -> (i32, i32) {
    %c0_i32 = arith.constant 0 : i32
    %c0_i32_0 = arith.constant 0 : i32
    %c0_i32_1 = arith.constant 0 : i32
    return %c0_i32, %c0_i32_0 : i32, i32
  }
  func.func @transform_4(%arg0: i32) -> (i32, i32) {
    %c0_i32 = arith.constant 0 : i32
    %c0_i32_0 = arith.constant 0 : i32
    %c0_i32_1 = arith.constant 0 : i32
    return %c0_i32, %c0_i32_0 : i32, i32
  }
  func.func @transform_5(%arg0: i32) -> (i32, i32, i32, i32) {
    %c0_i32 = arith.constant 0 : i32
    %c0_i32_0 = arith.constant 0 : i32
    %c0_i32_1 = arith.constant 0 : i32
    %c0_i32_2 = arith.constant 0 : i32
    %c0_i32_3 = arith.constant 0 : i32
    return %c0_i32, %c0_i32_0, %c0_i32_1, %c0_i32_2 : i32, i32, i32, i32
  }
  func.func @transform_6(%arg0: i32) -> (i32, i32, i32, i32) {
    %c0_i32 = arith.constant 0 : i32
    %c0_i32_0 = arith.constant 0 : i32
    %c0_i32_1 = arith.constant 0 : i32
    %c0_i32_2 = arith.constant 0 : i32
    %c0_i32_3 = arith.constant 0 : i32
    return %c0_i32, %c0_i32_0, %c0_i32_1, %c0_i32_2 : i32, i32, i32, i32
  }
  func.func @transform_7(%arg0: i32) -> (i32, i32, i32, i32) {
    %c0_i32 = arith.constant 0 : i32
    %c0_i32_0 = arith.constant 0 : i32
    %c0_i32_1 = arith.constant 0 : i32
    %c0_i32_2 = arith.constant 0 : i32
    %c0_i32_3 = arith.constant 0 : i32
    return %c0_i32, %c0_i32_0, %c0_i32_1, %c0_i32_2 : i32, i32, i32, i32
  }
  func.func @transform_8(%arg0: i32) -> (i32, i32, i32, i32) {
    %c0_i32 = arith.constant 0 : i32
    %c0_i32_0 = arith.constant 0 : i32
    %c0_i32_1 = arith.constant 0 : i32
    %c0_i32_2 = arith.constant 0 : i32
    %c0_i32_3 = arith.constant 0 : i32
    return %c0_i32, %c0_i32_0, %c0_i32_1, %c0_i32_2 : i32, i32, i32, i32
  }
  func.func @transform_9(%arg0: i32) -> (i32, i32, i32, i32) {
    %c0_i32 = arith.constant 0 : i32
    %c0_i32_0 = arith.constant 0 : i32
    %c0_i32_1 = arith.constant 0 : i32
    %c0_i32_2 = arith.constant 0 : i32
    %c0_i32_3 = arith.constant 0 : i32
    return %c0_i32, %c0_i32_0, %c0_i32_1, %c0_i32_2 : i32, i32, i32, i32
  }
  func.func @transform_10(%arg0: i32) -> (i32, i32, i32, i32) {
    %c0_i32 = arith.constant 0 : i32
    %c0_i32_0 = arith.constant 0 : i32
    %c0_i32_1 = arith.constant 0 : i32
    %c0_i32_2 = arith.constant 0 : i32
    %c0_i32_3 = arith.constant 0 : i32
    return %c0_i32, %c0_i32_0, %c0_i32_1, %c0_i32_2 : i32, i32, i32, i32
  }
  func.func @transform_11(%arg0: i32) -> (i32, i32, i32, i32) {
    %c0_i32 = arith.constant 0 : i32
    %c0_i32_0 = arith.constant 0 : i32
    %c0_i32_1 = arith.constant 0 : i32
    %c0_i32_2 = arith.constant 0 : i32
    %c0_i32_3 = arith.constant 0 : i32
    return %c0_i32, %c0_i32_0, %c0_i32_1, %c0_i32_2 : i32, i32, i32, i32
  }
  func.func @transform_12(%arg0: i32) -> (i32, i32, i32) {
    %c0_i32 = arith.constant 0 : i32
    %c0_i32_0 = arith.constant 0 : i32
    %c0_i32_1 = arith.constant 0 : i32
    %c0_i32_2 = arith.constant 0 : i32
    return %c0_i32, %c0_i32_0, %c0_i32_1 : i32, i32, i32
  }
  func.func @transform_13(%arg0: i32) -> (i32, i32, i32, i32) {
    %c0_i32 = arith.constant 0 : i32
    %c0_i32_0 = arith.constant 0 : i32
    %c0_i32_1 = arith.constant 0 : i32
    %c0_i32_2 = arith.constant 0 : i32
    %c0_i32_3 = arith.constant 0 : i32
    return %c0_i32, %c0_i32_0, %c0_i32_1, %c0_i32_2 : i32, i32, i32, i32
  }
  func.func @transform_14(%arg0: i32) -> (i32, i32, i32, i32) {
    %c0_i32 = arith.constant 0 : i32
    %c0_i32_0 = arith.constant 0 : i32
    %c0_i32_1 = arith.constant 0 : i32
    %c0_i32_2 = arith.constant 0 : i32
    %c0_i32_3 = arith.constant 0 : i32
    return %c0_i32, %c0_i32_0, %c0_i32_1, %c0_i32_2 : i32, i32, i32, i32
  }
  func.func @transform_15(%arg0: i32) -> (i32, i32, i32, i32) {
    %c0_i32 = arith.constant 0 : i32
    %c0_i32_0 = arith.constant 0 : i32
    %c0_i32_1 = arith.constant 0 : i32
    %c0_i32_2 = arith.constant 0 : i32
    %c0_i32_3 = arith.constant 0 : i32
    return %c0_i32, %c0_i32_0, %c0_i32_1, %c0_i32_2 : i32, i32, i32, i32
  }
  func.func @transform_16(%arg0: i32) -> (i32, i32, i32, i32) {
    %c0_i32 = arith.constant 0 : i32
    %c0_i32_0 = arith.constant 0 : i32
    %c0_i32_1 = arith.constant 0 : i32
    %c0_i32_2 = arith.constant 0 : i32
    %c0_i32_3 = arith.constant 0 : i32
    return %c0_i32, %c0_i32_0, %c0_i32_1, %c0_i32_2 : i32, i32, i32, i32
  }
  func.func @transform_17(%arg0: i32) -> (i32, i32, i32, i32) {
    %c0_i32 = arith.constant 0 : i32
    %c0_i32_0 = arith.constant 0 : i32
    %c0_i32_1 = arith.constant 0 : i32
    %c0_i32_2 = arith.constant 0 : i32
    %c0_i32_3 = arith.constant 0 : i32
    return %c0_i32, %c0_i32_0, %c0_i32_1, %c0_i32_2 : i32, i32, i32, i32
  }
  func.func @transform_18(%arg0: i32) -> (i32, i32, i32, i32) {
    %c0_i32 = arith.constant 0 : i32
    %c0_i32_0 = arith.constant 0 : i32
    %c0_i32_1 = arith.constant 0 : i32
    %c0_i32_2 = arith.constant 0 : i32
    %c0_i32_3 = arith.constant 0 : i32
    return %c0_i32, %c0_i32_0, %c0_i32_1, %c0_i32_2 : i32, i32, i32, i32
  }
  func.func @transform_19(%arg0: i32) -> (i32, i32, i32, i32) {
    %c0_i32 = arith.constant 0 : i32
    %c0_i32_0 = arith.constant 0 : i32
    %c0_i32_1 = arith.constant 0 : i32
    %c0_i32_2 = arith.constant 0 : i32
    %c0_i32_3 = arith.constant 0 : i32
    return %c0_i32, %c0_i32_0, %c0_i32_1, %c0_i32_2 : i32, i32, i32, i32
  }
  func.func @transform_20(%arg0: i32) -> (i32, i32, i32) {
    %c0_i32 = arith.constant 0 : i32
    %c0_i32_0 = arith.constant 0 : i32
    %c0_i32_1 = arith.constant 0 : i32
    %c0_i32_2 = arith.constant 0 : i32
    return %c0_i32, %c0_i32_0, %c0_i32_1 : i32, i32, i32
  }
  func.func @transform_21(%arg0: i32) -> (i32, i32, i32) {
    %c0_i32 = arith.constant 0 : i32
    %c0_i32_0 = arith.constant 0 : i32
    %c0_i32_1 = arith.constant 0 : i32
    %c0_i32_2 = arith.constant 0 : i32
    return %c0_i32, %c0_i32_0, %c0_i32_1 : i32, i32, i32
  }
  func.func @transform_22(%arg0: i32) -> (i32, i32, i32) {
    %c0_i32 = arith.constant 0 : i32
    %c0_i32_0 = arith.constant 0 : i32
    %c0_i32_1 = arith.constant 0 : i32
    %c0_i32_2 = arith.constant 0 : i32
    return %c0_i32, %c0_i32_0, %c0_i32_1 : i32, i32, i32
  }
  func.func @transform_23(%arg0: i32) -> (i32, i32, i32) {
    %c0_i32 = arith.constant 0 : i32
    %c0_i32_0 = arith.constant 0 : i32
    %c0_i32_1 = arith.constant 0 : i32
    %c0_i32_2 = arith.constant 0 : i32
    return %c0_i32, %c0_i32_0, %c0_i32_1 : i32, i32, i32
  }
  func.func @transform_24(%arg0: i32) -> (i32, i32, i32) {
    %c0_i32 = arith.constant 0 : i32
    %c0_i32_0 = arith.constant 0 : i32
    %c0_i32_1 = arith.constant 0 : i32
    %c0_i32_2 = arith.constant 0 : i32
    return %c0_i32, %c0_i32_0, %c0_i32_1 : i32, i32, i32
  }
  func.func @transform_25(%arg0: i32) -> (i32, i32, i32) {
    %c0_i32 = arith.constant 0 : i32
    %c0_i32_0 = arith.constant 0 : i32
    %c0_i32_1 = arith.constant 0 : i32
    %c0_i32_2 = arith.constant 0 : i32
    return %c0_i32, %c0_i32_0, %c0_i32_1 : i32, i32, i32
  }
  func.func @transform_26(%arg0: i32) -> (i32, i32, i32) {
    %c0_i32 = arith.constant 0 : i32
    %c0_i32_0 = arith.constant 0 : i32
    %c0_i32_1 = arith.constant 0 : i32
    %c0_i32_2 = arith.constant 0 : i32
    return %c0_i32, %c0_i32_0, %c0_i32_1 : i32, i32, i32
  }
  func.func @transform_27(%arg0: i32) -> (i32, i32, i32) {
    %c0_i32 = arith.constant 0 : i32
    %c0_i32_0 = arith.constant 0 : i32
    %c0_i32_1 = arith.constant 0 : i32
    %c0_i32_2 = arith.constant 0 : i32
    return %c0_i32, %c0_i32_0, %c0_i32_1 : i32, i32, i32
  }
  func.func @transform_28(%arg0: i32) -> (i32, i32, i32) {
    %c0_i32 = arith.constant 0 : i32
    %c0_i32_0 = arith.constant 0 : i32
    %c0_i32_1 = arith.constant 0 : i32
    %c0_i32_2 = arith.constant 0 : i32
    return %c0_i32, %c0_i32_0, %c0_i32_1 : i32, i32, i32
  }
  func.func @transform_29(%arg0: i32) -> (i32, i32, i32) {
    %c0_i32 = arith.constant 0 : i32
    %c0_i32_0 = arith.constant 0 : i32
    %c0_i32_1 = arith.constant 0 : i32
    %c0_i32_2 = arith.constant 0 : i32
    return %c0_i32, %c0_i32_0, %c0_i32_1 : i32, i32, i32
  }
  func.func @transform_30(%arg0: i32) -> (i32, i32, i32) {
    %c0_i32 = arith.constant 0 : i32
    %c0_i32_0 = arith.constant 0 : i32
    %c0_i32_1 = arith.constant 0 : i32
    %c0_i32_2 = arith.constant 0 : i32
    return %c0_i32, %c0_i32_0, %c0_i32_1 : i32, i32, i32
  }
  func.func @transform_31(%arg0: i32) -> (i32, i32) {
    %c0_i32 = arith.constant 0 : i32
    %c0_i32_0 = arith.constant 0 : i32
    %c0_i32_1 = arith.constant 0 : i32
    return %c0_i32, %c0_i32_0 : i32, i32
  }
  func.func @transform_32(%arg0: i32) -> (i32, i32) {
    %c0_i32 = arith.constant 0 : i32
    %c0_i32_0 = arith.constant 0 : i32
    %c0_i32_1 = arith.constant 0 : i32
    return %c0_i32, %c0_i32_0 : i32, i32
  }
  func.func @transform_33(%arg0: i32) -> (i32, i32, i32) {
    %c0_i32 = arith.constant 0 : i32
    %c0_i32_0 = arith.constant 0 : i32
    %c0_i32_1 = arith.constant 0 : i32
    return %arg0, %c0_i32, %c0_i32_0 : i32, i32, i32
  }
}

</mosaic_0001>

<bundles_post_ra>
// kernel: key_emotions_forward.1
= control target key start
LH: loop header
LB: loop body
LE: loop exit
PB: predicated region body
PF: predicated region fallthrough
CT: control target
= control target key end

     0   :  { %s5131_s6 = smov 1   ;;  %s5132_s10 = smov 2   ;;  %s6052_s0 = inlined_call_operand.smem [shape: u32[34], index: -1, kind: input, shape index: {}] }
   0x1   :  { %s5173_s5 = sld [smem:[%s6052_s0]]   ;;  %s5133_s14 = smov 3  }
   0x2   :  { %s5178_s9 = sld [smem:[%s6052_s0 + %s5131_s6]]   ;;  %s5134_s18 = smov 4  }
   0x3   :  { %s5183_s13 = sld [smem:[%s6052_s0 + %s5132_s10]]   ;;  %s5135_s22 = smov 5  }
   0x4   :  { %s5188_s17 = sld [smem:[%s6052_s0 + %s5133_s14]]   ;;  %s5136_s26 = smov 6  }
   0x5   :  { %s5193_s21 = sld [smem:[%s6052_s0 + %s5134_s18]]   ;;  %s5137_s30 = smov 7  }
   0x6   :  { %s5198_s25 = sld [smem:[%s6052_s0 + %s5135_s22]]   ;;  %s5138_s4 = smov 8  }
   0x7   :  { %6092 = sst [smem:[#allocation5_spill]] %s5173_s5  ;;  %s5139_s10 = smov 9  }
   0x8   :  { %6093 = sst [smem:[#allocation6_spill]] %s5178_s9  ;;  %s5140_s15 = smov 10  }
   0x9   :  { %6094 = sst [smem:[#allocation7_spill]] %s5183_s13  ;;  %s5141_s20 = smov 11  }
   0xa   :  { %6095 = sst [smem:[#allocation8_spill]] %s5188_s17  ;;  %s5143_s1 = smov 13  }
   0xb   :  { %6096 = sst [smem:[#allocation9_spill]] %s5193_s21  ;;  %s5144_s7 = smov 14  }
   0xc   :  { %s5203_s29 = sld [smem:[%s6052_s0 + %s5136_s26]]   ;;  %s5142_s26 = smov 12  }
   0xd   :  { %s5208_s3 = sld [smem:[%s6052_s0 + %s5137_s30]]   ;;  %s5146_s22 = smov 16  }
   0xe   :  { %s5213_s8 = sld [smem:[%s6052_s0 + %s5138_s4]]   ;;  %s5147_s28 = smov 17  }
   0xf   :  { %s5218_s14 = sld [smem:[%s6052_s0 + %s5139_s10]]  }
  0x10   :  { %s5223_s19 = sld [smem:[%s6052_s0 + %s5140_s15]]   ;;  %s5145_s15 = smov 15  }
  0x11   :  { %s5228_s24 = sld [smem:[%s6052_s0 + %s5141_s20]]  }
  0x12   :  { %s5233_s30 = sld [smem:[%s6052_s0 + %s5142_s26]]  }
  0x13   :  { %6097 = sst [smem:[#allocation10_spill]] %s5208_s3 }
  0x14   :  { %6098 = sst [smem:[#allocation11_spill]] %s5213_s8 }
  0x15   :  { %6099 = sst [smem:[#allocation12_spill]] %s5218_s14 }
  0x16   :  { %s5238_s6 = sld [smem:[%s6052_s0 + %s5143_s1]]  }
  0x17   :  { %s5243_s12 = sld [smem:[%s6052_s0 + %s5144_s7]]   ;;  %s5148_s7 = smov 18  }
  0x18   :  { %s5248_s20 = sld [smem:[%s6052_s0 + %s5145_s15]]   ;;  %s5149_s15 = smov 19  }
  0x19   :  { %s5253_s27 = sld [smem:[%s6052_s0 + %s5146_s22]]   ;;  %s5150_s22 = smov 20  }
  0x1a   :  { %s5258_s4 = sld [smem:[%s6052_s0 + %s5147_s28]]   ;;  %s5151_s28 = smov 21  }
  0x1c   :  { %6100 = sst [smem:[#allocation13_spill]] %s5238_s6 }
  0x1d   :  { %6101 = sst [smem:[#allocation14_spill]] %s5243_s12 }
  0x1e   :  { %6102 = sst [smem:[#allocation15_spill]] %s5248_s20 }
  0x1f   :  { %6103 = sst [smem:[#allocation16_spill]] %s5253_s27 }
  0x20   :  { %6104 = sst [smem:[#allocation17_spill]] %s5258_s4 }
  0x21   :  { %s5263_s12 = sld [smem:[%s6052_s0 + %s5148_s7]]   ;;  %s5152_s7 = smov 22  }
  0x22   :  { %s5268_s20 = sld [smem:[%s6052_s0 + %s5149_s15]]   ;;  %s5153_s15 = smov 23  }
  0x23   :  { %s5273_s27 = sld [smem:[%s6052_s0 + %s5150_s22]]   ;;  %s5154_s22 = smov 24  }
  0x24   :  { %s5278_s4 = sld [smem:[%s6052_s0 + %s5151_s28]]   ;;  %s5155_s28 = smov 25  }
  0x27   :  { %6105 = sst [smem:[#allocation18_spill]] %s5263_s12 }
  0x28   :  { %6106 = sst [smem:[#allocation19_spill]] %s5268_s20 }
  0x29   :  { %6107 = sst [smem:[#allocation20_spill]] %s5273_s27 }
  0x2a   :  { %6108 = sst [smem:[#allocation21_spill]] %s5278_s4 }
  0x2b   :  { %s5283_s12 = sld [smem:[%s6052_s0 + %s5152_s7]]   ;;  %s5156_s7 = smov 26  }
  0x2c   :  { %s5288_s20 = sld [smem:[%s6052_s0 + %s5153_s15]]   ;;  %s5157_s15 = smov 27  }
  0x2d   :  { %s5293_s27 = sld [smem:[%s6052_s0 + %s5154_s22]]   ;;  %s5158_s22 = smov 28  }
  0x2e   :  { %s5298_s4 = sld [smem:[%s6052_s0 + %s5155_s28]]   ;;  %s5159_s28 = smov 29  }
  0x31   :  { %6109 = sst [smem:[#allocation22_spill]] %s5283_s12 }
  0x32   :  { %6110 = sst [smem:[#allocation23_spill]] %s5288_s20 }
  0x33   :  { %6111 = sst [smem:[#allocation24_spill]] %s5293_s27 }
  0x34   :  { %6112 = sst [smem:[#allocation25_spill]] %s5298_s4 }
  0x35   :  { %s5303_s12 = sld [smem:[%s6052_s0 + %s5156_s7]]   ;;  %s5160_s7 = smov 30  }
  0x36   :  { %s5308_s20 = sld [smem:[%s6052_s0 + %s5157_s15]]   ;;  %s5161_s15 = smov 31  }
  0x37   :  { %s5313_s27 = sld [smem:[%s6052_s0 + %s5158_s22]]   ;;  %s5162_s22 = smov 32  }
  0x38   :  { %s5318_s4 = sld [smem:[%s6052_s0 + %s5159_s28]]   ;;  %s5163_s28 = smov 33  }
  0x3b   :  { %6113 = sst [smem:[#allocation26_spill]] %s5303_s12 }
  0x3c   :  { %6114 = sst [smem:[#allocation27_spill]] %s5308_s20 }
  0x3d   :  { %6115 = sst [smem:[#allocation28_spill]] %s5313_s27 }
  0x3e   :  { %6116 = sst [smem:[#allocation29_spill]] %s5318_s4 }
  0x3f   :  { %s5323_s12 = sld [smem:[%s6052_s0 + %s5160_s7]]  }
  0x40   :  { %s5328_s20 = sld [smem:[%s6052_s0 + %s5161_s15]]  }
  0x41   :  { %s5333_s27 = sld [smem:[%s6052_s0 + %s5162_s22]]  }
  0x42   :  { %s5338_s4 = sld [smem:[%s6052_s0 + %s5163_s28]]  }
  0x45   :  { %6117 = sst [smem:[#allocation30_spill]] %s5323_s12 }
  0x46   :  { %6118 = sst [smem:[#allocation31_spill]] %s5328_s20 }
  0x47   :  { %6119 = sst [smem:[#allocation32_spill]] %s5333_s27 }
  0x48   :  { %6120 = sst [smem:[#allocation33_spill]] %s5338_s4 }
  0x49   :  { %72 = vsyncpa [#allocation3], 0 }
  0x4a   :  { %74 = vsyncpa [#allocation3 + $0x1], 0  ;;  %s5340_s7 = smov 0   ;;  %s5342_s10 = smov 0  }
  0x4b   :  { %s5344_s11 = smov 0   ;;  %s5346_s15 = smov 0  }
  0x4c LB: > { %s6121_s14 = sld [smem:[#allocation12_spill]]  ;;  %s5361_s0 = sadd.s32 4294967295, %s5129_s15   ;;  %s5117_s7 = sphi %s5340_s7, %s6175_s7   ;;  %s5129_s15 = sphi %s5346_s15, %s6172_s15   ;;  %s5125_s11 = sphi %s5344_s11, %s6174_s11   ;;  %s5121_s10 = sphi %s5342_s10, %s6176_s10  }
  0x4d   : > { %s6122_s12 = sld [smem:[#allocation30_spill]]  ;;  %s4564_s16 = sadd.s32 4294967294, %s5129_s15  }
  0x4e   : > { %s6123_s8 = sld [smem:[#allocation11_spill]]  ;;  %s5365_s18 = sadd.s32 1, %s5129_s15  }
  0x4f   : > { %s6124_s6 = sld [smem:[#allocation13_spill]]  ;;  %s790_s22 = sadd.s32 1, %s5125_s11 }
  0x50   : > { %s6125_s3 = sld [smem:[#allocation10_spill]]  ;;  %s787_s23 = ssub.s32 %s5129_s15, %s5365_s18 }
  0x51   : > { %6126 = sst [smem:[#allocation34_spill]] %s5117_s7  ;;  %p800_p0 = scmp.ne.s32.totalorder %s5125_s11, %s5121_s10 }
  0x52   : > { %6127 = sst [smem:[#allocation35_spill]] %s5125_s11  ;;  %p788_p1 = scmp.eq.s32.totalorder %s787_s23, 0 }
  0x53   : > { %6128 = sst [smem:[#allocation36_spill]] %s5129_s15  ;;  %p801_p2 = scmp.eq.s32.totalorder %s5361_s0, 1 }
  0x54   : > { %6129 = sst [smem:[#allocation37_spill]] %s5361_s0  ;;  %p806_p3 = scmp.ne.s32.totalorder %s5121_s10, %s5117_s7 }
  0x55   : > { %6130 = sst [smem:[#allocation38_spill]] %s5365_s18  ;;  %p807_p4 = scmp.eq.s32.totalorder %s4564_s16, 1 }
  0x56   : > { %s5376_s26 = scalar_select %p788_p1, %s5125_s11, %s790_s22  }
  0x57   : > { %p5378_p5 = por %p801_p2, %p800_p0  ;;  %p5382_p6 = por %p807_p4, %p806_p3 }
  0x58   : > { %6131 = sst [smem:[#allocation39_spill]] %s5376_s26  ;;  %p4567_p7 = scmp.ge.s32.totalorder %s5129_s15, 1 }
  0x59   : > { %s6132_s28 = scalar_select %p5378_p5, 1, 0 }
  0x5a   : > { %s6134_s1 = scalar_select %p5382_p6, 1, 0 }
  0x5b   : > { %6133 = sst [smem:[#allocation40_spill]] %s6132_s28  ;;  %p932_p8 = scmp.lt.s32.totalorder %s5129_s15, 3 }
  0x5c   : > { %6135 = sst [smem:[#allocation41_spill]] %s6134_s1 }
  0x5d   : > { %p933_p9 = pnand %p4567_p7, %p932_p8 }
  0x5e   : > { %s6136_s9 = sld [smem:[#allocation6_spill]] (!%p933_p9)  ;;  %p1019_p10 = scmp.lt.s32.totalorder (!%p933_p9), %s5361_s0, 1 }
  0x5f   : > { %936 = sbr.rel (%p933_p9) target bundleno = 5934 (0x172e), region = 152  ;;  %s6137_s5 = sld [smem:[#allocation5_spill]] (!%p933_p9) }
  0x60   : > { %s6138_s17 = sld [smem:[#allocation8_spill]] (!%p933_p9) }
  0x61   : > { %s6139_s21 = sld [smem:[#allocation9_spill]] (!%p933_p9) }
  0x62   : > { %s6140_s13 = sld [smem:[#allocation7_spill]] (!%p933_p9) }
  0x63   : > { %s6149_s26 = sld [smem:[#allocation20_spill]] (!%p933_p9) }
  0x64   : > { %s5390_s2 = scalar_select %p1019_p10, %s5361_s0, 1  ;;  %v1028_v0 = vld [vmem:[%s6136_s9] sm:$0xff]  ;;  %vm1032_vm0 = vcmask 261120   ;;  %v5164_v4 = vmov 32.0   ;;  %v1074_v16 = vld [vmem:[%s5198_s25 + $0x18] sm:$0xff]  ;;  %v1073_v20 = vld [vmem:[%s5198_s25 + $0x10] sm:$0xff] }
  0x65   : > { %4986 = vrcp.f32 %v5164_v4  ;;  %v1078_v17 = vld [vmem:[%s5198_s25 + $0x38] sm:$0xff]  ;;  %1163 = vmatpush.msra.mxu2 %v1074_v16  ;;  %v1077_v21 = vld [vmem:[%s5198_s25 + $0x30] sm:$0xff]  ;;  %v1072_v24 = vld [vmem:[%s5198_s25 + $0x8] sm:$0xff]  ;;  %vm1415_vm5 = vcmask 64512   ;;  %s6145_s9 = sld [smem:[#allocation16_spill]] }
  0x66   : > { %s4569_s16 = sshll.u32 %s5390_s2, 3  ;;  %v1086_v18 = vld [vmem:[%s5198_s25 + $0x78] sm:$0xff]  ;;  %1183 = vmatpush.msra.mxu1 %v1078_v17  ;;  %v1085_v22 = vld [vmem:[%s5198_s25 + $0x70] sm:$0xff]  ;;  %v1076_v25 = vld [vmem:[%s5198_s25 + $0x28] sm:$0xff]  ;;  %s6141_s2 = sld [smem:[#allocation15_spill]] }
  0x67   : > { %s1022_s22 = scalar_lea.vmem %s6137_s5, %s4569_s16  ;;  %v1094_v19 = vld [vmem:[%s6125_s3 + $0x18] sm:$0xff]  ;;  %1223 = vmatpush.msra.mxu3 %v1086_v18  ;;  %1164 = vmatpush.msra.mxu2 %v1073_v20  ;;  %v1093_v23 = vld [vmem:[%s6125_s3 + $0x10] sm:$0xff]  ;;  %v1084_v26 = vld [vmem:[%s5198_s25 + $0x68] sm:$0xff]  ;;  %s6144_s5 = sld [smem:[#allocation17_spill]] }
  0x68   : > { %v1027_v1 = vld [vmem:[%s1022_s22] sm:$0xff]  ;;  %1255 = vmatpush.msra.mxu0 %v1094_v19  ;;  %1184 = vmatpush.msra.mxu1 %v1077_v21  ;;  %v1092_v27 = vld [vmem:[%s6125_s3 + $0x8] sm:$0xff]  ;;  %v1082_v32 = vld [vmem:[%s5198_s25 + $0x58] sm:$0xff]  ;;  %s5507_s23 = scalar_lea.vmem %s6140_s13, %s4569_s16  ;;  %s6142_s16 = sld [smem:[#allocation25_spill]] }
  0x69   : > { %v1029_v2 = vadd.f32 %v1028_v0, %v1027_v1  ;;  %1224 = vmatpush.msra.mxu3 %v1085_v22  ;;  %1165 = vmatpush.msra.mxu2 %v1072_v24  ;;  %v1071_v28 = vld [vmem:[%s5198_s25] sm:$0xff]  ;;  %v1098_v33 = vld [vmem:[%s6125_s3 + $0x38] sm:$0xff]  ;;  %v1081_v36 = vld [vmem:[%s5198_s25 + $0x50] sm:$0xff]  ;;  %s6143_s22 = sld [smem:[#allocation26_spill]] }
  0x6a   : > { %1256 = vmatpush.msra.mxu0 %v1093_v23  ;;  %1185 = vmatpush.msra.mxu1 %v1076_v25  ;;  %v1075_v29 = vld [vmem:[%s5198_s25 + $0x20] sm:$0xff]  ;;  %v1106_v34 = vld [vmem:[%s6125_s3 + $0x78] sm:$0xff]  ;;  %v1097_v37 = vld [vmem:[%s6125_s3 + $0x30] sm:$0xff]  ;;  %s6146_s13 = sld [smem:[#allocation14_spill]] }
  0x6b   : > { %v1033_v3 = vsel %vm1032_vm0, %v1029_v2, 0.0  ;;  %v4987_v5 = vpop.eup %4986  ;;  %1225 = vmatpush.msra.mxu3 %v1084_v26  ;;  %v1083_v30 = vld [vmem:[%s5198_s25 + $0x60] sm:$0xff]  ;;  %1166 = vmatpush.msra.mxu2 %v1071_v28  ;;  %v1114_v35 = vld [vmem:[%s6121_s14 + $0x18] sm:$0xff]  ;;  %v1105_v39 = vld [vmem:[%s6125_s3 + $0x70] sm:$0xff]  ;;  %s6150_s11 = sld [smem:[#allocation21_spill]] }
  0x6c   : > { %1034 = vadd.xlane.f32.xlu0 %v1033_v3  ;;  %v1037_v6 = vmul.f32 32.0, %v4987_v5  ;;  %vm1041_vm1 = vweird.f32 %v4987_v5  ;;  %1257 = vmatpush.msra.mxu0 %v1092_v27  ;;  %v1091_v31 = vld [vmem:[%s6125_s3] sm:$0xff]  ;;  %v1113_v40 = vld [vmem:[%s6121_s14 + $0x10] sm:$0xff]  ;;  %v1080_v41 = vld [vmem:[%s5198_s25 + $0x48] sm:$0xff]  ;;  %s6152_s1 = sld [smem:[#allocation23_spill]] }
  0x6d   : > { %1186 = vmatpush.msra.mxu1 %v1075_v29  ;;  %1226 = vmatpush.msra.mxu3 %v1083_v30  ;;  %v1096_v43 = vld [vmem:[%s6125_s3 + $0x28] sm:$0xff]  ;;  %v1079_v46 = vld [vmem:[%s5198_s25 + $0x40] sm:$0xff]  ;;  %v1102_v63 = vld [vmem:[%s6125_s3 + $0x58] sm:$0xff]  ;;  %s6153_s7 = sld [smem:[#allocation27_spill]] }
  0x6e   : > { %v1038_v7 = vsub.f32 1.0, %v1037_v6  ;;  %1258 = vmatpush.msra.mxu0 %v1091_v31  ;;  %1203 = vmatpush.msrb.mxu2 %v1082_v32  ;;  %v1104_v44 = vld [vmem:[%s6125_s3 + $0x68] sm:$0xff]  ;;  %v1095_v47 = vld [vmem:[%s6125_s3 + $0x20] sm:$0xff]  ;;  %v1118_v0 = vld [vmem:[%s6121_s14 + $0x38] sm:$0xff]  ;;  %s6157_s15 = sld [smem:[#allocation22_spill]] }
  0x6f   : > { %1275 = vmatpush.msrb.mxu1 %v1098_v33  ;;  %1315 = vmatpush.msrb.mxu3 %v1106_v34  ;;  %v1112_v45 = vld [vmem:[%s6121_s14 + $0x8] sm:$0xff]  ;;  %v1103_v49 = vld [vmem:[%s6125_s3 + $0x60] sm:$0xff]  ;;  %v1126_v1 = vld [vmem:[%s6121_s14 + $0x78] sm:$0xff]  ;;  %s6159_s0 = sld [smem:[#allocation24_spill]] }
  0x70   : > { %v1039_v8 = vmul.f32 %v4987_v5, %v1038_v7  ;;  %1347 = vmatpush.msrb.mxu0 %v1114_v35  ;;  %1204 = vmatpush.msrb.mxu2 %v1081_v36  ;;  %v1111_v50 = vld [vmem:[%s6121_s14] sm:$0xff]  ;;  %v1117_v3 = vld [vmem:[%s6121_s14 + $0x30] sm:$0xff]  ;;  %v1116_v6 = vld [vmem:[%s6121_s14 + $0x28] sm:$0xff] }
  0x71   : > { %1276 = vmatpush.msrb.mxu1 %v1097_v37  ;;  %1316 = vmatpush.msrb.mxu3 %v1105_v39  ;;  %v4915_v57 = vld [vmem:[%s6138_s17] ss:$0 sm:$0xff]  ;;  %v1125_v4 = vld [vmem:[%s6121_s14 + $0x70] sm:$0xff]  ;;  %v1124_v7 = vld [vmem:[%s6121_s14 + $0x68] sm:$0xff]  ;;  %s6147_s17 = sld [smem:[#allocation18_spill]]  ;;  %s6151_s18 = smov %s6150_s11 }
  0x72   : > { %v1040_v9 = vadd.f32 %v4987_v5, %v1039_v8  ;;  %1348 = vmatpush.msrb.mxu0 %v1113_v40  ;;  %1205 = vmatpush.msrb.mxu2 %v1080_v41  ;;  %v4916_v59 = vld [vmem:[%s6139_s21] ss:$0 sm:$0xff]  ;;  %v4921_v21 = vld [vmem:[%s6123_s8 + $0x1] ss:$0 sm:$0xff]  ;;  %v4924_v32 = vld [vmem:[%s6123_s8 + $0x3] ss:$0 sm:$0xff] }
  0x73   : > { %1277 = vmatpush.msrb.mxu1 %v1096_v43  ;;  %1317 = vmatpush.msrb.mxu3 %v1104_v44  ;;  %v1099_v8 = vld [vmem:[%s6125_s3 + $0x40] sm:$0xff]  ;;  %s6148_s21 = sld [smem:[#allocation19_spill]]  ;;  %s6154_s28 = smov %s6153_s7 }
  0x74   : > { %v5398_v10 = vsel %vm1041_vm1, %v4987_v5, %v1040_v9  ;;  %1349 = vmatpush.msrb.mxu0 %v1112_v45  ;;  %1206 = vmatpush.msrb.mxu2 %v1079_v46  ;;  %v1100_v5 = vld [vmem:[%s6125_s3 + $0x48] sm:$0xff]  ;;  %v1115_v9 = vld [vmem:[%s6121_s14 + $0x20] sm:$0xff]  ;;  %s6158_s4 = smov %s6157_s15 }
  0x75   : > { %1278 = vmatpush.msrb.mxu1 %v1095_v47  ;;  %1318 = vmatpush.msrb.mxu3 %v1103_v49  ;;  %v4918_v16 = vld [vmem:[%s6123_s8] ss:$0 sm:$0xff]  ;;  %v4917_v26 = vld [vmem:[%s5203_s29 + $0x1] ss:$0 sm:$0xff]  ;;  %v4920_v35 = vld [vmem:[%s5203_s29 + $0x3] ss:$0 sm:$0xff] }
  0x76   : > { %1350 = vmatpush.msrb.mxu0 %v1111_v50  ;;  %v4919_v20 = vld [vmem:[%s5203_s29] ss:$0 sm:$0xff]  ;;  %v4925_v33 = vld [vmem:[%s5223_s19 + $0x1] ss:$0 sm:$0xff]  ;;  %v4926_v41 = vld [vmem:[%s6123_s8 + $0x2] ss:$0 sm:$0xff] }
  0x77   : > { %v4922_v23 = vld [vmem:[%s5223_s19] ss:$0 sm:$0xff]  ;;  %v4923_v43 = vld [vmem:[%s5203_s29 + $0x2] ss:$0 sm:$0xff] }
  0x78   : > { %v4928_v49 = vld [vmem:[%s5223_s19 + $0x2] ss:$0 sm:$0xff] }
  0xdf   : > { %v1035_v11 = vpop.xlane.xlu0 %1034 }
  0xe0   : > { %v1043_v12 = vmul.f32 %v5398_v10, %v1035_v11  ;;  %v1123_v11 = vld [vmem:[%s6121_s14 + $0x60] sm:$0xff] }
  0xe2   : > { %v5401_v13 = vsub.f32 %v1029_v2, %v1043_v12  ;;  %v1101_v2 = vld [vmem:[%s6125_s3 + $0x50] sm:$0xff]  ;;  %v1122_v12 = vld [vmem:[%s6121_s14 + $0x58] sm:$0xff] }
  0xe4   : > { %v1045_v14 = vmul.f32 %v5401_v13, %v5401_v13 }
  0xe6   : > { %v1046_v15 = vsel %vm1032_vm0, %v1045_v14, 0.0  ;;  %v1120_v14 = vld [vmem:[%s6121_s14 + $0x48] sm:$0xff] }
  0xe7   : > { %1047 = vadd.xlane.f32.xlu0 %v1046_v15  ;;  %v1119_v15 = vld [vmem:[%s6121_s14 + $0x40] sm:$0xff] }
 0x15a   : > { %v1048_v38 = vpop.xlane.xlu0 %1047 }
 0x15b   : > { %v1049_v42 = vmul.f32 %v1048_v38, %v5398_v10 }
 0x15d   : > { %v1050_v48 = vadd.f32 1e-05, %v1049_v42  ;;  %v4927_v42 = vld [vmem:[%s5223_s19 + $0x3] ss:$0 sm:$0xff] }
 0x15f   : > { %4988 = vrsqrt.f32 %v1050_v48  ;;  %vm1057_vm3 = vweird.f32 %v1050_v48 }
 0x165   : > { %v4989_v51 = vpop.eup %4988 }
 0x166   : > { %v1052_v52 = vmul.f32 %v4989_v51, %v1050_v48  ;;  %vm1058_vm2 = vweird.f32 %v4989_v51 }
 0x167   : > { %vm1059_vm4 = vmor %vm1057_vm3, %vm1058_vm2 }
 0x168   : > { %v1053_v53 = vmul.f32 %v4989_v51, %v1052_v52  ;;  %v1070_v52 = vld [vmem:[%s5507_s23] sm:$0xff] }
 0x16a   : > { %v1054_v54 = vmul.f32 0.5, %v1053_v53 }
 0x16c   : > { %v1055_v55 = vsub.f32 1.5, %v1054_v54 }
 0x16e   : > { %v1056_v56 = vmul.f32 %v4989_v51, %v1055_v55 }
 0x170   : > { %v1060_v58 = vsel %vm1059_vm4, %v4989_v51, %v1056_v56 }
 0x171   : > { %v1061_v60 = vmul.f32 %v1060_v58, %v5401_v13  ;;  %v1121_v13 = vld [vmem:[%s6121_s14 + $0x50] sm:$0xff] }
 0x173   : > { %v1065_v61 = vmul.f32 %v4915_v57, %v1061_v60 }
 0x175   : > { %v5442_v62 = vadd.f32 %v4916_v59, %v1065_v61 }
 0x177   : > { %4571 = vmatmul.msk.f32.vlgmr.msra.gmra.mxu2 %vm1032_vm0, %v5442_v62  ;;  %4572 = vmatmul.msk.f32.vlgmr.msra.gmra.mxu1 %vm1032_vm0, %v5442_v62 }
 0x178   : > { %4574 = vmatmul.msk.f32.vlgmr.msra.gmra.mxu3 %vm1032_vm0, %v5442_v62  ;;  %4575 = vmatmul.msk.f32.vlgmr.msra.gmra.mxu0 %vm1032_vm0, %v5442_v62 }
 0x179   : > { %1295 = vmatpush.msra.mxu2 %v1102_v63  ;;  %1367 = vmatpush.msra.mxu1 %v1118_v0 }
 0x17a   : > { %1407 = vmatpush.msra.mxu3 %v1126_v1 }
 0x17b   : > { %1296 = vmatpush.msra.mxu2 %v1101_v2  ;;  %1368 = vmatpush.msra.mxu1 %v1117_v3 }
 0x17c   : > { %1408 = vmatpush.msra.mxu3 %v1125_v4 }
 0x17d   : > { %1297 = vmatpush.msra.mxu2 %v1100_v5  ;;  %1369 = vmatpush.msra.mxu1 %v1116_v6 }
 0x17e   : > { %1409 = vmatpush.msra.mxu3 %v1124_v7 }
 0x17f   : > { %4573 = vmatmul.msk.f32.vlgmr.msrb.gmra.mxu2 %vm1032_vm0, %v5442_v62  ;;  %4576 = vmatmul.msk.f32.vlgmr.msrb.gmra.mxu1 %vm1032_vm0, %v5442_v62 }
 0x180   : > { %4578 = vmatmul.msk.f32.vlgmr.msrb.gmra.mxu3 %vm1032_vm0, %v5442_v62  ;;  %4579 = vmatmul.msk.f32.vlgmr.msrb.gmra.mxu0 %vm1032_vm0, %v5442_v62 }
 0x181   : > { %1298 = vmatpush.msra.mxu2 %v1099_v8  ;;  %1370 = vmatpush.msra.mxu1 %v1115_v9 }
 0x182   : > { %1410 = vmatpush.msra.mxu3 %v1123_v11 }
 0x183   : > { %1387 = vmatpush.msrb.mxu2 %v1122_v12 }
 0x185   : > { %1388 = vmatpush.msrb.mxu2 %v1121_v13 }
 0x187   : > { %1389 = vmatpush.msrb.mxu2 %v1120_v14  ;;  %4580 = vmatmul.msk.f32.vlgmr.msra.gmra.mxu1 %vm1032_vm0, %v5442_v62 }
 0x188   : > { %4577 = vmatmul.msk.f32.vlgmr.msra.gmra.mxu2 %vm1032_vm0, %v5442_v62  ;;  %4582 = vmatmul.msk.f32.vlgmr.msra.gmra.mxu3 %vm1032_vm0, %v5442_v62 }
 0x189   : > { %1390 = vmatpush.msrb.mxu2 %v1119_v15 }
 0x190   : > { %4581 = vmatmul.msk.f32.vlgmr.msrb.gmra.mxu2 %vm1032_vm0, %v5442_v62 }
 0x1f4   : > { %v1188_v17 = vpop.f32.mrf.mxu1 }
 0x1f5   : > { %v1260_v18 = vpop.f32.mrf.mxu0  ;;  %v1189_v31 = vadd.f32 %v4917_v26, %v1188_v17 }
 0x1f6   : > { %v1261_v19 = vadd.f32 %v4918_v16, %v1260_v18 }
 0x1f8   : > { %4583 = vmatpush.xpose.msk.msra.mxu0 %vm1415_vm5, %v1261_v19 }
 0x1fa   : > { %v1168_v22 = vpop.f32.mrf.mxu2 }
 0x1fb   : > { %v1169_v24 = vadd.f32 %v4919_v20, %v1168_v22  ;;  %v1228_v25 = vpop.f32.mrf.mxu3 }
 0x1fc   : > { %v1280_v27 = vpop.f32.mrf.mxu1  ;;  %v1229_v40 = vadd.f32 %v4920_v35, %v1228_v25 }
 0x1fd   : > { %v1281_v28 = vadd.f32 %v4921_v21, %v1280_v27  ;;  %v1352_v29 = vpop.f32.mrf.mxu0  ;;  %4584 = vmatmul.msk.f32.vlgmr.msra.gmra.mxu0 %vm1415_vm5, %v1169_v24 }
 0x1fe   : > { %v1353_v30 = vadd.f32 %v4922_v23, %v1352_v29 }
 0x1ff   : > { %4585 = vmatpush.xpose.msk.msrb.mxu1 %vm1415_vm5, %v1281_v28 }
 0x200   : > { %1642 = vmatpush.msrb.mxu0 %v1353_v30 }
 0x202   : > { %v1208_v34 = vpop.f32.mrf.mxu2  ;;  %4586 = vmatmul.msk.f32.vlgmr.msrb.gmra.mxu1 %vm1415_vm5, %v1189_v31 }
 0x203   : > { %v1320_v36 = vpop.f32.mrf.mxu3  ;;  %v1209_v48 = vadd.f32 %v4923_v43, %v1208_v34 }
 0x204   : > { %v1321_v37 = vadd.f32 %v4924_v32, %v1320_v36  ;;  %v1372_v38 = vpop.f32.mrf.mxu1 }
 0x205   : > { %v1373_v39 = vadd.f32 %v4925_v33, %v1372_v38 }
 0x206   : > { %4589 = vmatpush.xpose.msk.msrb.mxu3 %vm1415_vm5, %v1321_v37 }
 0x207   : > { %1665 = vmatpush.msra.mxu1 %v1373_v39 }
 0x209   : > { %4590 = vmatmul.msk.f32.vlgmr.msrb.gmra.mxu3 %vm1415_vm5, %v1229_v40 }
 0x20b   : > { %v1300_v44 = vpop.f32.mrf.mxu2  ;;  %v1412_v46 = vpop.f32.mrf.mxu3 }
 0x20c   : > { %v1301_v45 = vadd.f32 %v4926_v41, %v1300_v44  ;;  %v1413_v47 = vadd.f32 %v4927_v42, %v1412_v46 }
 0x20e   : > { %4587 = vmatpush.xpose.msk.msra.mxu2 %vm1415_vm5, %v1301_v45  ;;  %1711 = vmatpush.msra.mxu3 %v1413_v47 }
 0x211   : > { %4588 = vmatmul.msk.f32.vlgmr.msra.gmra.mxu2 %vm1415_vm5, %v1209_v48 }
 0x213   : > { %v1392_v50 = vpop.f32.mrf.mxu2 }
 0x214   : > { %v1393_v51 = vadd.f32 %v4928_v49, %v1392_v50 }
 0x216   : > { %1688 = vmatpush.msrb.mxu2 %v1393_v51 }
 0x27a   : > { %v1439_v53 = vpop.f32.mrf.mxu0 }
 0x27b   : > { %v1520_v54 = vmul.f32 0.35355338, %v1439_v53 }
 0x27d   : > { %v1524_v55 = vadd.f32 %v1520_v54, %v1070_v52 }
 0x27f   : > { %v1465_v56 = vpop.f32.mrf.mxu1  ;;  %v1528_v57 = vsel %vm1415_vm5, %v1524_v55, -inf }
 0x280   : > { %v1521_v58 = vmul.f32 0.35355338, %v1465_v56  ;;  %1529 = vmax.xlane.f32.xlu2 %v1528_v57 }
 0x282   : > { %v1525_v59 = vadd.f32 %v1521_v58, %v1070_v52 }
 0x284   : > { %v1531_v60 = vsel %vm1415_vm5, %v1525_v59, -inf }
 0x288   : > { %1532 = vmax.xlane.f32.xlu2 %v1531_v60 }
 0x28c   : > { %v1517_v0 = vpop.f32.mrf.mxu3 }
 0x28d   : > { %v1523_v2 = vmul.f32 0.35355338, %v1517_v0 }
 0x28f   : > { %v1527_v4 = vadd.f32 %v1523_v2, %v1070_v52 }
 0x291   : > { %v1537_v5 = vsel %vm1415_vm5, %v1527_v4, -inf }
 0x294   : > { %v1491_v61 = vpop.f32.mrf.mxu2 }
 0x295   : > { %v1522_v63 = vmul.f32 0.35355338, %v1491_v61 }
 0x297   : > { %v1526_v1 = vadd.f32 %v1522_v63, %v1070_v52 }
 0x299   : > { %v1534_v3 = vsel %vm1415_vm5, %v1526_v1, -inf }
 0x29a   : > { %1535 = vmax.xlane.f32.xlu1 %v1534_v3 }
 0x2a2   : > { %1538 = vmax.xlane.f32.xlu1 %v1537_v5 }
 0x2f3   : > { %v1530_v6 = vpop.xlane.xlu2 %1529 }
 0x2f4   : > { %v1540_v7 = vsub.f32 %v1524_v55, %v1530_v6 }
 0x2f6   : > { %v1544_v8 = vmul.f32 1.442695, %v1540_v7 }
 0x2f8   : > { %4990 = vpow2.f32 %v1544_v8 }
 0x2fb   : > { %v1533_v12 = vpop.xlane.xlu2 %1532 }
 0x2fc   : > { %v1541_v15 = vsub.f32 %v1525_v59, %v1533_v12 }
 0x2fe   : > { %v4991_v9 = vpop.eup %4990  ;;  %v1546_v17 = vmul.f32 1.442695, %v1541_v15 }
 0x2ff   : > { %v1552_v11 = vsel %vm1415_vm5, %v4991_v9, 0.0 }
 0x300   : > { %1553 = vadd.xlane.f32.xlu2 %v1552_v11 }
 0x30d   : > { %v1536_v13 = vpop.xlane.xlu1 %1535 }
 0x30e   : > { %v1542_v14 = vsub.f32 %v1526_v1, %v1536_v13  ;;  %v1131_v13 = vld [vmem:[%s5228_s24] sm:$0xff] }
 0x30f   : > { %1734 = vmatpush.msra.mxu0 %v1131_v13  ;;  %v1884_v13 = vld [vmem:[%s6141_s2 + $0x60] sm:$0xff] }
 0x310   : > { %v1548_v16 = vmul.f32 1.442695, %v1542_v14  ;;  %v1133_v14 = vld [vmem:[%s5228_s24 + $0x10] sm:$0xff] }
 0x311   : > { %1780 = vmatpush.msra.mxu2 %v1133_v14 }
 0x312   : > { %4992 = vpow2.f32 %v1548_v16  ;;  %v1132_v16 = vld [vmem:[%s5228_s24 + $0x8] sm:$0xff] }
 0x313   : > { %4994 = vpow2.f32 %v1546_v17  ;;  %1757 = vmatpush.msrb.mxu1 %v1132_v16  ;;  %v1134_v17 = vld [vmem:[%s5228_s24 + $0x18] sm:$0xff] }
 0x314   : > { %1803 = vmatpush.msrb.mxu3 %v1134_v17 }
 0x315   : > { %v1539_v18 = vpop.xlane.xlu1 %1538 }
 0x316   : > { %v1543_v19 = vsub.f32 %v1527_v4, %v1539_v18 }
 0x318   : > { %v4993_v20 = vpop.eup %4992  ;;  %v1550_v21 = vmul.f32 1.442695, %v1543_v19 }
 0x319   : > { %v1558_v22 = vsel %vm1415_vm5, %v4993_v20, 0.0  ;;  %v5516_v23 = vpop.eup %4994 }
 0x31a   : > { %4996 = vpow2.f32 %v1550_v21  ;;  %1559 = vadd.xlane.f32.xlu0 %v1558_v22  ;;  %v1555_v26 = vsel %vm1415_vm5, %v5516_v23, 0.0 }
 0x320   : > { %v5518_v24 = vpop.eup %4996 }
 0x321   : > { %v1561_v25 = vsel %vm1415_vm5, %v5518_v24, 0.0 }
 0x322   : > { %1562 = vadd.xlane.f32.xlu1 %v1561_v25  ;;  %1556 = vadd.xlane.f32.xlu0 %v1555_v26 }
 0x373   : > { %v1554_v27 = vpop.xlane.xlu2 %1553 }
 0x374   : > { %4998 = vrcp.f32 %v1554_v27  ;;  %v1575_v31 = vand.u32 2147483648, %v1554_v27  ;;  %v1573_v33 = vand.u32 2147483647, %v1554_v27  ;;  %vm1569_vm7 = vweird.f32 %v1554_v27 }
 0x376   : > { %v1576_v35 = vor.u32 1.1754944e-38, %v1575_v31  ;;  %vm1574_vm9 = vcmp.eq.f32.partialorder %v1573_v33, 8.507059e+37 }
 0x37a   : > { %v4999_v28 = vpop.eup %4998 }
 0x37b   : > { %v1565_v29 = vmul.f32 %v4999_v28, %v1554_v27  ;;  %vm1570_vm6 = vweird.f32 %v4999_v28 }
 0x37c   : > { %vm1571_vm8 = vmor %vm1569_vm7, %vm1570_vm6 }
 0x37d   : > { %v1566_v30 = vsub.f32 1.0, %v1565_v29 }
 0x37f   : > { %v1567_v32 = vmul.f32 %v4999_v28, %v1566_v30  ;;  %v4929_v30 = vld [vmem:[%s5233_s30] ss:$0 sm:$0xff] }
 0x381   : > { %v1568_v34 = vadd.f32 %v4999_v28, %v1567_v32 }
 0x383   : > { %v1572_v36 = vsel %vm1571_vm8, %v4999_v28, %v1568_v34 }
 0x384   : > { %v1577_v37 = vsel %vm1574_vm9, %v1576_v35, %v1572_v36 }
 0x385   : > { %v1578_v38 = vmul.f32 %v4991_v9, %v1577_v37 }
 0x387   : > { %4591 = vmatmul.msk.f32.vlgmr.msrb.gmra.mxu0 %vm1415_vm5, %v1578_v38 }
 0x38d   : > { %v1560_v39 = vpop.xlane.xlu0 %1559 }
 0x38e   : > { %5000 = vrcp.f32 %v1560_v39  ;;  %v1605_v45 = vand.u32 2147483648, %v1560_v39  ;;  %v1603_v47 = vand.u32 2147483647, %v1560_v39  ;;  %vm1599_vm11 = vweird.f32 %v1560_v39 }
 0x390   : > { %v1606_v50 = vor.u32 1.1754944e-38, %v1605_v45  ;;  %vm1604_vm13 = vcmp.eq.f32.partialorder %v1603_v47, 8.507059e+37  ;;  %v1854_v45 = vld [vmem:[%s6124_s6 + $0x10] sm:$0xff] }
 0x391   : > { %v1862_v47 = vld [vmem:[%s6124_s6 + $0x50] sm:$0xff] }
 0x394   : > { %v5001_v40 = vpop.eup %5000 }
 0x395   : > { %v1595_v41 = vmul.f32 %v5001_v40, %v1560_v39  ;;  %v1563_v42 = vpop.xlane.xlu1 %1562  ;;  %v1557_v43 = vpop.xlane.xlu0 %1556  ;;  %vm1600_vm10 = vweird.f32 %v5001_v40 }
 0x396   : > { %5002 = vrcp.f32 %v1563_v42  ;;  %vm1601_vm12 = vmor %vm1599_vm11, %vm1600_vm10  ;;  %v1620_v58 = vand.u32 2147483648, %v1563_v42  ;;  %v1618_v61 = vand.u32 2147483647, %v1563_v42  ;;  %v1590_v63 = vand.u32 2147483648, %v1557_v43 }
 0x397   : > { %v1596_v44 = vsub.f32 1.0, %v1595_v41  ;;  %5004 = vrcp.f32 %v1557_v43  ;;  %v1588_v1 = vand.u32 2147483647, %v1557_v43  ;;  %vm1614_vm1 = vweird.f32 %v1563_v42  ;;  %v1855_v41 = vld [vmem:[%s6124_s6 + $0x18] sm:$0xff] }
 0x398   : > { %v1621_v3 = vor.u32 1.1754944e-38, %v1620_v58  ;;  %vm1584_vm3 = vweird.f32 %v1557_v43  ;;  %vm1619_vm4 = vcmp.eq.f32.partialorder %v1618_v61, 8.507059e+37  ;;  %v1591_v6 = vor.u32 1.1754944e-38, %v1590_v63  ;;  %1944 = vmatpush.msrb.mxu0 %v1855_v41  ;;  %v1879_v58 = vld [vmem:[%s6141_s2 + $0x38] sm:$0xff]  ;;  %v1874_v61 = vld [vmem:[%s6141_s2 + $0x10] sm:$0xff]  ;;  %v1904_v41 = vld [vmem:[%s6144_s5 + $0x60] sm:$0xff] }
 0x399   : > { %v1597_v46 = vmul.f32 %v5001_v40, %v1596_v44  ;;  %vm1589_vm7 = vcmp.eq.f32.partialorder %v1588_v1, 8.507059e+37  ;;  %v1867_v44 = vld [vmem:[%s6124_s6 + $0x78] sm:$0xff]  ;;  %v1878_v63 = vld [vmem:[%s6141_s2 + $0x30] sm:$0xff] }
 0x39a   : > { %1945 = vmatpush.msrb.mxu0 %v1854_v45  ;;  %v1882_v1 = vld [vmem:[%s6141_s2 + $0x50] sm:$0xff]  ;;  %v4937_v45 = vld [vmem:[%s6145_s9 + $0x1] ss:$0 sm:$0xff] }
 0x39b   : > { %v1598_v48 = vadd.f32 %v5001_v40, %v1597_v46  ;;  %v1858_v46 = vld [vmem:[%s6124_s6 + $0x30] sm:$0xff] }
 0x39c   : > { %v5003_v49 = vpop.eup %5002 }
 0x39d   : > { %v5005_v51 = vpop.eup %5004  ;;  %v1602_v52 = vsel %vm1601_vm12, %v5001_v40, %v1598_v48  ;;  %v1610_v53 = vmul.f32 %v5003_v49, %v1563_v42  ;;  %vm1615_vm14 = vweird.f32 %v5003_v49  ;;  %v1859_v42 = vld [vmem:[%s6124_s6 + $0x38] sm:$0xff]  ;;  %v1866_v48 = vld [vmem:[%s6124_s6 + $0x70] sm:$0xff] }
 0x39e   : > { %v1607_v54 = vsel %vm1604_vm13, %v1606_v50, %v1602_v52  ;;  %v1580_v55 = vmul.f32 %v5005_v51, %v1557_v43  ;;  %vm1585_vm15 = vweird.f32 %v5005_v51  ;;  %vm1616_vm2 = vmor %vm1614_vm1, %vm1615_vm14  ;;  %v1863_v43 = vld [vmem:[%s6124_s6 + $0x58] sm:$0xff]  ;;  %v1857_v50 = vld [vmem:[%s6124_s6 + $0x28] sm:$0xff] }
 0x39f   : > { %v1611_v56 = vsub.f32 1.0, %v1610_v53  ;;  %v1608_v57 = vmul.f32 %v4993_v20, %v1607_v54  ;;  %vm1586_vm6 = vmor %vm1584_vm3, %vm1585_vm15  ;;  %v1865_v52 = vld [vmem:[%s6124_s6 + $0x68] sm:$0xff]  ;;  %v1852_v53 = vld [vmem:[%s6124_s6] sm:$0xff] }
 0x3a0   : > { %v1581_v59 = vsub.f32 1.0, %v1580_v55  ;;  %v1856_v54 = vld [vmem:[%s6124_s6 + $0x20] sm:$0xff] }
 0x3a1   : > { %v1612_v60 = vmul.f32 %v5003_v49, %v1611_v56  ;;  %4593 = vmatmul.msk.f32.vlgmr.msrb.gmra.mxu2 %vm1415_vm5, %v1608_v57  ;;  %v1860_v55 = vld [vmem:[%s6124_s6 + $0x40] sm:$0xff]  ;;  %v1875_v57 = vld [vmem:[%s6141_s2 + $0x18] sm:$0xff] }
 0x3a2   : > { %v1582_v0 = vmul.f32 %v5005_v51, %v1581_v59  ;;  %1984 = vmatpush.msrb.mxu2 %v1863_v43  ;;  %v1864_v56 = vld [vmem:[%s6124_s6 + $0x60] sm:$0xff]  ;;  %v1883_v59 = vld [vmem:[%s6141_s2 + $0x58] sm:$0xff] }
 0x3a3   : > { %v1613_v2 = vadd.f32 %v5003_v49, %v1612_v60  ;;  %v1887_v60 = vld [vmem:[%s6141_s2 + $0x78] sm:$0xff] }
 0x3a4   : > { %v1583_v4 = vadd.f32 %v5005_v51, %v1582_v0  ;;  %1985 = vmatpush.msrb.mxu2 %v1862_v47 }
 0x3a5   : > { %v1617_v5 = vsel %vm1616_vm2, %v5003_v49, %v1613_v2  ;;  %v1853_v49 = vld [vmem:[%s6124_s6 + $0x8] sm:$0xff]  ;;  %v1886_v2 = vld [vmem:[%s6141_s2 + $0x70] sm:$0xff] }
 0x3a6   : > { %v1622_v7 = vsel %vm1619_vm4, %v1621_v3, %v1617_v5  ;;  %v1587_v8 = vsel %vm1586_vm6, %v5005_v51, %v1583_v4  ;;  %v1861_v51 = vld [vmem:[%s6124_s6 + $0x48] sm:$0xff]  ;;  %1946 = vmatpush.msrb.mxu0 %v1853_v49  ;;  %v4933_v49 = vld [vmem:[%s6146_s13 + $0x1] ss:$0 sm:$0xff] }
 0x3a7   : > { %v1592_v9 = vsel %vm1589_vm7, %v1591_v6, %v1587_v8  ;;  %v1623_v11 = vmul.f32 %v5518_v24, %v1622_v7  ;;  %1986 = vmatpush.msrb.mxu2 %v1861_v51  ;;  %v1873_v4 = vld [vmem:[%s6141_s2 + $0x8] sm:$0xff] }
 0x3a8   : > { %v1593_v12 = vmul.f32 %v5516_v23, %v1592_v9  ;;  %1947 = vmatpush.msrb.mxu0 %v1852_v53  ;;  %v1877_v5 = vld [vmem:[%s6141_s2 + $0x28] sm:$0xff]  ;;  %v1872_v9 = vld [vmem:[%s6141_s2] sm:$0xff] }
 0x3a9   : > { %4594 = vmatmul.msk.f32.vlgmr.msra.gmra.mxu3 %vm1415_vm5, %v1623_v11  ;;  %1987 = vmatpush.msrb.mxu2 %v1860_v55  ;;  %v1881_v6 = vld [vmem:[%s6141_s2 + $0x48] sm:$0xff]  ;;  %v1876_v11 = vld [vmem:[%s6141_s2 + $0x20] sm:$0xff] }
 0x3aa   : > { %4592 = vmatmul.msk.f32.vlgmr.msra.gmra.mxu1 %vm1415_vm5, %v1593_v12  ;;  %2004 = vmatpush.msra.mxu3 %v1867_v44  ;;  %v1885_v7 = vld [vmem:[%s6141_s2 + $0x68] sm:$0xff]  ;;  %v1880_v12 = vld [vmem:[%s6141_s2 + $0x40] sm:$0xff] }
 0x3ab   : > { %1964 = vmatpush.msra.mxu1 %v1859_v42  ;;  %v4936_v44 = vld [vmem:[%s6145_s9] ss:$0 sm:$0xff] }
 0x3ac   : > { %2005 = vmatpush.msra.mxu3 %v1866_v48  ;;  %v4932_v48 = vld [vmem:[%s6146_s13] ss:$0 sm:$0xff] }
 0x3ad   : > { %1965 = vmatpush.msra.mxu1 %v1858_v46 }
 0x3ae   : > { %2006 = vmatpush.msra.mxu3 %v1865_v52 }
 0x3af   : > { %1966 = vmatpush.msra.mxu1 %v1857_v50 }
 0x3b0   : > { %2007 = vmatpush.msra.mxu3 %v1864_v56  ;;  %v4938_v56 = vld [vmem:[%s6145_s9 + $0x2] ss:$0 sm:$0xff] }
 0x3b1   : > { %1967 = vmatpush.msra.mxu1 %v1856_v54 }
 0x404   : > { %v1644_v15 = vpop.f32.mrf.mxu0 }
 0x405   : > { %4595 = vmatmul.msk.f32.vlgmr.msra.gmra.mxu0 %vm1415_vm5, %v1644_v15 }
 0x406   : > { %2036 = vmatpush.msra.mxu0 %v1875_v57  ;;  %v4939_v57 = vld [vmem:[%s6145_s9 + $0x3] ss:$0 sm:$0xff] }
 0x408   : > { %2037 = vmatpush.msra.mxu0 %v1874_v61  ;;  %v4935_v61 = vld [vmem:[%s6146_s13 + $0x3] ss:$0 sm:$0xff] }
 0x40a   : > { %2038 = vmatpush.msra.mxu0 %v1873_v4 }
 0x40c   : > { %2039 = vmatpush.msra.mxu0 %v1872_v9  ;;  %v4942_v9 = vld [vmem:[%s6147_s17 + $0x2] ss:$0 sm:$0xff] }
 0x424   : > { %v1690_v18 = vpop.f32.mrf.mxu2 }
 0x425   : > { %4597 = vmatmul.msk.f32.vlgmr.msra.gmra.mxu2 %vm1415_vm5, %v1690_v18 }
 0x426   : > { %2076 = vmatpush.msra.mxu2 %v1883_v59  ;;  %v4941_v59 = vld [vmem:[%s6147_s17 + $0x1] ss:$0 sm:$0xff] }
 0x427   : > { %v1667_v19 = vpop.f32.mrf.mxu1 }
 0x428   : > { %4596 = vmatmul.msk.f32.vlgmr.msrb.gmra.mxu1 %vm1415_vm5, %v1667_v19  ;;  %2077 = vmatpush.msra.mxu2 %v1882_v1 }
 0x429   : > { %2056 = vmatpush.msrb.mxu1 %v1879_v58  ;;  %v4940_v58 = vld [vmem:[%s6147_s17] ss:$0 sm:$0xff] }
 0x42a   : > { %2078 = vmatpush.msra.mxu2 %v1881_v6 }
 0x42b   : > { %2057 = vmatpush.msrb.mxu1 %v1878_v63 }
 0x42c   : > { %v1713_v20 = vpop.f32.mrf.mxu3  ;;  %2079 = vmatpush.msra.mxu2 %v1880_v12 }
 0x42d   : > { %4598 = vmatmul.msk.f32.vlgmr.msrb.gmra.mxu3 %vm1415_vm5, %v1713_v20  ;;  %2058 = vmatpush.msrb.mxu1 %v1877_v5  ;;  %v4930_v20 = vld [vmem:[%s6142_s16] ss:$0 sm:$0xff] }
 0x42e   : > { %2096 = vmatpush.msrb.mxu3 %v1887_v60  ;;  %v4934_v60 = vld [vmem:[%s6146_s13 + $0x2] ss:$0 sm:$0xff] }
 0x42f   : > { %2059 = vmatpush.msrb.mxu1 %v1876_v11  ;;  %v4943_v11 = vld [vmem:[%s6147_s17 + $0x3] ss:$0 sm:$0xff] }
 0x430   : > { %2097 = vmatpush.msrb.mxu3 %v1886_v2 }
 0x432   : > { %2098 = vmatpush.msrb.mxu3 %v1885_v7 }
 0x434   : > { %2099 = vmatpush.msrb.mxu3 %v1884_v13 }
 0x482   : > { %v1736_v22 = vpop.f32.mrf.mxu0 }
 0x483   : > { %v1808_v25 = vsel %vm1032_vm0, %v1736_v22, 0.0 }
 0x4a5   : > { %v1759_v21 = vpop.f32.mrf.mxu1 }
 0x4a6   : > { %v1809_v24 = vsel %vm1032_vm0, %v1759_v21, 0.0 }
 0x4a7   : > { %v1810_v27 = vadd.f32 %v1809_v24, %v1808_v25 }
 0x4a8   : > { %v1782_v23 = vpop.f32.mrf.mxu2 }
 0x4a9   : > { %v1811_v26 = vsel %vm1032_vm0, %v1782_v23, 0.0  ;;  %v4931_v23 = vld [vmem:[%s6143_s22] ss:$0 sm:$0xff] }
 0x4aa   : > { %v1812_v28 = vadd.f32 %v1811_v26, %v1810_v27  ;;  %v1895_v26 = vld [vmem:[%s6144_s5 + $0x18] sm:$0xff] }
 0x4ab   : > { %v1899_v27 = vld [vmem:[%s6144_s5 + $0x38] sm:$0xff] }
 0x4b0   : > { %v1805_v29 = vpop.f32.mrf.mxu3 }
 0x4b1   : > { %v1813_v31 = vsel %vm1032_vm0, %v1805_v29, 0.0  ;;  %v1907_v29 = vld [vmem:[%s6144_s5 + $0x78] sm:$0xff] }
 0x4b2   : > { %v1814_v32 = vadd.f32 %v1813_v31, %v1812_v28  ;;  %v1903_v28 = vld [vmem:[%s6144_s5 + $0x58] sm:$0xff]  ;;  %v1898_v31 = vld [vmem:[%s6144_s5 + $0x30] sm:$0xff] }
 0x4b4   : > { %v1818_v33 = vadd.f32 %v4929_v30, %v1814_v32  ;;  %v1894_v30 = vld [vmem:[%s6144_s5 + $0x10] sm:$0xff] }
 0x4b5   : > { %v1902_v32 = vld [vmem:[%s6144_s5 + $0x50] sm:$0xff] }
 0x4b6   : > { %v1819_v34 = vadd.f32 %v1818_v33, %v5442_v62  ;;  %v1906_v33 = vld [vmem:[%s6144_s5 + $0x70] sm:$0xff] }
 0x4b8   : > { %v1822_v35 = vsel %vm1032_vm0, %v1819_v34, 0.0 }
 0x4b9   : > { %1823 = vadd.xlane.f32.xlu1 %v1822_v35  ;;  %v1897_v35 = vld [vmem:[%s6144_s5 + $0x28] sm:$0xff] }
 0x52c   : > { %v1824_v36 = vpop.xlane.xlu1 %1823 }
 0x52d   : > { %v1825_v37 = vmul.f32 %v1824_v36, %v5398_v10  ;;  %v1901_v36 = vld [vmem:[%s6144_s5 + $0x48] sm:$0xff] }
 0x52f   : > { %v5546_v38 = vsub.f32 %v1819_v34, %v1825_v37  ;;  %v1893_v34 = vld [vmem:[%s6144_s5 + $0x8] sm:$0xff] }
 0x530   : > { %v1905_v37 = vld [vmem:[%s6144_s5 + $0x68] sm:$0xff] }
 0x531   : > { %v1827_v39 = vmul.f32 %v5546_v38, %v5546_v38 }
 0x533   : > { %v1828_v40 = vsel %vm1032_vm0, %v1827_v39, 0.0  ;;  %v1896_v39 = vld [vmem:[%s6144_s5 + $0x20] sm:$0xff] }
 0x534   : > { %1829 = vadd.xlane.f32.xlu2 %v1828_v40  ;;  %v1900_v40 = vld [vmem:[%s6144_s5 + $0x40] sm:$0xff] }
 0x5a7   : > { %v1830_v0 = vpop.xlane.xlu2 %1829 }
 0x5a8   : > { %v1831_v3 = vmul.f32 %v1830_v0, %v5398_v10 }
 0x5aa   : > { %v1832_v8 = vadd.f32 1e-05, %v1831_v3 }
 0x5ac   : > { %5006 = vrsqrt.f32 %v1832_v8  ;;  %vm1839_vm9 = vweird.f32 %v1832_v8 }
 0x5b2   : > { %v5007_v14 = vpop.eup %5006 }
 0x5b3   : > { %v1834_v15 = vmul.f32 %v5007_v14, %v1832_v8  ;;  %vm1840_vm8 = vweird.f32 %v5007_v14 }
 0x5b4   : > { %vm1841_vm10 = vmor %vm1839_vm9, %vm1840_vm8 }
 0x5b5   : > { %v1835_v16 = vmul.f32 %v5007_v14, %v1834_v15 }
 0x5b7   : > { %v1836_v17 = vmul.f32 0.5, %v1835_v16 }
 0x5b9   : > { %v1837_v18 = vsub.f32 1.5, %v1836_v17 }
 0x5bb   : > { %v1838_v19 = vmul.f32 %v5007_v14, %v1837_v18 }
 0x5bd   : > { %v1842_v21 = vsel %vm1841_vm10, %v5007_v14, %v1838_v19 }
 0x5be   : > { %v1843_v22 = vmul.f32 %v1842_v21, %v5546_v38  ;;  %v1892_v38 = vld [vmem:[%s6144_s5] sm:$0xff] }
 0x5c0   : > { %v1847_v24 = vmul.f32 %v4930_v20, %v1843_v22 }
 0x5c2   : > { %v5587_v25 = vadd.f32 %v4931_v23, %v1847_v24 }
 0x5c4   : > { %4599 = vmatmul.msk.f32.vlgmr.msrb.gmra.mxu0 %vm1032_vm0, %v5587_v25  ;;  %4600 = vmatmul.msk.f32.vlgmr.msra.gmra.mxu1 %vm1032_vm0, %v5587_v25 }
 0x5c5   : > { %4601 = vmatmul.msk.f32.vlgmr.msrb.gmra.mxu2 %vm1032_vm0, %v5587_v25  ;;  %4602 = vmatmul.msk.f32.vlgmr.msra.gmra.mxu3 %vm1032_vm0, %v5587_v25 }
 0x5c6   : > { %2128 = vmatpush.msrb.mxu0 %v1895_v26  ;;  %2148 = vmatpush.msra.mxu1 %v1899_v27 }
 0x5c7   : > { %2168 = vmatpush.msrb.mxu2 %v1903_v28  ;;  %2188 = vmatpush.msra.mxu3 %v1907_v29 }
 0x5c8   : > { %2129 = vmatpush.msrb.mxu0 %v1894_v30  ;;  %2149 = vmatpush.msra.mxu1 %v1898_v31 }
 0x5c9   : > { %2169 = vmatpush.msrb.mxu2 %v1902_v32  ;;  %2189 = vmatpush.msra.mxu3 %v1906_v33 }
 0x5ca   : > { %2130 = vmatpush.msrb.mxu0 %v1893_v34  ;;  %2150 = vmatpush.msra.mxu1 %v1897_v35 }
 0x5cb   : > { %2170 = vmatpush.msrb.mxu2 %v1901_v36  ;;  %2190 = vmatpush.msra.mxu3 %v1905_v37 }
 0x5cc   : > { %4603 = vmatmul.msk.f32.vlgmr.msra.gmra.mxu0 %vm1032_vm0, %v5442_v62  ;;  %4604 = vmatmul.msk.f32.vlgmr.msrb.gmra.mxu1 %vm1032_vm0, %v5442_v62 }
 0x5cd   : > { %4605 = vmatmul.msk.f32.vlgmr.msra.gmra.mxu2 %vm1032_vm0, %v5442_v62  ;;  %4606 = vmatmul.msk.f32.vlgmr.msrb.gmra.mxu3 %vm1032_vm0, %v5442_v62 }
 0x5ce   : > { %2131 = vmatpush.msrb.mxu0 %v1892_v38  ;;  %2151 = vmatpush.msra.mxu1 %v1896_v39 }
 0x5cf   : > { %2171 = vmatpush.msrb.mxu2 %v1900_v40  ;;  %2191 = vmatpush.msra.mxu3 %v1904_v41 }
 0x5d4   : > { %4607 = vmatmul.msk.f32.vlgmr.msrb.gmra.mxu0 %vm1032_vm0, %v5442_v62  ;;  %4608 = vmatmul.msk.f32.vlgmr.msra.gmra.mxu1 %vm1032_vm0, %v5442_v62 }
 0x5d5   : > { %4609 = vmatmul.msk.f32.vlgmr.msrb.gmra.mxu2 %vm1032_vm0, %v5442_v62  ;;  %4610 = vmatmul.msk.f32.vlgmr.msra.gmra.mxu3 %vm1032_vm0, %v5442_v62 }
 0x641   : > { %v1949_v42 = vpop.f32.mrf.mxu0  ;;  %v1969_v43 = vpop.f32.mrf.mxu1 }
 0x642   : > { %v1950_v54 = vadd.f32 %v4932_v48, %v1949_v42  ;;  %v1970_v55 = vadd.f32 %v4933_v49, %v1969_v43 }
 0x648   : > { %v1989_v46 = vpop.f32.mrf.mxu2  ;;  %v2009_v47 = vpop.f32.mrf.mxu3 }
 0x649   : > { %v2041_v50 = vpop.f32.mrf.mxu0  ;;  %v2061_v51 = vpop.f32.mrf.mxu1  ;;  %v1990_v7 = vadd.f32 %v4934_v60, %v1989_v46  ;;  %v2010_v8 = vadd.f32 %v4935_v61, %v2009_v47 }
 0x64a   : > { %v2042_v52 = vadd.f32 %v4936_v44, %v2041_v50  ;;  %v2062_v53 = vadd.f32 %v4937_v45, %v2061_v51 }
 0x64c   : > { %4611 = vmatpush.xpose.msk.msra.mxu0 %vm1415_vm5, %v2042_v52  ;;  %4613 = vmatpush.xpose.msk.msrb.mxu1 %vm1415_vm5, %v2062_v53 }
 0x64f   : > { %4612 = vmatmul.msk.f32.vlgmr.msra.gmra.mxu0 %vm1415_vm5, %v1950_v54  ;;  %4614 = vmatmul.msk.f32.vlgmr.msrb.gmra.mxu1 %vm1415_vm5, %v1970_v55 }
 0x650   : > { %v2081_v63 = vpop.f32.mrf.mxu2  ;;  %v2101_v0 = vpop.f32.mrf.mxu3 }
 0x651   : > { %v2082_v1 = vadd.f32 %v4938_v56, %v2081_v63  ;;  %v2102_v2 = vadd.f32 %v4939_v57, %v2101_v0  ;;  %v2133_v3 = vpop.f32.mrf.mxu0  ;;  %v2153_v4 = vpop.f32.mrf.mxu1 }
 0x652   : > { %v2134_v5 = vadd.f32 %v4940_v58, %v2133_v3  ;;  %v2154_v6 = vadd.f32 %v4941_v59, %v2153_v4 }
 0x653   : > { %4615 = vmatpush.xpose.msk.msra.mxu2 %vm1415_vm5, %v2082_v1  ;;  %4617 = vmatpush.xpose.msk.msrb.mxu3 %vm1415_vm5, %v2102_v2 }
 0x654   : > { %2418 = vmatpush.msrb.mxu0 %v2134_v5  ;;  %2441 = vmatpush.msra.mxu1 %v2154_v6 }
 0x656   : > { %4616 = vmatmul.msk.f32.vlgmr.msra.gmra.mxu2 %vm1415_vm5, %v1990_v7  ;;  %4618 = vmatmul.msk.f32.vlgmr.msrb.gmra.mxu3 %vm1415_vm5, %v2010_v8 }
 0x658   : > { %v2173_v12 = vpop.f32.mrf.mxu2  ;;  %v2193_v13 = vpop.f32.mrf.mxu3 }
 0x659   : > { %v2174_v14 = vadd.f32 %v4942_v9, %v2173_v12  ;;  %v2194_v15 = vadd.f32 %v4943_v11, %v2193_v13 }
 0x65b   : > { %2464 = vmatpush.msrb.mxu2 %v2174_v14  ;;  %2487 = vmatpush.msra.mxu3 %v2194_v15 }
 0x6cc   : > { %v2219_v16 = vpop.f32.mrf.mxu0  ;;  %v2245_v26 = vpop.f32.mrf.mxu1 }
 0x6cd   : > { %v2300_v17 = vmul.f32 0.35355338, %v2219_v16  ;;  %v2301_v27 = vmul.f32 0.35355338, %v2245_v26 }
 0x6cf   : > { %v2304_v18 = vsel %vm1415_vm5, %v2300_v17, -inf  ;;  %v2307_v28 = vsel %vm1415_vm5, %v2301_v27, -inf }
 0x6d0   : > { %2305 = vmax.xlane.f32.xlu2 %v2304_v18 }
 0x6d9   : > { %v2271_v19 = vpop.f32.mrf.mxu2  ;;  %v2297_v20 = vpop.f32.mrf.mxu3 }
 0x6da   : > { %v2302_v21 = vmul.f32 0.35355338, %v2271_v19  ;;  %v2303_v22 = vmul.f32 0.35355338, %v2297_v20 }
 0x6dc   : > { %v2313_v23 = vsel %vm1415_vm5, %v2303_v22, -inf  ;;  %v2310_v24 = vsel %vm1415_vm5, %v2302_v21, -inf }
 0x6dd   : > { %2314 = vmax.xlane.f32.xlu1 %v2313_v23  ;;  %2311 = vmax.xlane.f32.xlu0 %v2310_v24 }
 0x6e5   : > { %2308 = vmax.xlane.f32.xlu0 %v2307_v28 }
 0x743   : > { %v2306_v29 = vpop.xlane.xlu2 %2305 }
 0x744   : > { %v2316_v30 = vsub.f32 %v2300_v17, %v2306_v29 }
 0x746   : > { %v2320_v31 = vmul.f32 1.442695, %v2316_v30 }
 0x748   : > { %5008 = vpow2.f32 %v2320_v31 }
 0x74e   : > { %v5009_v32 = vpop.eup %5008 }
 0x74f   : > { %v2328_v33 = vsel %vm1415_vm5, %v5009_v32, 0.0 }
 0x750   : > { %v2315_v34 = vpop.xlane.xlu1 %2314  ;;  %v2312_v35 = vpop.xlane.xlu0 %2311  ;;  %2329 = vadd.xlane.f32.xlu0 %v2328_v33 }
 0x751   : > { %v2319_v36 = vsub.f32 %v2303_v22, %v2315_v34  ;;  %v2318_v37 = vsub.f32 %v2302_v21, %v2312_v35 }
 0x753   : > { %v2326_v38 = vmul.f32 1.442695, %v2319_v36  ;;  %v2324_v39 = vmul.f32 1.442695, %v2318_v37  ;;  %v1912_v36 = vld [vmem:[%s6148_s21] sm:$0xff]  ;;  %v1914_v37 = vld [vmem:[%s6148_s21 + $0x10] sm:$0xff] }
 0x754   : > { %2510 = vmatpush.msra.mxu0 %v1912_v36  ;;  %2556 = vmatpush.msra.mxu2 %v1914_v37 }
 0x755   : > { %5010 = vpow2.f32 %v2326_v38  ;;  %v1915_v38 = vld [vmem:[%s6148_s21 + $0x18] sm:$0xff] }
 0x756   : > { %5012 = vpow2.f32 %v2324_v39  ;;  %2579 = vmatpush.msrb.mxu3 %v1915_v38  ;;  %v1913_v39 = vld [vmem:[%s6148_s21 + $0x8] sm:$0xff] }
 0x757   : > { %2533 = vmatpush.msrb.mxu1 %v1913_v39 }
 0x758   : > { %v2309_v40 = vpop.xlane.xlu0 %2308 }
 0x759   : > { %v2317_v41 = vsub.f32 %v2301_v27, %v2309_v40 }
 0x75b   : > { %v5654_v42 = vpop.eup %5010  ;;  %v2322_v43 = vmul.f32 1.442695, %v2317_v41 }
 0x75c   : > { %v5656_v44 = vpop.eup %5012  ;;  %v2337_v45 = vsel %vm1415_vm5, %v5654_v42, 0.0 }
 0x75d   : > { %5014 = vpow2.f32 %v2322_v43  ;;  %v2334_v46 = vsel %vm1415_vm5, %v5656_v44, 0.0  ;;  %2338 = vadd.xlane.f32.xlu2 %v2337_v45 }
 0x75e   : > { %2335 = vadd.xlane.f32.xlu1 %v2334_v46 }
 0x763   : > { %v5662_v47 = vpop.eup %5014 }
 0x764   : > { %v2331_v48 = vsel %vm1415_vm5, %v5662_v47, 0.0 }
 0x766   : > { %2332 = vadd.xlane.f32.xlu1 %v2331_v48 }
 0x7c3   : > { %v2330_v49 = vpop.xlane.xlu0 %2329 }
 0x7c4   : > { %5016 = vrcp.f32 %v2330_v49  ;;  %v2351_v53 = vand.u32 2147483648, %v2330_v49  ;;  %v2349_v55 = vand.u32 2147483647, %v2330_v49  ;;  %vm2345_vm12 = vweird.f32 %v2330_v49 }
 0x7c6   : > { %v2352_v59 = vor.u32 1.1754944e-38, %v2351_v53  ;;  %vm2350_vm14 = vcmp.eq.f32.partialorder %v2349_v55, 8.507059e+37  ;;  %v4944_v53 = vld [vmem:[%s6149_s26] ss:$0 sm:$0xff] }
 0x7ca   : > { %v5017_v50 = vpop.eup %5016 }
 0x7cb   : > { %v2341_v51 = vmul.f32 %v5017_v50, %v2330_v49  ;;  %vm2346_vm11 = vweird.f32 %v5017_v50 }
 0x7cc   : > { %vm2347_vm13 = vmor %vm2345_vm12, %vm2346_vm11 }
 0x7cd   : > { %v2342_v52 = vsub.f32 1.0, %v2341_v51 }
 0x7cf   : > { %v2343_v54 = vmul.f32 %v5017_v50, %v2342_v52 }
 0x7d0   : > { %v2339_v56 = vpop.xlane.xlu2 %2338 }
 0x7d1   : > { %v2344_v57 = vadd.f32 %v5017_v50, %v2343_v54  ;;  %v2336_v58 = vpop.xlane.xlu1 %2335  ;;  %5018 = vrcp.f32 %v2339_v56  ;;  %v2396_v7 = vand.u32 2147483648, %v2339_v56  ;;  %v2394_v11 = vand.u32 2147483647, %v2339_v56 }
 0x7d2   : > { %5020 = vrcp.f32 %v2336_v58  ;;  %v2381_v8 = vand.u32 2147483648, %v2336_v58  ;;  %v2379_v13 = vand.u32 2147483647, %v2336_v58  ;;  %vm2390_vm2 = vweird.f32 %v2339_v56 }
 0x7d3   : > { %v2348_v60 = vsel %vm2347_vm13, %v5017_v50, %v2344_v57  ;;  %vm2375_vm3 = vweird.f32 %v2336_v58  ;;  %v2397_v16 = vor.u32 1.1754944e-38, %v2396_v7  ;;  %vm2395_vm7 = vcmp.eq.f32.partialorder %v2394_v11, 8.507059e+37 }
 0x7d4   : > { %v2353_v61 = vsel %vm2350_vm14, %v2352_v59, %v2348_v60  ;;  %v2382_v18 = vor.u32 1.1754944e-38, %v2381_v8  ;;  %vm2380_vm8 = vcmp.eq.f32.partialorder %v2379_v13, 8.507059e+37 }
 0x7d5   : > { %v2354_v63 = vmul.f32 %v5009_v32, %v2353_v61 }
 0x7d7   : > { %v5019_v0 = vpop.eup %5018  ;;  %4619 = vmatmul.msk.f32.vlgmr.msrb.gmra.mxu0 %vm1415_vm5, %v2354_v63 }
 0x7d8   : > { %v5021_v1 = vpop.eup %5020  ;;  %v2386_v2 = vmul.f32 %v5019_v0, %v2339_v56  ;;  %vm2391_vm15 = vweird.f32 %v5019_v0 }
 0x7d9   : > { %v2371_v3 = vmul.f32 %v5021_v1, %v2336_v58  ;;  %v2333_v4 = vpop.xlane.xlu1 %2332  ;;  %vm2376_vm1 = vweird.f32 %v5021_v1  ;;  %vm2392_vm4 = vmor %vm2390_vm2, %vm2391_vm15 }
 0x7da   : > { %v2387_v5 = vsub.f32 1.0, %v2386_v2  ;;  %5022 = vrcp.f32 %v2333_v4  ;;  %vm2377_vm6 = vmor %vm2375_vm3, %vm2376_vm1  ;;  %v2366_v28 = vand.u32 2147483648, %v2333_v4  ;;  %v2364_v30 = vand.u32 2147483647, %v2333_v4  ;;  %v2630_v2 = vld [vmem:[%s6151_s18 + $0x10] sm:$0xff] }
 0x7db   : > { %v2372_v6 = vsub.f32 1.0, %v2371_v3  ;;  %vm2360_vm10 = vweird.f32 %v2333_v4  ;;  %v2628_v3 = vld [vmem:[%s6151_s18] sm:$0xff]  ;;  %vm2672_vm1 = vcmask 523264  }
 0x7dc   : > { %v2388_v9 = vmul.f32 %v5019_v0, %v2387_v5  ;;  %v2367_v32 = vor.u32 1.1754944e-38, %v2366_v28  ;;  %vm2365_vm12 = vcmp.eq.f32.partialorder %v2364_v30, 8.507059e+37  ;;  %v2666_v5 = vld [vmem:[%s6152_s1 + $0x30] sm:$0xff]  ;;  %v2660_v28 = vld [vmem:[%s6152_s1] sm:$0xff] }
 0x7dd   : > { %v2373_v12 = vmul.f32 %v5021_v1, %v2372_v6  ;;  %v2665_v6 = vld [vmem:[%s6152_s1 + $0x28] sm:$0xff] }
 0x7de   : > { %v2389_v14 = vadd.f32 %v5019_v0, %v2388_v9  ;;  %v2664_v9 = vld [vmem:[%s6152_s1 + $0x20] sm:$0xff] }
 0x7df   : > { %v2374_v15 = vadd.f32 %v5021_v1, %v2373_v12  ;;  %v2663_v12 = vld [vmem:[%s6152_s1 + $0x18] sm:$0xff] }
 0x7e0   : > { %v5023_v17 = vpop.eup %5022  ;;  %v2393_v19 = vsel %vm2392_vm4, %v5019_v0, %v2389_v14 }
 0x7e1   : > { %v2378_v20 = vsel %vm2377_vm6, %v5021_v1, %v2374_v15  ;;  %v2398_v21 = vsel %vm2395_vm7, %v2397_v16, %v2393_v19  ;;  %v2356_v22 = vmul.f32 %v5023_v17, %v2333_v4  ;;  %vm2361_vm9 = vweird.f32 %v5023_v17  ;;  %v2631_v1 = vld [vmem:[%s6150_s11 + $0x18] sm:$0xff]  ;;  %s6155_s11 = sld [smem:[#allocation28_spill]]  ;;  %v4945_v19 = vld [vmem:[%s6153_s7] ss:$0 sm:$0xff] }
 0x7e2   : > { %v2383_v23 = vsel %vm2380_vm8, %v2382_v18, %v2378_v20  ;;  %v2399_v24 = vmul.f32 %v5654_v42, %v2398_v21  ;;  %vm2362_vm11 = vmor %vm2360_vm10, %vm2361_vm9  ;;  %2651 = vmatpush.msrb.mxu0 %v2631_v1  ;;  %v2667_v4 = vld [vmem:[%s6152_s1 + $0x38] sm:$0xff]  ;;  %v4651_v1 = vld [vmem:[%s6125_s3 + $0x90] sm:$0xff]  ;;  %s6160_s7 = sld [smem:[#allocation29_spill]] }
 0x7e3   : > { %v2357_v26 = vsub.f32 1.0, %v2356_v22  ;;  %v2384_v27 = vmul.f32 %v5656_v44, %v2383_v23 }
 0x7e4   : > { %4622 = vmatmul.msk.f32.vlgmr.msra.gmra.mxu3 %vm1415_vm5, %v2399_v24  ;;  %2652 = vmatpush.msrb.mxu0 %v2630_v2 }
 0x7e5   : > { %v2358_v29 = vmul.f32 %v5023_v17, %v2357_v26  ;;  %4621 = vmatmul.msk.f32.vlgmr.msrb.gmra.mxu2 %vm1415_vm5, %v2384_v27  ;;  %v2662_v26 = vld [vmem:[%s6152_s1 + $0x10] sm:$0xff]  ;;  %v2661_v27 = vld [vmem:[%s6152_s1 + $0x8] sm:$0xff] }
 0x7e7   : > { %v2359_v31 = vadd.f32 %v5023_v17, %v2358_v29  ;;  %s6156_s27 = smov %s6155_s11  ;;  %v4946_v22 = vld [vmem:[%s6155_s11] ss:$0 sm:$0xff]  ;;  %s6164_s11 = sld [smem:[#allocation37_spill]] }
 0x7e8   : > { %v4947_v29 = vld [vmem:[%s6157_s15] ss:$0 sm:$0xff]  ;;  %s6161_s20 = smov %s6160_s7  ;;  %s6162_s15 = sld [smem:[#allocation31_spill]] }
 0x7e9   : > { %v2363_v33 = vsel %vm2362_vm11, %v5023_v17, %v2359_v31 }
 0x7ea   : > { %v2368_v34 = vsel %vm2365_vm12, %v2367_v32, %v2363_v33  ;;  %v4948_v33 = vld [vmem:[%s6159_s0] ss:$0 sm:$0xff] }
 0x7eb   : > { %v2369_v35 = vmul.f32 %v5662_v47, %v2368_v34 }
 0x7ed   : > { %4620 = vmatmul.msk.f32.vlgmr.msra.gmra.mxu1 %vm1415_vm5, %v2369_v35 }
 0x7ee   : > { %2684 = vmatpush.msra.mxu1 %v2667_v4  ;;  %v4642_v4 = vld [vmem:[%s5198_s25 + $0xe8] sm:$0xff] }
 0x7f0   : > { %2685 = vmatpush.msra.mxu1 %v2666_v5 }
 0x7f2   : > { %2686 = vmatpush.msra.mxu1 %v2665_v6  ;;  %v4650_v6 = vld [vmem:[%s6125_s3 + $0x88] sm:$0xff] }
 0x7f4   : > { %2687 = vmatpush.msra.mxu1 %v2664_v9  ;;  %v4641_v9 = vld [vmem:[%s5198_s25 + $0xe0] sm:$0xff] }
 0x7f6   : > { %2688 = vmatpush.msra.mxu1 %v2663_v12 }
 0x7f8   : > { %2689 = vmatpush.msra.mxu1 %v2662_v26 }
 0x7fa   : > { %2690 = vmatpush.msra.mxu1 %v2661_v27 }
 0x7fc   : > { %2691 = vmatpush.msra.mxu1 %v2660_v28  ;;  %v4664_v28 = vld [vmem:[%s6125_s3 + $0xf8] sm:$0xff] }
 0x854   : > { %v2420_v40 = vpop.f32.mrf.mxu0 }
 0x855   : > { %4623 = vmatmul.msk.f32.vlgmr.msra.gmra.mxu0 %vm1415_vm5, %v2420_v40 }
 0x867   : > { %v2489_v41 = vpop.f32.mrf.mxu3 }
 0x868   : > { %v2466_v42 = vpop.f32.mrf.mxu2  ;;  %4626 = vmatmul.msk.f32.vlgmr.msrb.gmra.mxu3 %vm1415_vm5, %v2489_v41 }
 0x869   : > { %4625 = vmatmul.msk.f32.vlgmr.msra.gmra.mxu2 %vm1415_vm5, %v2466_v42 }
 0x86a   : > { %v2443_v43 = vpop.f32.mrf.mxu1 }
 0x86b   : > { %4624 = vmatmul.msk.f32.vlgmr.msrb.gmra.mxu1 %vm1415_vm5, %v2443_v43  ;;  %v4632_v43 = vld [vmem:[%s5198_s25 + $0x98] sm:$0xff] }
 0x86c   : > { %2829 = vmatpush.msrb.mxu2 %v4632_v43  ;;  %v4681_v43 = vld [vmem:[%s6121_s14 + $0xe0] sm:$0xff] }
 0x8d2   : > { %v2512_v44 = vpop.f32.mrf.mxu0 }
 0x8d3   : > { %v2584_v47 = vsel %vm1032_vm0, %v2512_v44, 0.0  ;;  %v4636_v44 = vld [vmem:[%s5198_s25 + $0xb8] sm:$0xff] }
 0x8d4   : > { %2849 = vmatpush.msra.mxu3 %v4636_v44  ;;  %v4952_v44 = vld [vmem:[%s6123_s8 + $0x6] ss:$0 sm:$0xff] }
 0x8e8   : > { %v2535_v45 = vpop.f32.mrf.mxu1 }
 0x8e9   : > { %v2585_v46 = vsel %vm1032_vm0, %v2535_v45, 0.0  ;;  %v4640_v45 = vld [vmem:[%s5198_s25 + $0xd8] sm:$0xff] }
 0x8ea   : > { %v2586_v48 = vadd.f32 %v2585_v46, %v2584_v47  ;;  %v4660_v46 = vld [vmem:[%s6125_s3 + $0xd8] sm:$0xff]  ;;  %v4631_v47 = vld [vmem:[%s5198_s25 + $0x90] sm:$0xff] }
 0x8eb   : > { %v2581_v50 = vpop.f32.mrf.mxu3  ;;  %2961 = vmatpush.msrb.mxu1 %v4660_v46  ;;  %2830 = vmatpush.msrb.mxu2 %v4631_v47 }
 0x8ec   : > { %v2558_v49 = vpop.f32.mrf.mxu2  ;;  %v2589_v54 = vsel %vm1032_vm0, %v2581_v50, 0.0  ;;  %v4659_v50 = vld [vmem:[%s6125_s3 + $0xd0] sm:$0xff] }
 0x8ed   : > { %v2587_v51 = vsel %vm1032_vm0, %v2558_v49, 0.0  ;;  %v4639_v49 = vld [vmem:[%s5198_s25 + $0xd0] sm:$0xff]  ;;  %2962 = vmatpush.msrb.mxu1 %v4659_v50 }
 0x8ee   : > { %v2588_v52 = vadd.f32 %v2587_v51, %v2586_v48  ;;  %v4635_v48 = vld [vmem:[%s5198_s25 + $0xb0] sm:$0xff]  ;;  %v4630_v51 = vld [vmem:[%s5198_s25 + $0x88] sm:$0xff] }
 0x8ef   : > { %2850 = vmatpush.msra.mxu3 %v4635_v48  ;;  %2831 = vmatpush.msrb.mxu2 %v4630_v51 }
 0x8f0   : > { %v2590_v55 = vadd.f32 %v2589_v54, %v2588_v52  ;;  %v4634_v52 = vld [vmem:[%s5198_s25 + $0xa8] sm:$0xff] }
 0x8f1   : > { %2851 = vmatpush.msra.mxu3 %v4634_v52  ;;  %v4658_v54 = vld [vmem:[%s6125_s3 + $0xc8] sm:$0xff]  ;;  %v4955_v52 = vld [vmem:[%s6123_s8 + $0x5] ss:$0 sm:$0xff] }
 0x8f2   : > { %v2594_v56 = vadd.f32 %v4944_v53, %v2590_v55  ;;  %v4638_v53 = vld [vmem:[%s5198_s25 + $0xc8] sm:$0xff]  ;;  %v4629_v55 = vld [vmem:[%s5198_s25 + $0x80] sm:$0xff]  ;;  %2963 = vmatpush.msrb.mxu1 %v4658_v54 }
 0x8f3   : > { %2832 = vmatpush.msrb.mxu2 %v4629_v55  ;;  %v4954_v54 = vld [vmem:[%s5203_s29 + $0x5] ss:$0 sm:$0xff] }
 0x8f4   : > { %v2595_v57 = vadd.f32 %v2594_v56, %v5587_v25  ;;  %v2629_v25 = vld [vmem:[%s6151_s18 + $0x8] sm:$0xff]  ;;  %v4633_v56 = vld [vmem:[%s5198_s25 + $0xa0] sm:$0xff] }
 0x8f5   : > { %2653 = vmatpush.msrb.mxu0 %v2629_v25  ;;  %2852 = vmatpush.msra.mxu3 %v4633_v56  ;;  %v4655_v25 = vld [vmem:[%s6125_s3 + $0xb0] sm:$0xff] }
 0x8f6   : > { %v2598_v58 = vsel %vm1032_vm0, %v2595_v57, 0.0 }
 0x8f7   : > { %2599 = vadd.xlane.f32.xlu2 %v2598_v58  ;;  %2654 = vmatpush.msrb.mxu0 %v2628_v3  ;;  %v4657_v58 = vld [vmem:[%s6125_s3 + $0xc0] sm:$0xff]  ;;  %v4679_v3 = vld [vmem:[%s6121_s14 + $0xd0] sm:$0xff] }
 0x8f8   : > { %2964 = vmatpush.msrb.mxu1 %v4657_v58 }
 0x8f9   : > { %2869 = vmatpush.msra.mxu0 %v4640_v45  ;;  %v4951_v45 = vld [vmem:[%s5203_s29 + $0x6] ss:$0 sm:$0xff] }
 0x8fb   : > { %2870 = vmatpush.msra.mxu0 %v4639_v49 }
 0x8fd   : > { %2871 = vmatpush.msra.mxu0 %v4638_v53  ;;  %v4956_v53 = vld [vmem:[%s5223_s19 + $0x6] ss:$0 sm:$0xff] }
 0x96a   : > { %v2600_v59 = vpop.xlane.xlu2 %2599 }
 0x96b   : > { %v2601_v60 = vmul.f32 %v2600_v59, %v5398_v10  ;;  %v4644_v59 = vld [vmem:[%s5198_s25 + $0xf8] sm:$0xff] }
 0x96c   : > { %2889 = vmatpush.msra.mxu2 %v4644_v59  ;;  %v4958_v59 = vld [vmem:[%s6123_s8 + $0x4] ss:$0 sm:$0xff] }
 0x96d   : > { %v2602_v61 = vsub.f32 %v2595_v57, %v2601_v60  ;;  %v4637_v57 = vld [vmem:[%s5198_s25 + $0xc0] sm:$0xff]  ;;  %v4652_v60 = vld [vmem:[%s6125_s3 + $0x98] sm:$0xff] }
 0x96e   : > { %2872 = vmatpush.msra.mxu0 %v4637_v57  ;;  %2921 = vmatpush.msrb.mxu3 %v4652_v60 }
 0x96f   : > { %v2603_v63 = vmul.f32 %v2602_v61, %v2602_v61 }
 0x970   : > { %2922 = vmatpush.msrb.mxu3 %v4651_v1  ;;  %v4959_v1 = vld [vmem:[%s5223_s19 + $0x5] ss:$0 sm:$0xff] }
 0x971   : > { %v2604_v0 = vsel %vm1032_vm0, %v2603_v63, 0.0  ;;  %v4680_v63 = vld [vmem:[%s6121_s14 + $0xd8] sm:$0xff] }
 0x972   : > { %2605 = vadd.xlane.f32.xlu0 %v2604_v0  ;;  %v4643_v0 = vld [vmem:[%s5198_s25 + $0xf0] sm:$0xff]  ;;  %2923 = vmatpush.msrb.mxu3 %v4650_v6  ;;  %v4961_v6 = vld [vmem:[%s5223_s19 + $0x4] ss:$0 sm:$0xff] }
 0x973   : > { %2890 = vmatpush.msra.mxu2 %v4643_v0 }
 0x975   : > { %2891 = vmatpush.msra.mxu2 %v4642_v4 }
 0x977   : > { %2892 = vmatpush.msra.mxu2 %v4641_v9 }
 0x9e5   : > { %v2606_v7 = vpop.xlane.xlu0 %2605 }
 0x9e6   : > { %v2607_v8 = vmul.f32 %v2606_v7, %v5398_v10  ;;  %v4654_v7 = vld [vmem:[%s6125_s3 + $0xa8] sm:$0xff] }
 0x9e8   : > { %v2608_v11 = vadd.f32 1e-05, %v2607_v8  ;;  %v4678_v8 = vld [vmem:[%s6121_s14 + $0xc8] sm:$0xff] }
 0x9ea   : > { %5024 = vrsqrt.f32 %v2608_v11  ;;  %vm2615_vm14 = vweird.f32 %v2608_v11 }
 0x9f0   : > { %v5025_v13 = vpop.eup %5024 }
 0x9f1   : > { %v2610_v14 = vmul.f32 %v5025_v13, %v2608_v11  ;;  %vm2616_vm13 = vweird.f32 %v5025_v13  ;;  %v4649_v11 = vld [vmem:[%s6125_s3 + $0x80] sm:$0xff] }
 0x9f2   : > { %vm2617_vm15 = vmor %vm2615_vm14, %vm2616_vm13  ;;  %2924 = vmatpush.msrb.mxu3 %v4649_v11 }
 0x9f3   : > { %v2611_v15 = vmul.f32 %v5025_v13, %v2610_v14  ;;  %v4677_v14 = vld [vmem:[%s6121_s14 + $0xc0] sm:$0xff] }
 0x9f5   : > { %v2612_v16 = vmul.f32 0.5, %v2611_v15 }
 0x9f7   : > { %v2613_v17 = vsub.f32 1.5, %v2612_v16 }
 0x9f9   : > { %v2614_v18 = vmul.f32 %v5025_v13, %v2613_v17 }
 0x9fb   : > { %v2618_v20 = vsel %vm2617_vm15, %v5025_v13, %v2614_v18  ;;  %v4653_v13 = vld [vmem:[%s6125_s3 + $0xa0] sm:$0xff] }
 0x9fc   : > { %v2619_v21 = vmul.f32 %v2618_v20, %v2602_v61  ;;  %v4656_v61 = vld [vmem:[%s6125_s3 + $0xb8] sm:$0xff] }
 0x9fe   : > { %v2623_v23 = vmul.f32 %v4945_v19, %v2619_v21  ;;  %v4949_v21 = vld [vmem:[%s6160_s7] ss:$0 sm:$0xff]  ;;  %s6165_s7 = sld [smem:[#allocation33_spill]] }
 0xa00   : > { %v2627_v24 = vadd.f32 %v4946_v22, %v2623_v23  ;;  %v4950_v23 = vld [vmem:[%s6122_s12] ss:$0 sm:$0xff] }
 0xa02   : > { %4627 = vmatmul.msk.f32.vlgmr.msrb.gmra.mxu0 %vm1032_vm0, %v2627_v24 }
 0xa03   : > { %2941 = vmatpush.msrb.mxu0 %v4656_v61  ;;  %v4953_v61 = vld [vmem:[%s5203_s29 + $0x4] ss:$0 sm:$0xff] }
 0xa05   : > { %2942 = vmatpush.msrb.mxu0 %v4655_v25 }
 0xa07   : > { %2943 = vmatpush.msrb.mxu0 %v4654_v7  ;;  %v4957_v7 = vld [vmem:[%s5203_s29 + $0x7] ss:$0 sm:$0xff] }
 0xa09   : > { %2944 = vmatpush.msrb.mxu0 %v4653_v13 }
 0xa7f   : > { %v2656_v30 = vpop.f32.mrf.mxu0 }
 0xa80   : > { %v2657_v31 = vadd.f32 %v4947_v29, %v2656_v30  ;;  %v4672_v29 = vld [vmem:[%s6121_s14 + $0x98] sm:$0xff] }
 0xa81   : > { %v4676_v30 = vld [vmem:[%s6121_s14 + $0xb8] sm:$0xff] }
 0xa82   : > { %v2659_v32 = vmax.f32 %v2657_v31, 0.0  ;;  %v4663_v31 = vld [vmem:[%s6125_s3 + $0xf0] sm:$0xff] }
 0xa84   : > { %4628 = vmatmul.msk.f32.vlgmr.msra.gmra.mxu1 %vm2672_vm1, %v2659_v32  ;;  %v4671_v32 = vld [vmem:[%s6121_s14 + $0x90] sm:$0xff] }
 0xa85   : > { %3053 = vmatpush.msra.mxu1 %v4680_v63 }
 0xa87   : > { %3054 = vmatpush.msra.mxu1 %v4679_v3 }
 0xa89   : > { %3055 = vmatpush.msra.mxu1 %v4678_v8 }
 0xa8b   : > { %3056 = vmatpush.msra.mxu1 %v4677_v14  ;;  %v4962_v14 = vld [vmem:[%s5223_s19 + $0x7] ss:$0 sm:$0xff] }
 0xb01   : > { %v2693_v34 = vpop.f32.mrf.mxu1 }
 0xb02   : > { %v2694_v35 = vadd.f32 %v4948_v33, %v2693_v34  ;;  %v4675_v33 = vld [vmem:[%s6121_s14 + $0xb0] sm:$0xff]  ;;  %v4662_v34 = vld [vmem:[%s6125_s3 + $0xe8] sm:$0xff] }
 0xb04   : > { %v2696_v36 = vadd.f32 %v2694_v35, %v2627_v24  ;;  %v4670_v35 = vld [vmem:[%s6121_s14 + $0x88] sm:$0xff] }
 0xb06   : > { %v2699_v37 = vsel %vm1032_vm0, %v2696_v36, 0.0 }
 0xb07   : > { %2700 = vadd.xlane.f32.xlu1 %v2699_v37  ;;  %v4661_v37 = vld [vmem:[%s6125_s3 + $0xe0] sm:$0xff]  ;;  %s4839_s3 = sshll.u32 %s6164_s11, 3 }
 0xb7a   : > { %v2701_v38 = vpop.xlane.xlu1 %2700 }
 0xb7b   : > { %v2702_v39 = vmul.f32 %v2701_v38, %v5398_v10  ;;  %v4669_v38 = vld [vmem:[%s6121_s14 + $0x80] sm:$0xff] }
 0xb7d   : > { %v5711_v40 = vsub.f32 %v2696_v36, %v2702_v39  ;;  %v4674_v36 = vld [vmem:[%s6121_s14 + $0xa8] sm:$0xff]  ;;  %v4673_v39 = vld [vmem:[%s6121_s14 + $0xa0] sm:$0xff] }
 0xb7f   : > { %v2704_v41 = vmul.f32 %v5711_v40, %v5711_v40 }
 0xb81   : > { %v2705_v42 = vsel %vm1032_vm0, %v2704_v41, 0.0  ;;  %v4683_v41 = vld [vmem:[%s6121_s14 + $0xf0] sm:$0xff] }
 0xb82   : > { %2706 = vadd.xlane.f32.xlu2 %v2705_v42  ;;  %v4682_v42 = vld [vmem:[%s6121_s14 + $0xe8] sm:$0xff] }
 0xbf5   : > { %v2707_v2 = vpop.xlane.xlu2 %2706 }
 0xbf6   : > { %v2708_v5 = vmul.f32 %v2707_v2, %v5398_v10 }
 0xbf8   : > { %v2709_v12 = vadd.f32 1e-05, %v2708_v5  ;;  %v4960_v5 = vld [vmem:[%s6123_s8 + $0x7] ss:$0 sm:$0xff] }
 0xbfa   : > { %5026 = vrsqrt.f32 %v2709_v12  ;;  %vm2716_vm3 = vweird.f32 %v2709_v12 }
 0xc00   : > { %v5027_v15 = vpop.eup %5026 }
 0xc01   : > { %v2711_v16 = vmul.f32 %v5027_v15, %v2709_v12  ;;  %vm2717_vm2 = vweird.f32 %v5027_v15 }
 0xc02   : > { %vm2718_vm4 = vmor %vm2716_vm3, %vm2717_vm2 }
 0xc03   : > { %v2712_v17 = vmul.f32 %v5027_v15, %v2711_v16 }
 0xc05   : > { %v2713_v18 = vmul.f32 0.5, %v2712_v17 }
 0xc07   : > { %v2714_v19 = vsub.f32 1.5, %v2713_v18 }
 0xc09   : > { %v2715_v20 = vmul.f32 %v5027_v15, %v2714_v19  ;;  %v5066_v19 = vld [vmem:[%s5507_s23] sm:$0xff]  ;;  %s6163_s23 = smov %s6162_s15 }
 0xc0b   : > { %v2719_v22 = vsel %vm2718_vm4, %v5027_v15, %v2715_v20 }
 0xc0c   : > { %v2720_v24 = vmul.f32 %v2719_v22, %v5711_v40  ;;  %v4684_v40 = vld [vmem:[%s6121_s14 + $0xf8] sm:$0xff] }
 0xc0e   : > { %v2724_v26 = vmul.f32 %v4949_v21, %v2720_v24 }
 0xc10   : > { %v5752_v27 = vadd.f32 %v4950_v23, %v2724_v26 }
 0xc12   : > { %4694 = vmatmul.msk.f32.vlgmr.msrb.gmra.mxu2 %vm1032_vm0, %v5752_v27  ;;  %4695 = vmatmul.msk.f32.vlgmr.msra.gmra.mxu3 %vm1032_vm0, %v5752_v27 }
 0xc13   : > { %4696 = vmatmul.msk.f32.vlgmr.msra.gmra.mxu0 %vm1032_vm0, %v5752_v27  ;;  %4700 = vmatmul.msk.f32.vlgmr.msrb.gmra.mxu1 %vm1032_vm0, %v5752_v27 }
 0xc14   : > { %2981 = vmatpush.msrb.mxu2 %v4664_v28  ;;  %3013 = vmatpush.msra.mxu3 %v4672_v29 }
 0xc15   : > { %3033 = vmatpush.msra.mxu0 %v4676_v30 }
 0xc16   : > { %2982 = vmatpush.msrb.mxu2 %v4663_v31  ;;  %3014 = vmatpush.msra.mxu3 %v4671_v32 }
 0xc17   : > { %3034 = vmatpush.msra.mxu0 %v4675_v33 }
 0xc18   : > { %2983 = vmatpush.msrb.mxu2 %v4662_v34  ;;  %3015 = vmatpush.msra.mxu3 %v4670_v35 }
 0xc19   : > { %3035 = vmatpush.msra.mxu0 %v4674_v36 }
 0xc1a   : > { %4697 = vmatmul.msk.f32.vlgmr.msra.gmra.mxu2 %vm1032_vm0, %v5752_v27  ;;  %4698 = vmatmul.msk.f32.vlgmr.msrb.gmra.mxu3 %vm1032_vm0, %v5752_v27 }
 0xc1b   : > { %4699 = vmatmul.msk.f32.vlgmr.msrb.gmra.mxu0 %vm1032_vm0, %v5752_v27  ;;  %4704 = vmatmul.msk.f32.vlgmr.msra.gmra.mxu1 %vm1032_vm0, %v5752_v27 }
 0xc1c   : > { %2984 = vmatpush.msrb.mxu2 %v4661_v37  ;;  %3016 = vmatpush.msra.mxu3 %v4669_v38 }
 0xc1d   : > { %3036 = vmatpush.msra.mxu0 %v4673_v39 }
 0xc1e   : > { %3073 = vmatpush.msra.mxu2 %v4684_v40 }
 0xc20   : > { %3074 = vmatpush.msra.mxu2 %v4683_v41 }
 0xc22   : > { %3075 = vmatpush.msra.mxu2 %v4682_v42  ;;  %4702 = vmatmul.msk.f32.vlgmr.msra.gmra.mxu3 %vm1032_vm0, %v5752_v27 }
 0xc23   : > { %4701 = vmatmul.msk.f32.vlgmr.msrb.gmra.mxu2 %vm1032_vm0, %v5752_v27  ;;  %4703 = vmatmul.msk.f32.vlgmr.msra.gmra.mxu0 %vm1032_vm0, %v5752_v27 }
 0xc24   : > { %3076 = vmatpush.msra.mxu2 %v4681_v43 }
 0xc2b   : > { %4705 = vmatmul.msk.f32.vlgmr.msra.gmra.mxu2 %vm1032_vm0, %v5752_v27 }
 0xc90   : > { %v2874_v46 = vpop.f32.mrf.mxu0  ;;  %v2966_v47 = vpop.f32.mrf.mxu1 }
 0xc91   : > { %v2967_v48 = vadd.f32 %v4952_v44, %v2966_v47  ;;  %v2875_v49 = vadd.f32 %v4951_v45, %v2874_v46 }
 0xc93   : > { %4710 = vmatpush.xpose.msk.msrb.mxu1 %vm1415_vm5, %v2967_v48 }
 0xc95   : > { %v2834_v50 = vpop.f32.mrf.mxu2  ;;  %v2854_v51 = vpop.f32.mrf.mxu3 }
 0xc96   : > { %4711 = vmatmul.msk.f32.vlgmr.msrb.gmra.mxu1 %vm1415_vm5, %v2875_v49  ;;  %v2855_v60 = vadd.f32 %v4954_v54, %v2854_v51  ;;  %v2835_v3 = vadd.f32 %v4953_v61, %v2834_v50 }
 0xc98   : > { %v2946_v55 = vpop.f32.mrf.mxu0  ;;  %v3058_v56 = vpop.f32.mrf.mxu1 }
 0xc99   : > { %v2947_v57 = vadd.f32 %v4955_v52, %v2946_v55  ;;  %v3059_v58 = vadd.f32 %v4956_v53, %v3058_v56 }
 0xc9b   : > { %4708 = vmatpush.xpose.msk.msrb.mxu0 %vm1415_vm5, %v2947_v57  ;;  %3353 = vmatpush.msra.mxu1 %v3059_v58 }
 0xc9d   : > { %v2894_v63 = vpop.f32.mrf.mxu2  ;;  %v2926_v0 = vpop.f32.mrf.mxu3 }
 0xc9e   : > { %v2927_v2 = vadd.f32 %v4958_v59, %v2926_v0  ;;  %4709 = vmatmul.msk.f32.vlgmr.msrb.gmra.mxu0 %vm1415_vm5, %v2855_v60  ;;  %v2895_v13 = vadd.f32 %v4957_v7, %v2894_v63 }
 0xca0   : > { %v3038_v25 = vpop.f32.mrf.mxu0  ;;  %4706 = vmatpush.xpose.msk.msrb.mxu3 %vm1415_vm5, %v2927_v2 }
 0xca1   : > { %v3039_v4 = vadd.f32 %v4959_v1, %v3038_v25 }
 0xca3   : > { %3330 = vmatpush.msra.mxu0 %v3039_v4  ;;  %4707 = vmatmul.msk.f32.vlgmr.msrb.gmra.mxu3 %vm1415_vm5, %v2835_v3 }
 0xca5   : > { %v3018_v9 = vpop.f32.mrf.mxu3 }
 0xca6   : > { %v2986_v8 = vpop.f32.mrf.mxu2  ;;  %v3019_v12 = vadd.f32 %v4961_v6, %v3018_v9 }
 0xca7   : > { %v2987_v11 = vadd.f32 %v4960_v5, %v2986_v8 }
 0xca8   : > { %3307 = vmatpush.msra.mxu3 %v3019_v12 }
 0xca9   : > { %4712 = vmatpush.xpose.msk.msrb.mxu2 %vm1415_vm5, %v2987_v11 }
 0xcac   : > { %4713 = vmatmul.msk.f32.vlgmr.msrb.gmra.mxu2 %vm1415_vm5, %v2895_v13 }
 0xcae   : > { %v3078_v15 = vpop.f32.mrf.mxu2 }
 0xcaf   : > { %v3079_v16 = vadd.f32 %v4962_v14, %v3078_v15 }
 0xcb1   : > { %3376 = vmatpush.msra.mxu2 %v3079_v16 }
 0xd13   : > { %v3156_v24 = vpop.f32.mrf.mxu1 }
 0xd14   : > { %v3187_v28 = vmul.f32 0.35355338, %v3156_v24 }
 0xd16   : > { %v3191_v32 = vadd.f32 %v5066_v19, %v3187_v28 }
 0xd18   : > { %v3199_v35 = vsel %vm1415_vm5, %v3191_v32, -inf }
 0xd1b   : > { %v3130_v17 = vpop.f32.mrf.mxu0 }
 0xd1c   : > { %v3186_v18 = vmul.f32 0.35355338, %v3130_v17 }
 0xd1e   : > { %v3190_v20 = vadd.f32 %v5066_v19, %v3186_v18 }
 0xd20   : > { %v3196_v21 = vsel %vm1415_vm5, %v3190_v20, -inf }
 0xd21   : > { %3197 = vmax.xlane.f32.xlu2 %v3196_v21 }
 0xd26   : > { %v3104_v22 = vpop.f32.mrf.mxu3 }
 0xd27   : > { %v3185_v23 = vmul.f32 0.35355338, %v3104_v22 }
 0xd29   : > { %v3189_v26 = vadd.f32 %v5066_v19, %v3185_v23 }
 0xd2b   : > { %v3193_v29 = vsel %vm1415_vm5, %v3189_v26, -inf }
 0xd2c   : > { %3194 = vmax.xlane.f32.xlu0 %v3193_v29 }
 0xd2f   : > { %v3182_v30 = vpop.f32.mrf.mxu2 }
 0xd30   : > { %v3188_v31 = vmul.f32 0.35355338, %v3182_v30 }
 0xd32   : > { %v3192_v33 = vadd.f32 %v5066_v19, %v3188_v31 }
 0xd34   : > { %v3202_v34 = vsel %vm1415_vm5, %v3192_v33, -inf  ;;  %3200 = vmax.xlane.f32.xlu0 %v3199_v35 }
 0xd35   : > { %3203 = vmax.xlane.f32.xlu1 %v3202_v34 }
 0xd94   : > { %v3198_v36 = vpop.xlane.xlu2 %3197 }
 0xd95   : > { %v3206_v37 = vsub.f32 %v3190_v20, %v3198_v36 }
 0xd97   : > { %v3211_v38 = vmul.f32 1.442695, %v3206_v37 }
 0xd99   : > { %5028 = vpow2.f32 %v3211_v38 }
 0xd9f   : > { %v5029_v39 = vpop.eup %5028  ;;  %v3195_v40 = vpop.xlane.xlu0 %3194 }
 0xda0   : > { %v3205_v41 = vsub.f32 %v3189_v26, %v3195_v40  ;;  %v3220_v42 = vsel %vm1415_vm5, %v5029_v39, 0.0 }
 0xda1   : > { %3221 = vadd.xlane.f32.xlu0 %v3220_v42 }
 0xda2   : > { %v3209_v43 = vmul.f32 1.442695, %v3205_v41 }
 0xda4   : > { %5030 = vpow2.f32 %v3209_v43  ;;  %v4690_v43 = vld [vmem:[%s5228_s24 + $0x28] sm:$0xff] }
 0xda5   : > { %3422 = vmatpush.msrb.mxu0 %v4690_v43  ;;  %v4756_v43 = vld [vmem:[%s6141_s2 + $0xe0] sm:$0xff] }
 0xda7   : > { %v3201_v45 = vpop.xlane.xlu0 %3200 }
 0xda8   : > { %v3204_v44 = vpop.xlane.xlu1 %3203  ;;  %v3207_v47 = vsub.f32 %v3191_v32, %v3201_v45  ;;  %v4691_v45 = vld [vmem:[%s5228_s24 + $0x30] sm:$0xff] }
 0xda9   : > { %v3208_v46 = vsub.f32 %v3192_v33, %v3204_v44  ;;  %v4689_v44 = vld [vmem:[%s5228_s24 + $0x20] sm:$0xff]  ;;  %3445 = vmatpush.msrb.mxu1 %v4691_v45 }
 0xdaa   : > { %v5031_v48 = vpop.eup %5030  ;;  %v3213_v50 = vmul.f32 1.442695, %v3207_v47  ;;  %3399 = vmatpush.msrb.mxu3 %v4689_v44 }
 0xdab   : > { %v3215_v49 = vmul.f32 1.442695, %v3208_v46  ;;  %v3217_v51 = vsel %vm1415_vm5, %v5031_v48, 0.0  ;;  %v4692_v46 = vld [vmem:[%s5228_s24 + $0x38] sm:$0xff] }
 0xdac   : > { %3218 = vadd.xlane.f32.xlu1 %v3217_v51  ;;  %3468 = vmatpush.msrb.mxu2 %v4692_v46 }
 0xdad   : > { %5032 = vpow2.f32 %v3215_v49 }
 0xdae   : > { %5034 = vpow2.f32 %v3213_v50 }
 0xdb3   : > { %v5821_v52 = vpop.eup %5032 }
 0xdb4   : > { %v5823_v53 = vpop.eup %5034  ;;  %v3226_v54 = vsel %vm1415_vm5, %v5821_v52, 0.0 }
 0xdb5   : > { %3227 = vadd.xlane.f32.xlu2 %v3226_v54  ;;  %v3223_v55 = vsel %vm1415_vm5, %v5823_v53, 0.0 }
 0xdb6   : > { %3224 = vadd.xlane.f32.xlu1 %v3223_v55 }
 0xe14   : > { %v3222_v56 = vpop.xlane.xlu0 %3221 }
 0xe15   : > { %5036 = vrcp.f32 %v3222_v56  ;;  %v3255_v60 = vand.u32 2147483648, %v3222_v56  ;;  %v3253_v0 = vand.u32 2147483647, %v3222_v56  ;;  %vm3249_vm7 = vweird.f32 %v3222_v56 }
 0xe17   : > { %v3256_v2 = vor.u32 1.1754944e-38, %v3255_v60  ;;  %vm3254_vm9 = vcmp.eq.f32.partialorder %v3253_v0, 8.507059e+37  ;;  %v4963_v60 = vld [vmem:[%s5233_s30 + $0x1] ss:$0 sm:$0xff] }
 0xe1b   : > { %v5037_v57 = vpop.eup %5036 }
 0xe1c   : > { %v3245_v58 = vmul.f32 %v5037_v57, %v3222_v56  ;;  %vm3250_vm6 = vweird.f32 %v5037_v57 }
 0xe1d   : > { %vm3251_vm8 = vmor %vm3249_vm7, %vm3250_vm6 }
 0xe1e   : > { %v3246_v59 = vsub.f32 1.0, %v3245_v58 }
 0xe1f   : > { %v3219_v61 = vpop.xlane.xlu1 %3218 }
 0xe20   : > { %v3247_v63 = vmul.f32 %v5037_v57, %v3246_v59  ;;  %5038 = vrcp.f32 %v3219_v61  ;;  %v3240_v11 = vand.u32 2147483648, %v3219_v61  ;;  %v3238_v13 = vand.u32 2147483647, %v3219_v61 }
 0xe21   : > { %vm3234_vm11 = vweird.f32 %v3219_v61 }
 0xe22   : > { %v3248_v1 = vadd.f32 %v5037_v57, %v3247_v63  ;;  %v3241_v16 = vor.u32 1.1754944e-38, %v3240_v11  ;;  %vm3239_vm13 = vcmp.eq.f32.partialorder %v3238_v13, 8.507059e+37  ;;  %v4726_v11 = vld [vmem:[%s6124_s6 + $0x90] sm:$0xff] }
 0xe23   : > { %v4734_v13 = vld [vmem:[%s6124_s6 + $0xd0] sm:$0xff] }
 0xe24   : > { %v3252_v25 = vsel %vm3251_vm8, %v5037_v57, %v3248_v1 }
 0xe25   : > { %v3257_v3 = vsel %vm3254_vm9, %v3256_v2, %v3252_v25 }
 0xe26   : > { %v5039_v4 = vpop.eup %5038  ;;  %v3258_v5 = vmul.f32 %v5029_v39, %v3257_v3 }
 0xe27   : > { %v3230_v6 = vmul.f32 %v5039_v4, %v3219_v61  ;;  %vm3235_vm10 = vweird.f32 %v5039_v4 }
 0xe28   : > { %v3228_v7 = vpop.xlane.xlu2 %3227  ;;  %4715 = vmatmul.msk.f32.vlgmr.msra.gmra.mxu0 %vm1415_vm5, %v3258_v5  ;;  %vm3236_vm12 = vmor %vm3234_vm11, %vm3235_vm10 }
 0xe29   : > { %5040 = vrcp.f32 %v3228_v7  ;;  %v3225_v8 = vpop.xlane.xlu1 %3224  ;;  %v3231_v9 = vsub.f32 1.0, %v3230_v6  ;;  %v3285_v24 = vand.u32 2147483648, %v3228_v7  ;;  %v3283_v29 = vand.u32 2147483647, %v3228_v7 }
 0xe2a   : > { %5042 = vrcp.f32 %v3225_v8  ;;  %v3270_v30 = vand.u32 2147483648, %v3225_v8  ;;  %v3268_v32 = vand.u32 2147483647, %v3225_v8  ;;  %vm3279_vm2 = vweird.f32 %v3228_v7 }
 0xe2b   : > { %v3232_v12 = vmul.f32 %v5039_v4, %v3231_v9  ;;  %v3286_v34 = vor.u32 1.1754944e-38, %v3285_v24  ;;  %vm3264_vm4 = vweird.f32 %v3225_v8  ;;  %vm3284_vm6 = vcmp.eq.f32.partialorder %v3283_v29, 8.507059e+37  ;;  %v4739_v9 = vld [vmem:[%s6124_s6 + $0xf8] sm:$0xff]  ;;  %v4746_v29 = vld [vmem:[%s6141_s2 + $0x90] sm:$0xff] }
 0xe2c   : > { %v3271_v37 = vor.u32 1.1754944e-38, %v3270_v30  ;;  %vm3269_vm8 = vcmp.eq.f32.partialorder %v3268_v32, 8.507059e+37  ;;  %v4751_v24 = vld [vmem:[%s6141_s2 + $0xb8] sm:$0xff]  ;;  %v4750_v30 = vld [vmem:[%s6141_s2 + $0xb0] sm:$0xff] }
 0xe2d   : > { %v3233_v14 = vadd.f32 %v5039_v4, %v3232_v12  ;;  %v4730_v12 = vld [vmem:[%s6124_s6 + $0xb0] sm:$0xff] }
 0xe2e   : > { %v4754_v32 = vld [vmem:[%s6141_s2 + $0xd0] sm:$0xff] }
 0xe2f   : > { %v5041_v15 = vpop.eup %5040  ;;  %v3237_v18 = vsel %vm3236_vm12, %v5039_v4, %v3233_v14  ;;  %v4738_v14 = vld [vmem:[%s6124_s6 + $0xf0] sm:$0xff] }
 0xe30   : > { %v5043_v17 = vpop.eup %5042  ;;  %v3275_v19 = vmul.f32 %v5041_v15, %v3228_v7  ;;  %v3242_v20 = vsel %vm3239_vm13, %v3241_v16, %v3237_v18  ;;  %vm3280_vm14 = vweird.f32 %v5041_v15  ;;  %v4731_v7 = vld [vmem:[%s6124_s6 + $0xb8] sm:$0xff]  ;;  %v4729_v16 = vld [vmem:[%s6124_s6 + $0xa8] sm:$0xff] }
 0xe31   : > { %v3260_v21 = vmul.f32 %v5043_v17, %v3225_v8  ;;  %v3243_v23 = vmul.f32 %v5031_v48, %v3242_v20  ;;  %vm3265_vm15 = vweird.f32 %v5043_v17  ;;  %vm3281_vm3 = vmor %vm3279_vm2, %vm3280_vm14  ;;  %v4735_v8 = vld [vmem:[%s6124_s6 + $0xd8] sm:$0xff]  ;;  %3639 = vmatpush.msra.mxu0 %v4731_v7  ;;  %v4737_v18 = vld [vmem:[%s6124_s6 + $0xe8] sm:$0xff] }
 0xe32   : > { %v3276_v22 = vsub.f32 1.0, %v3275_v19  ;;  %vm3266_vm7 = vmor %vm3264_vm4, %vm3265_vm15  ;;  %v4724_v19 = vld [vmem:[%s6124_s6 + $0x80] sm:$0xff] }
 0xe33   : > { %v3261_v26 = vsub.f32 1.0, %v3260_v21  ;;  %4714 = vmatmul.msk.f32.vlgmr.msra.gmra.mxu3 %vm1415_vm5, %v3243_v23  ;;  %3640 = vmatpush.msra.mxu0 %v4730_v12  ;;  %v4728_v20 = vld [vmem:[%s6124_s6 + $0xa0] sm:$0xff]  ;;  %v4747_v23 = vld [vmem:[%s6141_s2 + $0x98] sm:$0xff] }
 0xe34   : > { %v3277_v28 = vmul.f32 %v5041_v15, %v3276_v22  ;;  %v4732_v21 = vld [vmem:[%s6124_s6 + $0xc0] sm:$0xff] }
 0xe35   : > { %v3262_v31 = vmul.f32 %v5043_v17, %v3261_v26  ;;  %3641 = vmatpush.msra.mxu0 %v4729_v16  ;;  %v4736_v22 = vld [vmem:[%s6124_s6 + $0xe0] sm:$0xff]  ;;  %v4755_v26 = vld [vmem:[%s6141_s2 + $0xd8] sm:$0xff] }
 0xe36   : > { %v3278_v33 = vadd.f32 %v5041_v15, %v3277_v28  ;;  %v4759_v28 = vld [vmem:[%s6141_s2 + $0xf8] sm:$0xff]  ;;  %v4971_v12 = vld [vmem:[%s6145_s9 + $0x6] ss:$0 sm:$0xff] }
 0xe37   : > { %v3263_v35 = vadd.f32 %v5043_v17, %v3262_v31  ;;  %3642 = vmatpush.msra.mxu0 %v4728_v20  ;;  %v4967_v16 = vld [vmem:[%s6146_s13 + $0x6] ss:$0 sm:$0xff] }
 0xe38   : > { %v3282_v36 = vsel %vm3281_vm3, %v5041_v15, %v3278_v33  ;;  %v4725_v15 = vld [vmem:[%s6124_s6 + $0x88] sm:$0xff]  ;;  %v4758_v33 = vld [vmem:[%s6141_s2 + $0xf0] sm:$0xff] }
 0xe39   : > { %v3287_v38 = vsel %vm3284_vm6, %v3286_v34, %v3282_v36  ;;  %v3267_v39 = vsel %vm3266_vm7, %v5043_v17, %v3263_v35  ;;  %v4733_v17 = vld [vmem:[%s6124_s6 + $0xc8] sm:$0xff] }
 0xe3a   : > { %v3272_v40 = vsel %vm3269_vm8, %v3271_v37, %v3267_v39  ;;  %v3288_v41 = vmul.f32 %v5821_v52, %v3287_v38  ;;  %v4745_v35 = vld [vmem:[%s6141_s2 + $0x88] sm:$0xff] }
 0xe3b   : > { %v3273_v42 = vmul.f32 %v5823_v53, %v3272_v40  ;;  %v4749_v36 = vld [vmem:[%s6141_s2 + $0xa8] sm:$0xff]  ;;  %v4744_v40 = vld [vmem:[%s6141_s2 + $0x80] sm:$0xff] }
 0xe3c   : > { %4717 = vmatmul.msk.f32.vlgmr.msra.gmra.mxu2 %vm1415_vm5, %v3288_v41  ;;  %v4753_v37 = vld [vmem:[%s6141_s2 + $0xc8] sm:$0xff]  ;;  %v4748_v41 = vld [vmem:[%s6141_s2 + $0xa0] sm:$0xff] }
 0xe3d   : > { %4716 = vmatmul.msk.f32.vlgmr.msra.gmra.mxu1 %vm1415_vm5, %v3273_v42  ;;  %3679 = vmatpush.msra.mxu2 %v4739_v9  ;;  %v4757_v38 = vld [vmem:[%s6141_s2 + $0xe8] sm:$0xff]  ;;  %v4752_v42 = vld [vmem:[%s6141_s2 + $0xc0] sm:$0xff] }
 0xe3e   : > { %3659 = vmatpush.msra.mxu1 %v4735_v8  ;;  %v4970_v9 = vld [vmem:[%s6145_s9 + $0x5] ss:$0 sm:$0xff] }
 0xe3f   : > { %3680 = vmatpush.msra.mxu2 %v4738_v14  ;;  %v4966_v14 = vld [vmem:[%s6146_s13 + $0x5] ss:$0 sm:$0xff] }
 0xe40   : > { %3660 = vmatpush.msra.mxu1 %v4734_v13 }
 0xe41   : > { %3681 = vmatpush.msra.mxu2 %v4737_v18 }
 0xe42   : > { %3661 = vmatpush.msra.mxu1 %v4733_v17 }
 0xe43   : > { %3682 = vmatpush.msra.mxu2 %v4736_v22 }
 0xe44   : > { %3662 = vmatpush.msra.mxu1 %v4732_v21  ;;  %v4973_v21 = vld [vmem:[%s6145_s9 + $0x7] ss:$0 sm:$0xff] }
 0xea5   : > { %v3332_v47 = vpop.f32.mrf.mxu0 }
 0xea6   : > { %4719 = vmatmul.msk.f32.vlgmr.msrb.gmra.mxu0 %vm1415_vm5, %v3332_v47 }
 0xea7   : > { %3731 = vmatpush.msrb.mxu0 %v4751_v24  ;;  %v4968_v24 = vld [vmem:[%s6146_s13 + $0x4] ss:$0 sm:$0xff] }
 0xea9   : > { %3732 = vmatpush.msrb.mxu0 %v4750_v30 }
 0xeab   : > { %3733 = vmatpush.msrb.mxu0 %v4749_v36 }
 0xead   : > { %3734 = vmatpush.msrb.mxu0 %v4748_v41 }
 0xeb6   : > { %v3309_v48 = vpop.f32.mrf.mxu3 }
 0xeb7   : > { %4718 = vmatmul.msk.f32.vlgmr.msrb.gmra.mxu3 %vm1415_vm5, %v3309_v48 }
 0xeba   : > { %v3355_v49 = vpop.f32.mrf.mxu1 }
 0xebb   : > { %4720 = vmatmul.msk.f32.vlgmr.msrb.gmra.mxu1 %vm1415_vm5, %v3355_v49 }
 0xebc   : > { %3751 = vmatpush.msrb.mxu1 %v4755_v26 }
 0xebe   : > { %3752 = vmatpush.msrb.mxu1 %v4754_v32 }
 0xebf   : > { %v3378_v50 = vpop.f32.mrf.mxu2 }
 0xec0   : > { %4721 = vmatmul.msk.f32.vlgmr.msrb.gmra.mxu2 %vm1415_vm5, %v3378_v50  ;;  %3753 = vmatpush.msrb.mxu1 %v4753_v37  ;;  %v4964_v50 = vld [vmem:[%s6142_s16 + $0x1] ss:$0 sm:$0xff] }
 0xec1   : > { %3771 = vmatpush.msrb.mxu2 %v4759_v28  ;;  %v4975_v28 = vld [vmem:[%s6147_s17 + $0x6] ss:$0 sm:$0xff] }
 0xec2   : > { %3754 = vmatpush.msrb.mxu1 %v4752_v42 }
 0xec3   : > { %3772 = vmatpush.msrb.mxu2 %v4758_v33 }
 0xec5   : > { %3773 = vmatpush.msrb.mxu2 %v4757_v38 }
 0xec7   : > { %3774 = vmatpush.msrb.mxu2 %v4756_v43 }
 0xf23   : > { %v3424_v51 = vpop.f32.mrf.mxu0 }
 0xf24   : > { %v3474_v54 = vsel %vm1032_vm0, %v3424_v51, 0.0 }
 0xf38   : > { %v3447_v55 = vpop.f32.mrf.mxu1 }
 0xf39   : > { %v3476_v57 = vsel %vm1032_vm0, %v3447_v55, 0.0 }
 0xf3a   : > { %v3401_v52 = vpop.f32.mrf.mxu3 }
 0xf3b   : > { %v3473_v53 = vsel %vm1032_vm0, %v3401_v52, 0.0 }
 0xf3c   : > { %v3475_v56 = vadd.f32 %v3474_v54, %v3473_v53  ;;  %v4965_v53 = vld [vmem:[%s6143_s22 + $0x1] ss:$0 sm:$0xff] }
 0xf3e   : > { %v3477_v59 = vadd.f32 %v3476_v57, %v3475_v56  ;;  %v4767_v56 = vld [vmem:[%s6144_s5 + $0x98] sm:$0xff] }
 0xf3f   : > { %v4771_v57 = vld [vmem:[%s6144_s5 + $0xb8] sm:$0xff] }
 0xf43   : > { %v3470_v58 = vpop.f32.mrf.mxu2 }
 0xf44   : > { %v3478_v61 = vsel %vm1032_vm0, %v3470_v58, 0.0  ;;  %v4775_v58 = vld [vmem:[%s6144_s5 + $0xd8] sm:$0xff] }
 0xf45   : > { %v3479_v63 = vadd.f32 %v3478_v61, %v3477_v59  ;;  %v4779_v59 = vld [vmem:[%s6144_s5 + $0xf8] sm:$0xff]  ;;  %v4770_v61 = vld [vmem:[%s6144_s5 + $0xb0] sm:$0xff] }
 0xf47   : > { %v3483_v0 = vadd.f32 %v4963_v60, %v3479_v63  ;;  %v4766_v60 = vld [vmem:[%s6144_s5 + $0x90] sm:$0xff] }
 0xf48   : > { %v4774_v63 = vld [vmem:[%s6144_s5 + $0xd0] sm:$0xff] }
 0xf49   : > { %v3484_v1 = vadd.f32 %v3483_v0, %v5752_v27  ;;  %v4727_v27 = vld [vmem:[%s6124_s6 + $0x98] sm:$0xff]  ;;  %v4778_v0 = vld [vmem:[%s6144_s5 + $0xf0] sm:$0xff] }
 0xf4a   : > { %3619 = vmatpush.msra.mxu3 %v4727_v27  ;;  %v4776_v27 = vld [vmem:[%s6144_s5 + $0xe0] sm:$0xff] }
 0xf4b   : > { %v3489_v2 = vsel %vm1032_vm0, %v3484_v1, 0.0 }
 0xf4c   : > { %3490 = vadd.xlane.f32.xlu2 %v3489_v2  ;;  %3620 = vmatpush.msra.mxu3 %v4726_v11  ;;  %v4769_v2 = vld [vmem:[%s6144_s5 + $0xa8] sm:$0xff] }
 0xf4e   : > { %3621 = vmatpush.msra.mxu3 %v4725_v15 }
 0xf50   : > { %3622 = vmatpush.msra.mxu3 %v4724_v19 }
 0xf52   : > { %3711 = vmatpush.msrb.mxu3 %v4747_v23  ;;  %v4974_v23 = vld [vmem:[%s6147_s17 + $0x5] ss:$0 sm:$0xff] }
 0xf54   : > { %3712 = vmatpush.msrb.mxu3 %v4746_v29  ;;  %v4969_v29 = vld [vmem:[%s6146_s13 + $0x7] ss:$0 sm:$0xff] }
 0xf56   : > { %3713 = vmatpush.msrb.mxu3 %v4745_v35 }
 0xf58   : > { %3714 = vmatpush.msrb.mxu3 %v4744_v40  ;;  %v4977_v40 = vld [vmem:[%s6147_s17 + $0x7] ss:$0 sm:$0xff] }
 0xfbf   : > { %v3491_v25 = vpop.xlane.xlu2 %3490 }
 0xfc0   : > { %v3492_v3 = vmul.f32 %v3491_v25, %v5398_v10  ;;  %v4773_v25 = vld [vmem:[%s6144_s5 + $0xc8] sm:$0xff] }
 0xfc2   : > { %v5851_v4 = vsub.f32 %v3484_v1, %v3492_v3  ;;  %v4765_v1 = vld [vmem:[%s6144_s5 + $0x88] sm:$0xff] }
 0xfc3   : > { %v4777_v3 = vld [vmem:[%s6144_s5 + $0xe8] sm:$0xff] }
 0xfc4   : > { %v3494_v5 = vmul.f32 %v5851_v4, %v5851_v4 }
 0xfc6   : > { %v3495_v6 = vsel %vm1032_vm0, %v3494_v5, 0.0  ;;  %v4768_v5 = vld [vmem:[%s6144_s5 + $0xa0] sm:$0xff] }
 0xfc7   : > { %3496 = vadd.xlane.f32.xlu0 %v3495_v6  ;;  %v4772_v6 = vld [vmem:[%s6144_s5 + $0xc0] sm:$0xff] }
0x103a   : > { %v3497_v31 = vpop.xlane.xlu0 %3496 }
0x103b   : > { %v3498_v34 = vmul.f32 %v3497_v31, %v5398_v10 }
0x103d   : > { %v3499_v39 = vadd.f32 1e-05, %v3498_v34 }
0x103f   : > { %5044 = vrsqrt.f32 %v3499_v39  ;;  %vm3506_vm10 = vweird.f32 %v3499_v39 }
0x1045   : > { %v5045_v44 = vpop.eup %5044 }
0x1046   : > { %v3501_v45 = vmul.f32 %v5045_v44, %v3499_v39  ;;  %vm3507_vm9 = vweird.f32 %v5045_v44  ;;  %v4976_v39 = vld [vmem:[%s6147_s17 + $0x4] ss:$0 sm:$0xff] }
0x1047   : > { %vm3508_vm11 = vmor %vm3506_vm10, %vm3507_vm9 }
0x1048   : > { %v3502_v46 = vmul.f32 %v5045_v44, %v3501_v45 }
0x104a   : > { %v3503_v47 = vmul.f32 0.5, %v3502_v46 }
0x104c   : > { %v3504_v48 = vsub.f32 1.5, %v3503_v47 }
0x104e   : > { %v3505_v49 = vmul.f32 %v5045_v44, %v3504_v48 }
0x1050   : > { %v3509_v51 = vsel %vm3508_vm11, %v5045_v44, %v3505_v49 }
0x1051   : > { %v3510_v52 = vmul.f32 %v3509_v51, %v5851_v4  ;;  %v4764_v4 = vld [vmem:[%s6144_s5 + $0x80] sm:$0xff] }
0x1053   : > { %v3514_v54 = vmul.f32 %v4964_v50, %v3510_v52 }
0x1055   : > { %v5892_v55 = vadd.f32 %v4965_v53, %v3514_v54 }
0x1057   : > { %4789 = vmatmul.msk.f32.vlgmr.msra.gmra.mxu3 %vm1032_vm0, %v5892_v55  ;;  %4790 = vmatmul.msk.f32.vlgmr.msra.gmra.mxu0 %vm1032_vm0, %v5892_v55 }
0x1058   : > { %4791 = vmatmul.msk.f32.vlgmr.msra.gmra.mxu1 %vm1032_vm0, %v5892_v55  ;;  %4792 = vmatmul.msk.f32.vlgmr.msra.gmra.mxu2 %vm1032_vm0, %v5892_v55 }
0x1059   : > { %3803 = vmatpush.msra.mxu3 %v4767_v56  ;;  %3823 = vmatpush.msra.mxu0 %v4771_v57 }
0x105a   : > { %3843 = vmatpush.msra.mxu1 %v4775_v58  ;;  %3863 = vmatpush.msra.mxu2 %v4779_v59 }
0x105b   : > { %3804 = vmatpush.msra.mxu3 %v4766_v60  ;;  %3824 = vmatpush.msra.mxu0 %v4770_v61 }
0x105c   : > { %3844 = vmatpush.msra.mxu1 %v4774_v63  ;;  %3864 = vmatpush.msra.mxu2 %v4778_v0 }
0x105d   : > { %3805 = vmatpush.msra.mxu3 %v4765_v1  ;;  %3825 = vmatpush.msra.mxu0 %v4769_v2 }
0x105e   : > { %3845 = vmatpush.msra.mxu1 %v4773_v25  ;;  %3865 = vmatpush.msra.mxu2 %v4777_v3 }
0x105f   : > { %4793 = vmatmul.msk.f32.vlgmr.msrb.gmra.mxu3 %vm1032_vm0, %v5442_v62  ;;  %4794 = vmatmul.msk.f32.vlgmr.msrb.gmra.mxu0 %vm1032_vm0, %v5442_v62 }
0x1060   : > { %4795 = vmatmul.msk.f32.vlgmr.msrb.gmra.mxu1 %vm1032_vm0, %v5442_v62  ;;  %4796 = vmatmul.msk.f32.vlgmr.msrb.gmra.mxu2 %vm1032_vm0, %v5442_v62 }
0x1061   : > { %3806 = vmatpush.msra.mxu3 %v4764_v4  ;;  %3826 = vmatpush.msra.mxu0 %v4768_v5 }
0x1062   : > { %3846 = vmatpush.msra.mxu1 %v4772_v6  ;;  %3866 = vmatpush.msra.mxu2 %v4776_v27 }
0x1067   : > { %4797 = vmatmul.msk.f32.vlgmr.msra.gmra.mxu3 %vm1032_vm0, %v5442_v62  ;;  %4798 = vmatmul.msk.f32.vlgmr.msra.gmra.mxu0 %vm1032_vm0, %v5442_v62 }
0x1068   : > { %4799 = vmatmul.msk.f32.vlgmr.msra.gmra.mxu1 %vm1032_vm0, %v5442_v62  ;;  %4800 = vmatmul.msk.f32.vlgmr.msra.gmra.mxu2 %vm1032_vm0, %v5442_v62  ;;  %v4972_v62 = vld [vmem:[%s6145_s9 + $0x4] ss:$0 sm:$0xff] }
0x10d4   : > { %v3644_v7 = vpop.f32.mrf.mxu0 }
0x10d5   : > { %v3664_v8 = vpop.f32.mrf.mxu1  ;;  %v3645_v20 = vadd.f32 %v4966_v14, %v3644_v7 }
0x10d6   : > { %v3665_v22 = vadd.f32 %v4967_v16, %v3664_v8 }
0x10da   : > { %v3624_v11 = vpop.f32.mrf.mxu3 }
0x10db   : > { %v3684_v13 = vpop.f32.mrf.mxu2  ;;  %v3625_v36 = vadd.f32 %v4968_v24, %v3624_v11 }
0x10dc   : > { %v3736_v15 = vpop.f32.mrf.mxu0  ;;  %v3685_v38 = vadd.f32 %v4969_v29, %v3684_v13 }
0x10dd   : > { %v3737_v17 = vadd.f32 %v4970_v9, %v3736_v15  ;;  %v3756_v18 = vpop.f32.mrf.mxu1 }
0x10de   : > { %v3757_v19 = vadd.f32 %v4971_v12, %v3756_v18 }
0x10df   : > { %4803 = vmatpush.xpose.msk.msrb.mxu0 %vm1415_vm5, %v3737_v17 }
0x10e0   : > { %4805 = vmatpush.xpose.msk.msrb.mxu1 %vm1415_vm5, %v3757_v19 }
0x10e2   : > { %v3716_v26 = vpop.f32.mrf.mxu3  ;;  %4804 = vmatmul.msk.f32.vlgmr.msrb.gmra.mxu0 %vm1415_vm5, %v3645_v20 }
0x10e3   : > { %v3717_v30 = vadd.f32 %v4972_v62, %v3716_v26  ;;  %v3776_v31 = vpop.f32.mrf.mxu2  ;;  %4806 = vmatmul.msk.f32.vlgmr.msrb.gmra.mxu1 %vm1415_vm5, %v3665_v22 }
0x10e4   : > { %v3777_v32 = vadd.f32 %v4973_v21, %v3776_v31  ;;  %v3828_v33 = vpop.f32.mrf.mxu0 }
0x10e5   : > { %v3829_v34 = vadd.f32 %v4974_v23, %v3828_v33  ;;  %v3848_v35 = vpop.f32.mrf.mxu1  ;;  %4801 = vmatpush.xpose.msk.msrb.mxu3 %vm1415_vm5, %v3717_v30 }
0x10e6   : > { %v3849_v37 = vadd.f32 %v4975_v28, %v3848_v35  ;;  %4807 = vmatpush.xpose.msk.msrb.mxu2 %vm1415_vm5, %v3777_v32 }
0x10e7   : > { %4116 = vmatpush.msra.mxu0 %v3829_v34 }
0x10e8   : > { %4139 = vmatpush.msra.mxu1 %v3849_v37  ;;  %4802 = vmatmul.msk.f32.vlgmr.msrb.gmra.mxu3 %vm1415_vm5, %v3625_v36 }
0x10e9   : > { %4808 = vmatmul.msk.f32.vlgmr.msrb.gmra.mxu2 %vm1415_vm5, %v3685_v38 }
0x10ea   : > { %v3808_v41 = vpop.f32.mrf.mxu3 }
0x10eb   : > { %v3809_v42 = vadd.f32 %v4976_v39, %v3808_v41  ;;  %v3868_v43 = vpop.f32.mrf.mxu2 }
0x10ec   : > { %v3869_v44 = vadd.f32 %v4977_v40, %v3868_v43 }
0x10ed   : > { %4093 = vmatpush.msra.mxu3 %v3809_v42 }
0x10ee   : > { %4162 = vmatpush.msra.mxu2 %v3869_v44 }
0x115f   : > { %v3920_v45 = vpop.f32.mrf.mxu0 }
0x1160   : > { %v3976_v46 = vmul.f32 0.35355338, %v3920_v45  ;;  %v3946_v53 = vpop.f32.mrf.mxu1 }
0x1161   : > { %v3977_v56 = vmul.f32 0.35355338, %v3946_v53 }
0x1162   : > { %v3982_v47 = vsel %vm1415_vm5, %v3976_v46, -inf }
0x1163   : > { %3983 = vmax.xlane.f32.xlu0 %v3982_v47  ;;  %v3985_v57 = vsel %vm1415_vm5, %v3977_v56, -inf }
0x116b   : > { %v3894_v48 = vpop.f32.mrf.mxu3 }
0x116c   : > { %v3975_v49 = vmul.f32 0.35355338, %v3894_v48  ;;  %v3972_v50 = vpop.f32.mrf.mxu2 }
0x116d   : > { %v3978_v51 = vmul.f32 0.35355338, %v3972_v50 }
0x116e   : > { %v3979_v52 = vsel %vm1415_vm5, %v3975_v49, -inf }
0x116f   : > { %v3988_v54 = vsel %vm1415_vm5, %v3978_v51, -inf  ;;  %3980 = vmax.xlane.f32.xlu1 %v3979_v52 }
0x1170   : > { %3989 = vmax.xlane.f32.xlu2 %v3988_v54 }
0x1177   : > { %3986 = vmax.xlane.f32.xlu1 %v3985_v57 }
0x11d6   : > { %v3984_v58 = vpop.xlane.xlu0 %3983 }
0x11d7   : > { %v3992_v59 = vsub.f32 %v3976_v46, %v3984_v58 }
0x11d9   : > { %v3997_v60 = vmul.f32 1.442695, %v3992_v59 }
0x11db   : > { %5046 = vpow2.f32 %v3997_v60 }
0x11e1   : > { %v5047_v61 = vpop.eup %5046 }
0x11e2   : > { %v3981_v63 = vpop.xlane.xlu1 %3980  ;;  %v4006_v0 = vsel %vm1415_vm5, %v5047_v61, 0.0 }
0x11e3   : > { %v3990_v1 = vpop.xlane.xlu2 %3989  ;;  %v3991_v2 = vsub.f32 %v3975_v49, %v3981_v63  ;;  %4007 = vadd.xlane.f32.xlu1 %v4006_v0 }
0x11e4   : > { %v3994_v25 = vsub.f32 %v3978_v51, %v3990_v1  ;;  %v4785_v1 = vld [vmem:[%s6148_s21 + $0x28] sm:$0xff] }
0x11e5   : > { %v3995_v3 = vmul.f32 1.442695, %v3991_v2  ;;  %4208 = vmatpush.msrb.mxu0 %v4785_v1  ;;  %v4784_v2 = vld [vmem:[%s6148_s21 + $0x20] sm:$0xff] }
0x11e6   : > { %v4001_v4 = vmul.f32 1.442695, %v3994_v25  ;;  %4185 = vmatpush.msrb.mxu3 %v4784_v2  ;;  %v4787_v25 = vld [vmem:[%s6148_s21 + $0x38] sm:$0xff] }
0x11e7   : > { %5048 = vpow2.f32 %v3995_v3  ;;  %4254 = vmatpush.msrb.mxu2 %v4787_v25  ;;  %v4786_v3 = vld [vmem:[%s6148_s21 + $0x30] sm:$0xff] }
0x11e8   : > { %5050 = vpow2.f32 %v4001_v4  ;;  %4231 = vmatpush.msrb.mxu1 %v4786_v3 }
0x11ea   : > { %v3987_v5 = vpop.xlane.xlu1 %3986 }
0x11eb   : > { %v3993_v6 = vsub.f32 %v3977_v56, %v3987_v5 }
0x11ed   : > { %v5959_v27 = vpop.eup %5048  ;;  %v3999_v7 = vmul.f32 1.442695, %v3993_v6 }
0x11ee   : > { %v5961_v8 = vpop.eup %5050  ;;  %v4003_v9 = vsel %vm1415_vm5, %v5959_v27, 0.0 }
0x11ef   : > { %5052 = vpow2.f32 %v3999_v7  ;;  %v4012_v11 = vsel %vm1415_vm5, %v5961_v8, 0.0  ;;  %4004 = vadd.xlane.f32.xlu2 %v4003_v9 }
0x11f0   : > { %4013 = vadd.xlane.f32.xlu0 %v4012_v11 }
0x11f5   : > { %v5967_v12 = vpop.eup %5052 }
0x11f6   : > { %v4009_v13 = vsel %vm1415_vm5, %v5967_v12, 0.0 }
0x11f7   : > { %4010 = vadd.xlane.f32.xlu2 %v4009_v13 }
0x1256   : > { %v4008_v14 = vpop.xlane.xlu1 %4007 }
0x1257   : > { %5054 = vrcp.f32 %v4008_v14  ;;  %v4041_v18 = vand.u32 2147483648, %v4008_v14  ;;  %v4039_v62 = vand.u32 2147483647, %v4008_v14  ;;  %vm4035_vm13 = vweird.f32 %v4008_v14 }
0x1259   : > { %v4042_v23 = vor.u32 1.1754944e-38, %v4041_v18  ;;  %vm4040_vm15 = vcmp.eq.f32.partialorder %v4039_v62, 8.507059e+37 }
0x125d   : > { %v5055_v15 = vpop.eup %5054 }
0x125e   : > { %v4031_v16 = vmul.f32 %v5055_v15, %v4008_v14  ;;  %vm4036_vm12 = vweird.f32 %v5055_v15 }
0x125f   : > { %vm4037_vm14 = vmor %vm4035_vm13, %vm4036_vm12 }
0x1260   : > { %v4032_v17 = vsub.f32 1.0, %v4031_v16 }
0x1262   : > { %v4033_v19 = vmul.f32 %v5055_v15, %v4032_v17  ;;  %v4005_v20 = vpop.xlane.xlu2 %4004  ;;  %v4978_v17 = vld [vmem:[%s6149_s26 + $0x1] ss:$0 sm:$0xff] }
0x1263   : > { %v4014_v21 = vpop.xlane.xlu0 %4013  ;;  %5056 = vrcp.f32 %v4005_v20  ;;  %v4026_v36 = vand.u32 2147483648, %v4005_v20  ;;  %v4024_v39 = vand.u32 2147483647, %v4005_v20  ;;  %vm4020_vm4 = vweird.f32 %v4005_v20 }
0x1264   : > { %v4034_v22 = vadd.f32 %v5055_v15, %v4033_v19  ;;  %5058 = vrcp.f32 %v4014_v21  ;;  %v4071_v37 = vand.u32 2147483648, %v4014_v21  ;;  %v4069_v41 = vand.u32 2147483647, %v4014_v21 }
0x1265   : > { %vm4065_vm6 = vweird.f32 %v4014_v21  ;;  %v4027_v45 = vor.u32 1.1754944e-38, %v4026_v36  ;;  %vm4025_vm9 = vcmp.eq.f32.partialorder %v4024_v39, 8.507059e+37  ;;  %v4828_v39 = vld [vmem:[%s6152_s1 + $0x58] sm:$0xff] }
0x1266   : > { %v4038_v24 = vsel %vm4037_vm14, %v5055_v15, %v4034_v22  ;;  %v4072_v46 = vor.u32 1.1754944e-38, %v4071_v37  ;;  %vm4070_vm10 = vcmp.eq.f32.partialorder %v4069_v41, 8.507059e+37  ;;  %v4829_v37 = vld [vmem:[%s6152_s1 + $0x60] sm:$0xff] }
0x1267   : > { %v4043_v26 = vsel %vm4040_vm15, %v4042_v23, %v4038_v24 }
0x1268   : > { %v4044_v28 = vmul.f32 %v5047_v61, %v4043_v26 }
0x1269   : > { %v5057_v29 = vpop.eup %5056 }
0x126a   : > { %v5059_v30 = vpop.eup %5058  ;;  %v4016_v31 = vmul.f32 %v5057_v29, %v4005_v20  ;;  %v4011_v32 = vpop.xlane.xlu2 %4010  ;;  %4810 = vmatmul.msk.f32.vlgmr.msra.gmra.mxu0 %vm1415_vm5, %v4044_v28  ;;  %vm4021_vm2 = vweird.f32 %v5057_v29 }
0x126b   : > { %v4061_v33 = vmul.f32 %v5059_v30, %v4014_v21  ;;  %5060 = vrcp.f32 %v4011_v32  ;;  %vm4066_vm3 = vweird.f32 %v5059_v30  ;;  %vm4022_vm7 = vmor %vm4020_vm4, %vm4021_vm2  ;;  %v4056_v56 = vand.u32 2147483648, %v4011_v32 }
0x126c   : > { %v4017_v34 = vsub.f32 1.0, %v4016_v31  ;;  %vm4067_vm8 = vmor %vm4065_vm6, %vm4066_vm3  ;;  %v4054_v58 = vand.u32 2147483647, %v4011_v32  ;;  %vm4050_vm12 = vweird.f32 %v4011_v32  ;;  %v4819_v31 = vld [vmem:[%s6151_s18 + $0x20] sm:$0xff]  ;;  %vm4442_vm6 = vcmask 326656  }
0x126d   : > { %v4062_v35 = vsub.f32 1.0, %v4061_v33  ;;  %v4057_v60 = vor.u32 1.1754944e-38, %v4056_v56  ;;  %v4831_v33 = vld [vmem:[%s6152_s1 + $0x70] sm:$0xff]  ;;  %v4981_v56 = vld [vmem:[%s6158_s4 + $0x1] ss:$0 sm:$0xff]  ;;  %s4455_s4 = scalar_lea.hbm %s6165_s7, %s4839_s3 }
0x126e   : > { %v4018_v38 = vmul.f32 %v5057_v29, %v4017_v34  ;;  %vm4055_vm14 = vcmp.eq.f32.partialorder %v4054_v58, 8.507059e+37  ;;  %v4830_v34 = vld [vmem:[%s6152_s1 + $0x68] sm:$0xff]  ;;  %s4459_s9 = sshll.u32 %s4455_s4, 4  ;;  %s4460_s9 = int_to_ptr.hbm [resolvable:$true] %s4459_s9 }
0x126f   : > { %v4063_v40 = vmul.f32 %v5059_v30, %v4062_v35  ;;  %s5081_s13 = sshra.s32 %s4460_s9, 4  ;;  %s5082_s13 = int_to_ptr.hbm [resolvable:$true] %s5081_s13 }
0x1270   : > { %v4019_v42 = vadd.f32 %v5057_v29, %v4018_v38  ;;  %s5083_s14 = scalar_lea.hbm %s5082_s13, 8 }
0x1271   : > { %v5061_v43 = vpop.eup %5060  ;;  %v4064_v44 = vadd.f32 %v5059_v30, %v4063_v40  ;;  %p5084_p11 = scmp.ne.s32.totalorder %s5082_s13, %s5083_s14 }
0x1272   : > { %v4023_v47 = vsel %vm4022_vm7, %v5057_v29, %v4019_v42  ;;  %v4046_v48 = vmul.f32 %v5061_v43, %v4011_v32  ;;  %vm4051_vm11 = vweird.f32 %v5061_v43  ;;  %v4822_v29 = vld [vmem:[%s6151_s18 + $0x38] sm:$0xff] }
0x1273   : > { %v4068_v49 = vsel %vm4067_vm8, %v5059_v30, %v4064_v44  ;;  %v4028_v50 = vsel %vm4025_vm9, %v4027_v45, %v4023_v47  ;;  %vm4052_vm13 = vmor %vm4050_vm12, %vm4051_vm11  ;;  %v4821_v30 = vld [vmem:[%s6151_s18 + $0x30] sm:$0xff]  ;;  %v4832_v32 = vld [vmem:[%s6152_s1 + $0x78] sm:$0xff]  ;;  %p5085_p12 = pnand %p5084_p11, %p5378_p5 }
0x1274   : > { %v4073_v51 = vsel %vm4070_vm10, %v4072_v46, %v4068_v49  ;;  %v4047_v52 = vsub.f32 1.0, %v4046_v48  ;;  %v4029_v53 = vmul.f32 %v5959_v27, %v4028_v50  ;;  %4364 = vmatpush.msra.mxu0 %v4832_v32  ;;  %v4979_v46 = vld [vmem:[%s6154_s28 + $0x1] ss:$0 sm:$0xff] }
0x1275   : > { %v4074_v54 = vmul.f32 %v5961_v8, %v4073_v51  ;;  %v4980_v48 = vld [vmem:[%s6156_s27 + $0x1] ss:$0 sm:$0xff]  ;;  %p5086_p13 = pneg %p5085_p12 }
0x1276   : > { %v4048_v57 = vmul.f32 %v5061_v43, %v4047_v52  ;;  %4809 = vmatmul.msk.f32.vlgmr.msra.gmra.mxu3 %vm1415_vm5, %v4029_v53  ;;  %4365 = vmatpush.msra.mxu0 %v4831_v33  ;;  %v4827_v52 = vld [vmem:[%s6152_s1 + $0x50] sm:$0xff]  ;;  %v4826_v53 = vld [vmem:[%s6152_s1 + $0x48] sm:$0xff] }
0x1277   : > { %4812 = vmatmul.msk.f32.vlgmr.msra.gmra.mxu2 %vm1415_vm5, %v4074_v54  ;;  %4330 = vmatpush.msra.mxu3 %v4822_v29  ;;  %v4825_v54 = vld [vmem:[%s6152_s1 + $0x40] sm:$0xff]  ;;  %s1016_s1 = sand.u32 1, %s5121_s10  }
0x1278   : > { %v4049_v59 = vadd.f32 %v5061_v43, %v4048_v57  ;;  %4366 = vmatpush.msra.mxu0 %v4830_v34  ;;  %s4568_s2 = sshll.u32 %s1016_s1, 3 }
0x1279   : > { %4331 = vmatpush.msra.mxu3 %v4821_v30  ;;  %s1018_s6 = scalar_lea.vmem [#allocation2], %s4568_s2 }
0x127a   : > { %v4053_v61 = vsel %vm4052_vm13, %v5061_v43, %v4049_v59  ;;  %4367 = vmatpush.msra.mxu0 %v4829_v37  ;;  %s4457_s8 = sshll.u32 %s1018_s6, 4  ;;  %s4458_s8 = int_to_ptr.vmem [resolvable:$true] %s4457_s8 }
0x127b   : > { %v4058_v63 = vsel %vm4055_vm14, %v4057_v60, %v4053_v61  ;;  %v4982_v60 = vld [vmem:[%s6159_s0 + $0x1] ss:$0 sm:$0xff]  ;;  %s6166_s0 = smov %s6165_s7 }
0x127c   : > { %v4059_v0 = vmul.f32 %v5967_v12, %v4058_v63  ;;  %4368 = vmatpush.msra.mxu0 %v4828_v39  ;;  %s5087_s3 = scalar_lea.hbm %s6166_s0, 16  ;;  %p5088_p0 = scmp.lt.s32.totalorder %s5082_s13, %s6166_s0 }
0x127d   : > { %p5089_p1 = scmp.lt.s32.totalorder %s5087_s3, %s5083_s14 }
0x127e   : > { %4811 = vmatmul.msk.f32.vlgmr.msra.gmra.mxu1 %vm1415_vm5, %v4059_v0  ;;  %4369 = vmatpush.msra.mxu0 %v4827_v52 }
0x127f   : > { %p5090_p2 = por %p5089_p1, %p5088_p0 }
0x1280   : > { %4370 = vmatpush.msra.mxu0 %v4826_v53 }
0x1281   : > { %p5091_p3 = pnand %p5090_p2, %p5086_p13 }
0x1282   : > { %4371 = vmatpush.msra.mxu0 %v4825_v54 }
0x12e7   : > { %v4118_v4 = vpop.f32.mrf.mxu0 }
0x12e8   : > { %4814 = vmatmul.msk.f32.vlgmr.msrb.gmra.mxu0 %vm1415_vm5, %v4118_v4 }
0x12f9   : > { %v4095_v5 = vpop.f32.mrf.mxu3 }
0x12fa   : > { %v4164_v6 = vpop.f32.mrf.mxu2  ;;  %4813 = vmatmul.msk.f32.vlgmr.msrb.gmra.mxu3 %vm1415_vm5, %v4095_v5 }
0x12fb   : > { %4816 = vmatmul.msk.f32.vlgmr.msrb.gmra.mxu2 %vm1415_vm5, %v4164_v6  ;;  %v4141_v27 = vpop.f32.mrf.mxu1  ;;  %v4414_v6 = vld [vmem:[%s6162_s15 + $0x18] sm:$0xff]  ;;  %s6167_s15 = sld [smem:[#allocation32_spill]] }
0x12fc   : > { %4815 = vmatmul.msk.f32.vlgmr.msrb.gmra.mxu1 %vm1415_vm5, %v4141_v27  ;;  %v4413_v27 = vld [vmem:[%s6163_s23 + $0x10] sm:$0xff] }
0x12fd   : > { %4434 = vmatpush.msra.mxu1 %v4414_v6 }
0x12ff   : > { %4435 = vmatpush.msra.mxu1 %v4413_v27 }
0x1365   : > { %v4210_v7 = vpop.f32.mrf.mxu0 }
0x1366   : > { %v4260_v11 = vsel %vm1032_vm0, %v4210_v7, 0.0  ;;  %v4412_v7 = vld [vmem:[%s6163_s23 + $0x8] sm:$0xff] }
0x1367   : > { %4436 = vmatpush.msra.mxu1 %v4412_v7 }
0x1379   : > { %v4233_v8 = vpop.f32.mrf.mxu1 }
0x137a   : > { %v4262_v15 = vsel %vm1032_vm0, %v4233_v8, 0.0  ;;  %v4411_v8 = vld [vmem:[%s6163_s23] sm:$0xff] }
0x137b   : > { %4437 = vmatpush.msra.mxu1 %v4411_v8 }
0x137d   : > { %v4187_v9 = vpop.f32.mrf.mxu3 }
0x137e   : > { %v4259_v12 = vsel %vm1032_vm0, %v4187_v9, 0.0  ;;  %v4256_v14 = vpop.f32.mrf.mxu2 }
0x137f   : > { %v4261_v13 = vadd.f32 %v4260_v11, %v4259_v12  ;;  %v4264_v18 = vsel %vm1032_vm0, %v4256_v14, 0.0 }
0x1381   : > { %v4263_v16 = vadd.f32 %v4262_v15, %v4261_v13 }
0x1383   : > { %v4265_v19 = vadd.f32 %v4264_v18, %v4263_v16 }
0x1385   : > { %v4269_v62 = vadd.f32 %v4978_v17, %v4265_v19  ;;  %v4983_v19 = vld [vmem:[%s6161_s20 + $0x1] ss:$0 sm:$0xff] }
0x1387   : > { %v4270_v20 = vadd.f32 %v4269_v62, %v5892_v55  ;;  %v4820_v55 = vld [vmem:[%s6151_s18 + $0x28] sm:$0xff] }
0x1388   : > { %4332 = vmatpush.msra.mxu3 %v4820_v55 }
0x1389   : > { %v4275_v21 = vsel %vm1032_vm0, %v4270_v20, 0.0 }
0x138a   : > { %4276 = vadd.xlane.f32.xlu0 %v4275_v21  ;;  %4333 = vmatpush.msra.mxu3 %v4819_v31 }
0x13fd   : > { %v4277_v22 = vpop.xlane.xlu0 %4276 }
0x13fe   : > { %v4278_v23 = vmul.f32 %v4277_v22, %v5398_v10 }
0x1400   : > { %v4279_v24 = vsub.f32 %v4270_v20, %v4278_v23  ;;  %v4984_v20 = vld [vmem:[%s6122_s12 + $0x1] ss:$0 sm:$0xff]  ;;  %v4985_v23 = vld [vmem:[%s6167_s15] ss:$0 sm:$0xff]  ;;  %s4445_s12 = scalar_lea.sflag [#allocation3], %s1016_s1 }
0x1402   : > { %v4280_v26 = vmul.f32 %v4279_v24, %v4279_v24 }
0x1404   : > { %v4281_v28 = vsel %vm1032_vm0, %v4280_v26, 0.0 }
0x1405   : > { %4282 = vadd.xlane.f32.xlu1 %v4281_v28 }
0x1478   : > { %v4283_v35 = vpop.xlane.xlu1 %4282 }
0x1479   : > { %v4284_v36 = vmul.f32 %v4283_v35, %v5398_v10 }
0x147b   : > { %v4285_v38 = vadd.f32 1e-05, %v4284_v36 }
0x147d   : > { %5062 = vrsqrt.f32 %v4285_v38  ;;  %vm4292_vm15 = vweird.f32 %v4285_v38 }
0x1483   : > { %v5063_v40 = vpop.eup %5062 }
0x1484   : > { %v4287_v41 = vmul.f32 %v5063_v40, %v4285_v38  ;;  %vm4293_vm5 = vweird.f32 %v5063_v40 }
0x1485   : > { %vm4294_vm2 = vmor %vm4292_vm15, %vm4293_vm5 }
0x1486   : > { %v4288_v42 = vmul.f32 %v5063_v40, %v4287_v41 }
0x1488   : > { %v4289_v43 = vmul.f32 0.5, %v4288_v42 }
0x148a   : > { %v4290_v44 = vsub.f32 1.5, %v4289_v43 }
0x148c   : > { %v4291_v45 = vmul.f32 %v5063_v40, %v4290_v44 }
0x148e   : > { %v4295_v47 = vsel %vm4294_vm2, %v5063_v40, %v4291_v45 }
0x148f   : > { %v4296_v49 = vmul.f32 %v4295_v47, %v4279_v24 }
0x1491   : > { %v4300_v50 = vmul.f32 %v4979_v46, %v4296_v49 }
0x1493   : > { %v4304_v51 = vadd.f32 %v4980_v48, %v4300_v50 }
0x1495   : > { %4824 = vmatmul.msk.f32.vlgmr.msra.gmra.mxu3 %vm1032_vm0, %v4304_v51 }
0x1518   : > { %v4335_v57 = vpop.f32.mrf.mxu3 }
0x1519   : > { %v4336_v58 = vadd.f32 %v4981_v56, %v4335_v57 }
0x151b   : > { %v4338_v59 = vmax.f32 %v4336_v58, 0.0 }
0x151d   : > { %4834 = vmatmul.msk.f32.vlgmr.msra.gmra.mxu0 %vm2672_vm1, %v4338_v59 }
0x159a   : > { %v4373_v61 = vpop.f32.mrf.mxu0 }
0x159b   : > { %v4374_v63 = vadd.f32 %v4982_v60, %v4373_v61 }
0x159d   : > { %v4376_v0 = vadd.f32 %v4374_v63, %v4304_v51 }
0x159f   : > { %v4381_v1 = vsel %vm1032_vm0, %v4376_v0, 0.0 }
0x15a0   : > { %4382 = vadd.xlane.f32.xlu2 %v4381_v1 }
0x1613   : > { %v4383_v2 = vpop.xlane.xlu2 %4382 }
0x1614   : > { %v4384_v25 = vmul.f32 %v4383_v2, %v5398_v10 }
0x1616   : > { %v4385_v3 = vsub.f32 %v4376_v0, %v4384_v25 }
0x1618   : > { %v4386_v4 = vmul.f32 %v4385_v3, %v4385_v3 }
0x161a   : > { %v4387_v5 = vsel %vm1032_vm0, %v4386_v4, 0.0 }
0x161b   : > { %4388 = vadd.xlane.f32.xlu0 %v4387_v5 }
0x168e   : > { %v4389_v9 = vpop.xlane.xlu0 %4388 }
0x168f   : > { %v4390_v11 = vmul.f32 %v4389_v9, %v5398_v10 }
0x1691   : > { %v4391_v12 = vadd.f32 1e-05, %v4390_v11 }
0x1693   : > { %5064 = vrsqrt.f32 %v4391_v12  ;;  %vm4398_vm3 = vweird.f32 %v4391_v12 }
0x1699   : > { %v5065_v13 = vpop.eup %5064 }
0x169a   : > { %v4393_v14 = vmul.f32 %v5065_v13, %v4391_v12  ;;  %vm4399_vm1 = vweird.f32 %v5065_v13 }
0x169b   : > { %vm4400_vm4 = vmor %vm4398_vm3, %vm4399_vm1 }
0x169c   : > { %v4394_v15 = vmul.f32 %v5065_v13, %v4393_v14 }
0x169e   : > { %v4395_v16 = vmul.f32 0.5, %v4394_v15 }
0x16a0   : > { %v4396_v17 = vsub.f32 1.5, %v4395_v16 }
0x16a2   : > { %v4397_v18 = vmul.f32 %v5065_v13, %v4396_v17 }
0x16a4   : > { %v4401_v62 = vsel %vm4400_vm4, %v5065_v13, %v4397_v18 }
0x16a5   : > { %v4402_v21 = vmul.f32 %v4401_v62, %v4385_v3 }
0x16a7   : > { %v4406_v10 = vmul.f32 %v4983_v19, %v4402_v21 }
0x16a9   : > { %v4410_v22 = vadd.f32 %v4984_v20, %v4406_v10 }
0x16ab   : > { %4837 = vmatmul.msk.f32.vlgmr.msra.gmra.mxu1 %vm1032_vm0, %v4410_v22 }
0x1728   : > { %v4439_v24 = vpop.f32.mrf.mxu1 }
0x1729   : > { %v4440_v26 = vadd.f32 %v4985_v23, %v4439_v24 }
0x172b   : > { %4443 = vst.msk [vmem:[%s1018_s6] sm:$0xff] %vm4442_vm6, %v4440_v26 }
0x172c   : > { %5094 = shalt.err (!%p5091_p3)
}
0x172d   : > { %4842 = dma.vmem_to_hbm [thread:$0]  (%p5378_p5), %s4458_s8, 128, %s4460_s9, %s4445_s12  }
0x172e PF: > { %s6169_s4 = sld [smem:[#allocation36_spill]] }
0x172f   : > { %s6170_s6 = sld [smem:[#allocation34_spill]] }
0x1734   : > { %p4848_p4 = scmp.ge.s32.totalorder %s6169_s4, 2 }
0x1735   : > { %s4471_s2 = sand.u32 1, %s6170_s6  }
0x1736   : > { %p4845_p7 = pnand %p4848_p4, %p5382_p6  ;;  %s4472_s11 = scalar_lea.sflag [#allocation3], %s4471_s2 }
0x1738   : > { %p4846_p8 = pneg %p4845_p7 }
0x173a   : > { %5112 = dma.done.wait (%p4846_p8), %s4472_s11, 128  }
0x173b   : > { %5114 = vsyncadd (%p4846_p8), %s4472_s11, 4294967168  ;;  %s6172_s15 = sld [smem:[#allocation38_spill]]  ;;  %s6175_s7 = smov %s5121_s10 }
0x173c   : > { %s6173_s13 = sld [smem:[#allocation35_spill]] }
0x173d   : > { %s6174_s11 = sld [smem:[#allocation39_spill]] }
0x1741   : > { %p77_p9 = scmp.ge.s32.totalorder %s6172_s15, 4  }
0x1742   : > { %s6176_s10 = smov %s6173_s13 }
0x1743   :  { %79 = sbr.rel (!%p77_p9) target bundleno = 76 (0x4c), region = 249 }
0x1748   :  { %4478 = vsyncpa [#allocation3], 1 }
0x1749   :  { %4480 = vsyncpa [#allocation3 + $0x1], 1 }

</bundles_post_ra>
